<compile_context>
chip_gen: v5e
topology: v5e:2x2
jax: 0.10.0
libtpu: 0.0.40
codegen_flags: <defaults>
</compile_context>

<pallas_src>
import functools
from typing import NamedTuple

import jax
import jax.numpy as jnp
from jax.experimental import pallas as pl
from jax.experimental.pallas import tpu as pltpu


def _round_up(n, m):
    return ((n + m - 1) // m) * m


# ----------------------------------------------------------------------------
# Kernel (runs once per time-chunk; grid axis is the serial chunk axis)
# ----------------------------------------------------------------------------
def _lstm_chunk_kernel(x_ref, w_ih_ref, w_hh_ref, b_ref, w_fc_ref, b_fc_ref,
                       h0_ref, c0_ref,
                       y_ref, hn_ref, cn_ref,
                       gx_sc, hseq_sc,
                       *, T_total, Tc, Bp, Hp):
    chunk = pl.program_id(0)

    # Chunk 0: seed the resident h/c carry (hn/cn output blocks have a constant
    # index_map over the 'arbitrary' chunk axis -> accumulator pattern).
    @pl.when(chunk == 0)
    def _():
        hn_ref[...] = h0_ref[...]
        cn_ref[...] = c0_ref[...]

    # ---- Phase 1 (off serial path): input projection for the whole chunk ----
    # (Tc*Bp, I)bf16 @ (I, 4Hp)bf16 -> f32, one MXU matmul.
    gx_sc[...] = (
        jnp.dot(x_ref[...], w_ih_ref[...], preferred_element_type=jnp.float32)
        + b_ref[...]
    )

    needs_mask = (T_total % Tc) != 0  # static

    # ---- Phase 2: serial recurrence over this chunk's Tc timesteps ----------
    # Gate layout (i, f, o, g): one sigmoid over [:, :3*Hp], tanh over [:, 3*Hp:].
    # TODO(synk): keep W_hh resident in the MXU across steps via
    # pltpu.matmul_push_rhs / matmul_acc_lhs / matmul_pop (staged-RHS path).
    def step(t, carry):
        h, c = carry
        r = pl.multiple_of(t * Bp, Bp)           # sublane-tile-aligned row offset
        gates = gx_sc[pl.ds(r, Bp), :] + jnp.dot(
            h.astype(jnp.bfloat16), w_hh_ref[...],
            preferred_element_type=jnp.float32)
        sg = jax.nn.sigmoid(gates[:, :3 * Hp])   # i, f, o in one contiguous slab
        g_g = jnp.tanh(gates[:, 3 * Hp:])
        i_g = sg[:, 0 * Hp:1 * Hp]
        f_g = sg[:, 1 * Hp:2 * Hp]
        o_g = sg[:, 2 * Hp:3 * Hp]
        c_new = f_g * c + i_g * g_g
        h_new = o_g * jnp.tanh(c_new)
        if needs_mask:                           # only for the ragged last chunk
            valid = (chunk * Tc + t) < T_total
            c_new = jnp.where(valid, c_new, c)
            h_new = jnp.where(valid, h_new, h)
        hseq_sc[pl.ds(r, Bp), :] = h_new.astype(hseq_sc.dtype)
        return h_new, c_new

    unroll = Tc if Tc <= 32 else 4
    h_fin, c_fin = jax.lax.fori_loop(
        0, Tc, step, (hn_ref[...], cn_ref[...]), unroll=unroll)

    hn_ref[...] = h_fin
    cn_ref[...] = c_fin

    # Dropout(p=0.2) is identity in eval mode.
    # TODO(synk): training-mode dropout (random mask + 1/(1-p) scaling) not applied.

    # ---- Phase 3 (off serial path): final Linear for the whole chunk --------
    # (Tc*Bp, Hp)bf16 @ (Hp, Op)bf16 -> f32; lane-dense store (Op % 128 == 0).
    y_ref[...] = (
        jnp.dot(hseq_sc[...], w_fc_ref[...], preferred_element_type=jnp.float32)
        + b_fc_ref[...]
    ).astype(y_ref.dtype)


# ----------------------------------------------------------------------------
# Weight packing (hoisted out of the per-call path: call once, reuse)
# ----------------------------------------------------------------------------
class PackedLSTMParams(NamedTuple):
    w_ih: jax.Array     # (I, 4*Hp)  bf16, gate cols in (i,f,o,g) order
    w_hh: jax.Array     # (Hp, 4*Hp) bf16
    b: jax.Array        # (1, 4*Hp)  f32  (b_ih + b_hh)
    w_fc: jax.Array     # (Hp, Op)   bf16
    b_fc: jax.Array     # (1, Op)    f32
    hidden_size: int
    output_size: int


def pack_lstm_params(params):
    w_ih, w_hh, b_ih, b_hh, w_fc, b_fc = params
    H = w_hh.shape[1]
    O = w_fc.shape[0]
    Hp = _round_up(H, 128)
    Op = _round_up(O, 128)
    f32, bf16 = jnp.float32, jnp.bfloat16
    perm = [0, 1, 3, 2]  # PyTorch row order (i,f,g,o) -> packed (i,f,o,g)

    def pack_gate_cols(w_t):        # (K, 4H) -> (K, 4*Hp); gate g in cols [g*Hp, g*Hp+H)
        K = w_t.shape[0]
        w4 = w_t.reshape(K, 4, H)[:, perm, :]
        w4 = jnp.pad(w4, ((0, 0), (0, 0), (0, Hp - H)))
        return w4.reshape(K, 4 * Hp)

    w_ih_p = pack_gate_cols(jnp.transpose(w_ih).astype(f32)).astype(bf16)        # (I, 4Hp)
    w_hh_p = jnp.pad(pack_gate_cols(jnp.transpose(w_hh).astype(f32)),
                     ((0, Hp - H), (0, 0))).astype(bf16)                          # (Hp, 4Hp)
    b4 = (b_ih + b_hh).astype(f32).reshape(4, H)[perm, :]
    b_p = jnp.pad(b4, ((0, 0), (0, Hp - H))).reshape(1, 4 * Hp)                   # (1, 4Hp)
    w_fc_p = jnp.pad(jnp.transpose(w_fc).astype(f32),
                     ((0, Hp - H), (0, Op - O))).astype(bf16)                     # (Hp, Op)
    b_fc_p = jnp.pad(b_fc.astype(f32), (0, Op - O)).reshape(1, Op)                # (1, Op)
    return PackedLSTMParams(w_ih_p, w_hh_p, b_p, w_fc_p, b_fc_p, H, O)


# ----------------------------------------------------------------------------
# Forward wrappers
# ----------------------------------------------------------------------------
def lstm_forward_packed(x, hidden, packed, *, chunk_steps=128):
    """x: (T, B, I); hidden: (h0, c0) each (1, B, H). Returns (y, (hn, cn))."""
    h0, c0 = hidden
    T, B, I = x.shape
    H, O = packed.hidden_size, packed.output_size
    Hp = packed.w_hh.shape[0]
    Op = packed.w_fc.shape[1]
    Bp = _round_up(B, 8)

    Tc = max(1, min(chunk_steps, T))      # timesteps per chunk
    n_chunks = pl.cdiv(T, Tc)
    Tp = n_chunks * Tc
    rows = Tc * Bp

    f32, bf16 = jnp.float32, jnp.bfloat16

    # Glue: pad batch to a sublane tile, time to whole chunks, flatten time
    # into rows so each chunk's projections are single aligned matmuls.
    x_p = jnp.pad(x.astype(bf16), ((0, Tp - T), (0, Bp - B), (0, 0)))   # (Tp, Bp, I)
    x2d = x_p.reshape(Tp * Bp, I)
    h0_p = jnp.pad(h0[0].astype(f32), ((0, Bp - B), (0, Hp - H)))        # (Bp, Hp)
    c0_p = jnp.pad(c0[0].astype(f32), ((0, Bp - B), (0, Hp - H)))        # (Bp, Hp)

    kernel = functools.partial(_lstm_chunk_kernel,
                               T_total=T, Tc=Tc, Bp=Bp, Hp=Hp)

    # Rough per-chunk VMEM budget (double-buffered x/y chunks + chunk scratch
    # + packed weights), with headroom; bounded independent of T and sized to
    # stay within v7x's 64 MiB physical VMEM.
    est = (2 * rows * I * 2 + 2 * rows * Op * 4
           + rows * 4 * Hp * 4 + rows * Hp * 2
           + packed.w_ih.size * 2 + packed.w_hh.size * 2 + packed.w_fc.size * 2
           + 4 * Bp * Hp * 4)
    vmem_limit = int(min(48 * 2**20, max(16 * 2**20, 2 * est)))

    y2d, hn_p, cn_p = pl.pallas_call(
        kernel,
        out_shape=(
            jax.ShapeDtypeStruct((Tp * Bp, Op), f32),   # y, time-major flattened
            jax.ShapeDtypeStruct((Bp, Hp), f32),        # hn (padded)
            jax.ShapeDtypeStruct((Bp, Hp), f32),        # cn (padded)
        ),
        grid_spec=pltpu.PrefetchScalarGridSpec(
            num_scalar_prefetch=0,
            grid=(n_chunks,),                                   # serial chunk axis
            in_specs=[
                pl.BlockSpec((rows, I), lambda k: (k, 0)),      # x chunk (pipelined)
                pl.BlockSpec((I, 4 * Hp), lambda k: (0, 0)),    # W_ih^T packed
                pl.BlockSpec((Hp, 4 * Hp), lambda k: (0, 0)),   # W_hh^T packed
                pl.BlockSpec((1, 4 * Hp), lambda k: (0, 0)),    # b_ih + b_hh packed
                pl.BlockSpec((Hp, Op), lambda k: (0, 0)),       # W_fc^T
                pl.BlockSpec((1, Op), lambda k: (0, 0)),        # b_fc
                pl.BlockSpec((Bp, Hp), lambda k: (0, 0)),       # h0
                pl.BlockSpec((Bp, Hp), lambda k: (0, 0)),       # c0
            ],
            out_specs=[
                pl.BlockSpec((rows, Op), lambda k: (k, 0)),     # y chunk (pipelined)
                pl.BlockSpec((Bp, Hp), lambda k: (0, 0)),       # hn (resident carry)
                pl.BlockSpec((Bp, Hp), lambda k: (0, 0)),       # cn (resident carry)
            ],
            scratch_shapes=[
                pltpu.VMEM((rows, 4 * Hp), jnp.float32),        # gx for one chunk
                pltpu.VMEM((rows, Hp), jnp.bfloat16),           # h-seq for one chunk
            ],
        ),
        compiler_params=pltpu.CompilerParams(
            dimension_semantics=("arbitrary",),   # serial carry over chunks
            vmem_limit_bytes=vmem_limit,
        ),
    )(x2d, packed.w_ih, packed.w_hh, packed.b, packed.w_fc, packed.b_fc,
      h0_p, c0_p)

    # Un-pad / un-flatten (glue).
    y = y2d.reshape(Tp, Bp, Op)[:T, :B, :O].astype(x.dtype)
    hn = hn_p[:B, :H].reshape(1, B, H).astype(x.dtype)
    cn = cn_p[:B, :H].reshape(1, B, H).astype(x.dtype)
    return y, (hn, cn)
    # TODO(synk): on v7x (2 TCs), when Bp >= 16 split the batch across cores
    # with a leading 'parallel' grid axis for ~2x on the recurrence.


def lstm_forward(x, hidden, params, *, chunk_steps=128):
    """Convenience wrapper: packs weights per call (prefer pack_lstm_params once)."""
    return lstm_forward_packed(x, hidden, pack_lstm_params(params),
                               chunk_steps=chunk_steps)


# ----------------------------------------------------------------------------
# Pure-JAX reference (mirrors PyTorch nn.LSTM + Dropout(eval) + Linear, f32)
# ----------------------------------------------------------------------------
def reference_forward(x, hidden, params):
    h0, c0 = hidden
    w_ih, w_hh, b_ih, b_hh, w_fc, b_fc = params
    H = w_hh.shape[1]

    def step(carry, x_t):
        h, c = carry
        gates = x_t @ w_ih.T + b_ih + h @ w_hh.T + b_hh
        i = jax.nn.sigmoid(gates[:, 0 * H:1 * H])
        f = jax.nn.sigmoid(gates[:, 1 * H:2 * H])
        g = jnp.tanh(gates[:, 2 * H:3 * H])
        o = jax.nn.sigmoid(gates[:, 3 * H:4 * H])
        c_new = f * c + i * g
        h_new = o * jnp.tanh(c_new)
        return (h_new, c_new), h_new

    (hn, cn), outs = jax.lax.scan(step, (h0[0], c0[0]), x)
    y = outs @ w_fc.T + b_fc
    return y, (hn[None], cn[None])


def init_params(key, input_size, hidden_size):
    """Deterministic init matching nn.LSTM(input, hidden, 1) + nn.Linear shapes."""
    ks = jax.random.split(key, 6)
    s = 1.0 / jnp.sqrt(hidden_size)
    w_ih = jax.random.uniform(ks[0], (4 * hidden_size, input_size), jnp.float32, -s, s)
    w_hh = jax.random.uniform(ks[1], (4 * hidden_size, hidden_size), jnp.float32, -s, s)
    b_ih = jax.random.uniform(ks[2], (4 * hidden_size,), jnp.float32, -s, s)
    b_hh = jax.random.uniform(ks[3], (4 * hidden_size,), jnp.float32, -s, s)
    w_fc = jax.random.uniform(ks[4], (input_size, hidden_size), jnp.float32, -s, s)
    b_fc = jax.random.uniform(ks[5], (input_size,), jnp.float32, -s, s)
    return (w_ih, w_hh, b_ih, b_hh, w_fc, b_fc)


if __name__ == "__main__":
    # Small shapes: seq=8, batch=4, output_size (= LSTM input size) = 16, hidden=32.
    T, B, O, H = 8, 4, 16, 32

    key = jax.random.PRNGKey(0)
    k_x, k_h, k_c, k_p = jax.random.split(key, 4)

    x = jax.random.normal(k_x, (T, B, O), jnp.float32)
    h0 = jax.random.normal(k_h, (1, B, H), jnp.float32)
    c0 = jax.random.normal(k_c, (1, B, H), jnp.float32)
    params = init_params(k_p, O, H)

    # Pack weights ONCE (hoisted out of the per-call path).
    packed = pack_lstm_params(params)

    y, (hn, cn) = lstm_forward_packed(x, (h0, c0), packed)
    jax.block_until_ready((y, hn, cn))

    # Silent correctness check against a pure-f32 reference (bf16 MXU operands
    # inside the kernel => relaxed tolerance).
    y_ref, (hn_ref, cn_ref) = reference_forward(x, (h0, c0), params)
    assert jnp.allclose(y, y_ref, atol=3e-2, rtol=3e-2)
    assert jnp.allclose(hn, hn_ref, atol=3e-2, rtol=3e-2)
    assert jnp.allclose(cn, cn_ref, atol=3e-2, rtol=3e-2)

    print("KERNEL_OK")
</pallas_src>

<mosaic_0001>
module attributes {stable_mosaic.version = 11 : i64} {
  func.func @_lstm_chunk_kernel(%arg0: i32, %arg1: memref<64x16xbf16, #tpu.memory_space<vmem>>, %arg2: memref<16x512xbf16, #tpu.memory_space<vmem>>, %arg3: memref<128x512xbf16, #tpu.memory_space<vmem>>, %arg4: memref<1x512xf32, #tpu.memory_space<vmem>>, %arg5: memref<128x128xbf16, #tpu.memory_space<vmem>>, %arg6: memref<1x128xf32, #tpu.memory_space<vmem>>, %arg7: memref<8x128xf32, #tpu.memory_space<vmem>>, %arg8: memref<8x128xf32, #tpu.memory_space<vmem>>, %arg9: memref<64x128xf32, #tpu.memory_space<vmem>>, %arg10: memref<8x128xf32, #tpu.memory_space<vmem>>, %arg11: memref<8x128xf32, #tpu.memory_space<vmem>>, %arg12: memref<64x512xf32, #tpu.memory_space<vmem>>, %arg13: memref<64x128xbf16, #tpu.memory_space<vmem>>) attributes {dimension_semantics = [#tpu.dimension_semantics<arbitrary>], iteration_bounds = array<i64: 1>, scalar_prefetch = 0 : i64, scratch_operands = 2 : i64, tpu.core_type = #tpu.core_type<tc>, window_params = [{transform_indices = @transform_0, window_bounds = array<i64: 64, 16>}, {pipeline_mode = #tpu.pipeline_mode<synchronous>, transform_indices = @transform_1, window_bounds = array<i64: 16, 512>}, {pipeline_mode = #tpu.pipeline_mode<synchronous>, transform_indices = @transform_2, window_bounds = array<i64: 128, 512>}, {pipeline_mode = #tpu.pipeline_mode<synchronous>, transform_indices = @transform_3, window_bounds = array<i64: 1, 512>}, {pipeline_mode = #tpu.pipeline_mode<synchronous>, transform_indices = @transform_4, window_bounds = array<i64: 128, 128>}, {pipeline_mode = #tpu.pipeline_mode<synchronous>, transform_indices = @transform_5, window_bounds = array<i64: 1, 128>}, {pipeline_mode = #tpu.pipeline_mode<synchronous>, transform_indices = @transform_6, window_bounds = array<i64: 8, 128>}, {pipeline_mode = #tpu.pipeline_mode<synchronous>, transform_indices = @transform_7, window_bounds = array<i64: 8, 128>}, {transform_indices = @transform_8, window_bounds = array<i64: 64, 128>}, {pipeline_mode = #tpu.pipeline_mode<synchronous>, transform_indices = @transform_9, window_bounds = array<i64: 8, 128>}, {pipeline_mode = #tpu.pipeline_mode<synchronous>, transform_indices = @transform_10, window_bounds = array<i64: 8, 128>}]} {
    %c0_i32 = arith.constant 0 : i32
    %0 = arith.cmpi eq, %arg0, %c0_i32 : i32
    %1 = arith.extui %0 : i1 to i32
    %c0_i32_0 = arith.constant 0 : i32
    %2 = arith.cmpi ne, %1, %c0_i32_0 : i32
    scf.if %2 {
      %c0_82 = arith.constant 0 : index
      %c0_83 = arith.constant 0 : index
      %237 = vector.load %arg7[%c0_82, %c0_83] : memref<8x128xf32, #tpu.memory_space<vmem>>, vector<8x128xf32>
      %c0_84 = arith.constant 0 : index
      %c0_85 = arith.constant 0 : index
      %238 = vector.load %arg10[%c0_84, %c0_85] : memref<8x128xf32, #tpu.memory_space<vmem>>, vector<8x128xf32>
      tpu.vector_store %arg10[%c0_84, %c0_85], %237 {strides = array<i32>} : memref<8x128xf32, #tpu.memory_space<vmem>>, vector<8x128xf32>,
      %c0_86 = arith.constant 0 : index
      %c0_87 = arith.constant 0 : index
      %239 = vector.load %arg8[%c0_86, %c0_87] : memref<8x128xf32, #tpu.memory_space<vmem>>, vector<8x128xf32>
      %c0_88 = arith.constant 0 : index
      %c0_89 = arith.constant 0 : index
      %240 = vector.load %arg11[%c0_88, %c0_89] : memref<8x128xf32, #tpu.memory_space<vmem>>, vector<8x128xf32>
      tpu.vector_store %arg11[%c0_88, %c0_89], %239 {strides = array<i32>} : memref<8x128xf32, #tpu.memory_space<vmem>>, vector<8x128xf32>,
    } else {
    }
    %c0 = arith.constant 0 : index
    %c0_1 = arith.constant 0 : index
    %3 = vector.load %arg1[%c0, %c0_1] : memref<64x16xbf16, #tpu.memory_space<vmem>>, vector<64x16xbf16>
    %c0_2 = arith.constant 0 : index
    %c0_3 = arith.constant 0 : index
    %4 = vector.load %arg2[%c0_2, %c0_3] : memref<16x512xbf16, #tpu.memory_space<vmem>>, vector<16x512xbf16>
    %cst = arith.constant dense<0.000000e+00> : vector<64x512xf32>
    %5 = tpu.matmul %3, %4, %cst {dimension_numbers = #tpu.dot_dimension_numbers<[1], [0], [0], [1], [0, 0, 1, 1], [], []>} : vector<64x16xbf16>, vector<16x512xbf16>, vector<64x512xf32> -> vector<64x512xf32>
    %c0_4 = arith.constant 0 : index
    %c0_5 = arith.constant 0 : index
    %6 = vector.load %arg4[%c0_4, %c0_5] : memref<1x512xf32, #tpu.memory_space<vmem>>, vector<1x512xf32>
    %7 = vector.broadcast %6 : vector<1x512xf32> to vector<64x512xf32>
    %8 = arith.addf %5, %7 : vector<64x512xf32>
    %c0_6 = arith.constant 0 : index
    %c0_7 = arith.constant 0 : index
    %9 = vector.load %arg12[%c0_6, %c0_7] : memref<64x512xf32, #tpu.memory_space<vmem>>, vector<64x512xf32>
    tpu.vector_store %arg12[%c0_6, %c0_7], %8 {strides = array<i32>} : memref<64x512xf32, #tpu.memory_space<vmem>>, vector<64x512xf32>,
    %c0_8 = arith.constant 0 : index
    %c0_9 = arith.constant 0 : index
    %10 = vector.load %arg10[%c0_8, %c0_9] : memref<8x128xf32, #tpu.memory_space<vmem>>, vector<8x128xf32>
    %c0_10 = arith.constant 0 : index
    %c0_11 = arith.constant 0 : index
    %11 = vector.load %arg11[%c0_10, %c0_11] : memref<8x128xf32, #tpu.memory_space<vmem>>, vector<8x128xf32>
    %c0_i32_12 = arith.constant 0 : i32
    %c8_i32 = arith.constant 8 : i32
    %12 = arith.muli %c0_i32_12, %c8_i32 : i32
    %13 = tpu.assume_multiple %12, 8 : i32
    %14 = arith.index_cast %13 : i32 to index
    %c0_13 = arith.constant 0 : index
    %15 = vector.load %arg12[%14, %c0_13] : memref<64x512xf32, #tpu.memory_space<vmem>>, vector<8x512xf32>
    %16 = arith.truncf %10 : vector<8x128xf32> to vector<8x128xbf16>
    %c0_14 = arith.constant 0 : index
    %c0_15 = arith.constant 0 : index
    %17 = vector.load %arg3[%c0_14, %c0_15] : memref<128x512xbf16, #tpu.memory_space<vmem>>, vector<128x512xbf16>
    %cst_16 = arith.constant dense<0.000000e+00> : vector<8x512xf32>
    %18 = tpu.matmul %16, %17, %cst_16 {dimension_numbers = #tpu.dot_dimension_numbers<[1], [0], [0], [1], [0, 0, 1, 1], [], []>} : vector<8x128xbf16>, vector<128x512xbf16>, vector<8x512xf32> -> vector<8x512xf32>
    %19 = arith.addf %15, %18 : vector<8x512xf32>
    %20 = vector.extract_strided_slice %19 {offsets = [0, 0], sizes = [8, 384], strides = [1, 1]} : vector<8x512xf32> to vector<8x384xf32>
    %21 = arith.negf %20 : vector<8x384xf32>
    %22 = math.exp %21 : vector<8x384xf32>
    %cst_17 = arith.constant 1.000000e+00 : f32
    %23 = vector.broadcast %cst_17 : f32 to vector<8x384xf32>
    %24 = arith.addf %23, %22 : vector<8x384xf32>
    %25 = arith.divf %23, %24 : vector<8x384xf32>
    %26 = vector.extract_strided_slice %19 {offsets = [0, 384], sizes = [8, 128], strides = [1, 1]} : vector<8x512xf32> to vector<8x128xf32>
    %27 = math.tanh %26 : vector<8x128xf32>
    %28 = vector.extract_strided_slice %25 {offsets = [0, 0], sizes = [8, 128], strides = [1, 1]} : vector<8x384xf32> to vector<8x128xf32>
    %29 = vector.extract_strided_slice %25 {offsets = [0, 128], sizes = [8, 128], strides = [1, 1]} : vector<8x384xf32> to vector<8x128xf32>
    %30 = vector.extract_strided_slice %25 {offsets = [0, 256], sizes = [8, 128], strides = [1, 1]} : vector<8x384xf32> to vector<8x128xf32>
    %31 = arith.mulf %29, %11 : vector<8x128xf32>
    %32 = arith.mulf %28, %27 : vector<8x128xf32>
    %33 = arith.addf %31, %32 : vector<8x128xf32>
    %34 = math.tanh %33 : vector<8x128xf32>
    %35 = arith.mulf %30, %34 : vector<8x128xf32>
    %36 = arith.truncf %35 : vector<8x128xf32> to vector<8x128xbf16>
    %37 = arith.index_cast %13 : i32 to index
    %c0_18 = arith.constant 0 : index
    %38 = vector.load %arg13[%37, %c0_18] : memref<64x128xbf16, #tpu.memory_space<vmem>>, vector<8x128xbf16>
    tpu.vector_store %arg13[%37, %c0_18], %36 {strides = array<i32>} : memref<64x128xbf16, #tpu.memory_space<vmem>>, vector<8x128xbf16>,
    %c1_i32 = arith.constant 1 : i32
    %c8_i32_19 = arith.constant 8 : i32
    %39 = arith.muli %c1_i32, %c8_i32_19 : i32
    %40 = tpu.assume_multiple %39, 8 : i32
    %41 = arith.index_cast %40 : i32 to index
    %c0_20 = arith.constant 0 : index
    %42 = vector.load %arg12[%41, %c0_20] : memref<64x512xf32, #tpu.memory_space<vmem>>, vector<8x512xf32>
    %43 = arith.truncf %35 : vector<8x128xf32> to vector<8x128xbf16>
    %c0_21 = arith.constant 0 : index
    %c0_22 = arith.constant 0 : index
    %44 = vector.load %arg3[%c0_21, %c0_22] : memref<128x512xbf16, #tpu.memory_space<vmem>>, vector<128x512xbf16>
    %cst_23 = arith.constant dense<0.000000e+00> : vector<8x512xf32>
    %45 = tpu.matmul %43, %44, %cst_23 {dimension_numbers = #tpu.dot_dimension_numbers<[1], [0], [0], [1], [0, 0, 1, 1], [], []>} : vector<8x128xbf16>, vector<128x512xbf16>, vector<8x512xf32> -> vector<8x512xf32>
    %46 = arith.addf %42, %45 : vector<8x512xf32>
    %47 = vector.extract_strided_slice %46 {offsets = [0, 0], sizes = [8, 384], strides = [1, 1]} : vector<8x512xf32> to vector<8x384xf32>
    %48 = arith.negf %47 : vector<8x384xf32>
    %49 = math.exp %48 : vector<8x384xf32>
    %cst_24 = arith.constant 1.000000e+00 : f32
    %50 = vector.broadcast %cst_24 : f32 to vector<8x384xf32>
    %51 = arith.addf %50, %49 : vector<8x384xf32>
    %52 = arith.divf %50, %51 : vector<8x384xf32>
    %53 = vector.extract_strided_slice %46 {offsets = [0, 384], sizes = [8, 128], strides = [1, 1]} : vector<8x512xf32> to vector<8x128xf32>
    %54 = math.tanh %53 : vector<8x128xf32>
    %55 = vector.extract_strided_slice %52 {offsets = [0, 0], sizes = [8, 128], strides = [1, 1]} : vector<8x384xf32> to vector<8x128xf32>
    %56 = vector.extract_strided_slice %52 {offsets = [0, 128], sizes = [8, 128], strides = [1, 1]} : vector<8x384xf32> to vector<8x128xf32>
    %57 = vector.extract_strided_slice %52 {offsets = [0, 256], sizes = [8, 128], strides = [1, 1]} : vector<8x384xf32> to vector<8x128xf32>
    %58 = arith.mulf %56, %33 : vector<8x128xf32>
    %59 = arith.mulf %55, %54 : vector<8x128xf32>
    %60 = arith.addf %58, %59 : vector<8x128xf32>
    %61 = math.tanh %60 : vector<8x128xf32>
    %62 = arith.mulf %57, %61 : vector<8x128xf32>
    %63 = arith.truncf %62 : vector<8x128xf32> to vector<8x128xbf16>
    %64 = arith.index_cast %40 : i32 to index
    %c0_25 = arith.constant 0 : index
    %65 = vector.load %arg13[%64, %c0_25] : memref<64x128xbf16, #tpu.memory_space<vmem>>, vector<8x128xbf16>
    tpu.vector_store %arg13[%64, %c0_25], %63 {strides = array<i32>} : memref<64x128xbf16, #tpu.memory_space<vmem>>, vector<8x128xbf16>,
    %c2_i32 = arith.constant 2 : i32
    %c8_i32_26 = arith.constant 8 : i32
    %66 = arith.muli %c2_i32, %c8_i32_26 : i32
    %67 = tpu.assume_multiple %66, 8 : i32
    %68 = arith.index_cast %67 : i32 to index
    %c0_27 = arith.constant 0 : index
    %69 = vector.load %arg12[%68, %c0_27] : memref<64x512xf32, #tpu.memory_space<vmem>>, vector<8x512xf32>
    %70 = arith.truncf %62 : vector<8x128xf32> to vector<8x128xbf16>
    %c0_28 = arith.constant 0 : index
    %c0_29 = arith.constant 0 : index
    %71 = vector.load %arg3[%c0_28, %c0_29] : memref<128x512xbf16, #tpu.memory_space<vmem>>, vector<128x512xbf16>
    %cst_30 = arith.constant dense<0.000000e+00> : vector<8x512xf32>
    %72 = tpu.matmul %70, %71, %cst_30 {dimension_numbers = #tpu.dot_dimension_numbers<[1], [0], [0], [1], [0, 0, 1, 1], [], []>} : vector<8x128xbf16>, vector<128x512xbf16>, vector<8x512xf32> -> vector<8x512xf32>
    %73 = arith.addf %69, %72 : vector<8x512xf32>
    %74 = vector.extract_strided_slice %73 {offsets = [0, 0], sizes = [8, 384], strides = [1, 1]} : vector<8x512xf32> to vector<8x384xf32>
    %75 = arith.negf %74 : vector<8x384xf32>
    %76 = math.exp %75 : vector<8x384xf32>
    %cst_31 = arith.constant 1.000000e+00 : f32
    %77 = vector.broadcast %cst_31 : f32 to vector<8x384xf32>
    %78 = arith.addf %77, %76 : vector<8x384xf32>
    %79 = arith.divf %77, %78 : vector<8x384xf32>
    %80 = vector.extract_strided_slice %73 {offsets = [0, 384], sizes = [8, 128], strides = [1, 1]} : vector<8x512xf32> to vector<8x128xf32>
    %81 = math.tanh %80 : vector<8x128xf32>
    %82 = vector.extract_strided_slice %79 {offsets = [0, 0], sizes = [8, 128], strides = [1, 1]} : vector<8x384xf32> to vector<8x128xf32>
    %83 = vector.extract_strided_slice %79 {offsets = [0, 128], sizes = [8, 128], strides = [1, 1]} : vector<8x384xf32> to vector<8x128xf32>
    %84 = vector.extract_strided_slice %79 {offsets = [0, 256], sizes = [8, 128], strides = [1, 1]} : vector<8x384xf32> to vector<8x128xf32>
    %85 = arith.mulf %83, %60 : vector<8x128xf32>
    %86 = arith.mulf %82, %81 : vector<8x128xf32>
    %87 = arith.addf %85, %86 : vector<8x128xf32>
    %88 = math.tanh %87 : vector<8x128xf32>
    %89 = arith.mulf %84, %88 : vector<8x128xf32>
    %90 = arith.truncf %89 : vector<8x128xf32> to vector<8x128xbf16>
    %91 = arith.index_cast %67 : i32 to index
    %c0_32 = arith.constant 0 : index
    %92 = vector.load %arg13[%91, %c0_32] : memref<64x128xbf16, #tpu.memory_space<vmem>>, vector<8x128xbf16>
    tpu.vector_store %arg13[%91, %c0_32], %90 {strides = array<i32>} : memref<64x128xbf16, #tpu.memory_space<vmem>>, vector<8x128xbf16>,
    %c3_i32 = arith.constant 3 : i32
    %c8_i32_33 = arith.constant 8 : i32
    %93 = arith.muli %c3_i32, %c8_i32_33 : i32
    %94 = tpu.assume_multiple %93, 8 : i32
    %95 = arith.index_cast %94 : i32 to index
    %c0_34 = arith.constant 0 : index
    %96 = vector.load %arg12[%95, %c0_34] : memref<64x512xf32, #tpu.memory_space<vmem>>, vector<8x512xf32>
    %97 = arith.truncf %89 : vector<8x128xf32> to vector<8x128xbf16>
    %c0_35 = arith.constant 0 : index
    %c0_36 = arith.constant 0 : index
    %98 = vector.load %arg3[%c0_35, %c0_36] : memref<128x512xbf16, #tpu.memory_space<vmem>>, vector<128x512xbf16>
    %cst_37 = arith.constant dense<0.000000e+00> : vector<8x512xf32>
    %99 = tpu.matmul %97, %98, %cst_37 {dimension_numbers = #tpu.dot_dimension_numbers<[1], [0], [0], [1], [0, 0, 1, 1], [], []>} : vector<8x128xbf16>, vector<128x512xbf16>, vector<8x512xf32> -> vector<8x512xf32>
    %100 = arith.addf %96, %99 : vector<8x512xf32>
    %101 = vector.extract_strided_slice %100 {offsets = [0, 0], sizes = [8, 384], strides = [1, 1]} : vector<8x512xf32> to vector<8x384xf32>
    %102 = arith.negf %101 : vector<8x384xf32>
    %103 = math.exp %102 : vector<8x384xf32>
    %cst_38 = arith.constant 1.000000e+00 : f32
    %104 = vector.broadcast %cst_38 : f32 to vector<8x384xf32>
    %105 = arith.addf %104, %103 : vector<8x384xf32>
    %106 = arith.divf %104, %105 : vector<8x384xf32>
    %107 = vector.extract_strided_slice %100 {offsets = [0, 384], sizes = [8, 128], strides = [1, 1]} : vector<8x512xf32> to vector<8x128xf32>
    %108 = math.tanh %107 : vector<8x128xf32>
    %109 = vector.extract_strided_slice %106 {offsets = [0, 0], sizes = [8, 128], strides = [1, 1]} : vector<8x384xf32> to vector<8x128xf32>
    %110 = vector.extract_strided_slice %106 {offsets = [0, 128], sizes = [8, 128], strides = [1, 1]} : vector<8x384xf32> to vector<8x128xf32>
    %111 = vector.extract_strided_slice %106 {offsets = [0, 256], sizes = [8, 128], strides = [1, 1]} : vector<8x384xf32> to vector<8x128xf32>
    %112 = arith.mulf %110, %87 : vector<8x128xf32>
    %113 = arith.mulf %109, %108 : vector<8x128xf32>
    %114 = arith.addf %112, %113 : vector<8x128xf32>
    %115 = math.tanh %114 : vector<8x128xf32>
    %116 = arith.mulf %111, %115 : vector<8x128xf32>
    %117 = arith.truncf %116 : vector<8x128xf32> to vector<8x128xbf16>
    %118 = arith.index_cast %94 : i32 to index
    %c0_39 = arith.constant 0 : index
    %119 = vector.load %arg13[%118, %c0_39] : memref<64x128xbf16, #tpu.memory_space<vmem>>, vector<8x128xbf16>
    tpu.vector_store %arg13[%118, %c0_39], %117 {strides = array<i32>} : memref<64x128xbf16, #tpu.memory_space<vmem>>, vector<8x128xbf16>,
    %c4_i32 = arith.constant 4 : i32
    %c8_i32_40 = arith.constant 8 : i32
    %120 = arith.muli %c4_i32, %c8_i32_40 : i32
    %121 = tpu.assume_multiple %120, 8 : i32
    %122 = arith.index_cast %121 : i32 to index
    %c0_41 = arith.constant 0 : index
    %123 = vector.load %arg12[%122, %c0_41] : memref<64x512xf32, #tpu.memory_space<vmem>>, vector<8x512xf32>
    %124 = arith.truncf %116 : vector<8x128xf32> to vector<8x128xbf16>
    %c0_42 = arith.constant 0 : index
    %c0_43 = arith.constant 0 : index
    %125 = vector.load %arg3[%c0_42, %c0_43] : memref<128x512xbf16, #tpu.memory_space<vmem>>, vector<128x512xbf16>
    %cst_44 = arith.constant dense<0.000000e+00> : vector<8x512xf32>
    %126 = tpu.matmul %124, %125, %cst_44 {dimension_numbers = #tpu.dot_dimension_numbers<[1], [0], [0], [1], [0, 0, 1, 1], [], []>} : vector<8x128xbf16>, vector<128x512xbf16>, vector<8x512xf32> -> vector<8x512xf32>
    %127 = arith.addf %123, %126 : vector<8x512xf32>
    %128 = vector.extract_strided_slice %127 {offsets = [0, 0], sizes = [8, 384], strides = [1, 1]} : vector<8x512xf32> to vector<8x384xf32>
    %129 = arith.negf %128 : vector<8x384xf32>
    %130 = math.exp %129 : vector<8x384xf32>
    %cst_45 = arith.constant 1.000000e+00 : f32
    %131 = vector.broadcast %cst_45 : f32 to vector<8x384xf32>
    %132 = arith.addf %131, %130 : vector<8x384xf32>
    %133 = arith.divf %131, %132 : vector<8x384xf32>
    %134 = vector.extract_strided_slice %127 {offsets = [0, 384], sizes = [8, 128], strides = [1, 1]} : vector<8x512xf32> to vector<8x128xf32>
    %135 = math.tanh %134 : vector<8x128xf32>
    %136 = vector.extract_strided_slice %133 {offsets = [0, 0], sizes = [8, 128], strides = [1, 1]} : vector<8x384xf32> to vector<8x128xf32>
    %137 = vector.extract_strided_slice %133 {offsets = [0, 128], sizes = [8, 128], strides = [1, 1]} : vector<8x384xf32> to vector<8x128xf32>
    %138 = vector.extract_strided_slice %133 {offsets = [0, 256], sizes = [8, 128], strides = [1, 1]} : vector<8x384xf32> to vector<8x128xf32>
    %139 = arith.mulf %137, %114 : vector<8x128xf32>
    %140 = arith.mulf %136, %135 : vector<8x128xf32>
    %141 = arith.addf %139, %140 : vector<8x128xf32>
    %142 = math.tanh %141 : vector<8x128xf32>
    %143 = arith.mulf %138, %142 : vector<8x128xf32>
    %144 = arith.truncf %143 : vector<8x128xf32> to vector<8x128xbf16>
    %145 = arith.index_cast %121 : i32 to index
    %c0_46 = arith.constant 0 : index
    %146 = vector.load %arg13[%145, %c0_46] : memref<64x128xbf16, #tpu.memory_space<vmem>>, vector<8x128xbf16>
    tpu.vector_store %arg13[%145, %c0_46], %144 {strides = array<i32>} : memref<64x128xbf16, #tpu.memory_space<vmem>>, vector<8x128xbf16>,
    %c5_i32 = arith.constant 5 : i32
    %c8_i32_47 = arith.constant 8 : i32
    %147 = arith.muli %c5_i32, %c8_i32_47 : i32
    %148 = tpu.assume_multiple %147, 8 : i32
    %149 = arith.index_cast %148 : i32 to index
    %c0_48 = arith.constant 0 : index
    %150 = vector.load %arg12[%149, %c0_48] : memref<64x512xf32, #tpu.memory_space<vmem>>, vector<8x512xf32>
    %151 = arith.truncf %143 : vector<8x128xf32> to vector<8x128xbf16>
    %c0_49 = arith.constant 0 : index
    %c0_50 = arith.constant 0 : index
    %152 = vector.load %arg3[%c0_49, %c0_50] : memref<128x512xbf16, #tpu.memory_space<vmem>>, vector<128x512xbf16>
    %cst_51 = arith.constant dense<0.000000e+00> : vector<8x512xf32>
    %153 = tpu.matmul %151, %152, %cst_51 {dimension_numbers = #tpu.dot_dimension_numbers<[1], [0], [0], [1], [0, 0, 1, 1], [], []>} : vector<8x128xbf16>, vector<128x512xbf16>, vector<8x512xf32> -> vector<8x512xf32>
    %154 = arith.addf %150, %153 : vector<8x512xf32>
    %155 = vector.extract_strided_slice %154 {offsets = [0, 0], sizes = [8, 384], strides = [1, 1]} : vector<8x512xf32> to vector<8x384xf32>
    %156 = arith.negf %155 : vector<8x384xf32>
    %157 = math.exp %156 : vector<8x384xf32>
    %cst_52 = arith.constant 1.000000e+00 : f32
    %158 = vector.broadcast %cst_52 : f32 to vector<8x384xf32>
    %159 = arith.addf %158, %157 : vector<8x384xf32>
    %160 = arith.divf %158, %159 : vector<8x384xf32>
    %161 = vector.extract_strided_slice %154 {offsets = [0, 384], sizes = [8, 128], strides = [1, 1]} : vector<8x512xf32> to vector<8x128xf32>
    %162 = math.tanh %161 : vector<8x128xf32>
    %163 = vector.extract_strided_slice %160 {offsets = [0, 0], sizes = [8, 128], strides = [1, 1]} : vector<8x384xf32> to vector<8x128xf32>
    %164 = vector.extract_strided_slice %160 {offsets = [0, 128], sizes = [8, 128], strides = [1, 1]} : vector<8x384xf32> to vector<8x128xf32>
    %165 = vector.extract_strided_slice %160 {offsets = [0, 256], sizes = [8, 128], strides = [1, 1]} : vector<8x384xf32> to vector<8x128xf32>
    %166 = arith.mulf %164, %141 : vector<8x128xf32>
    %167 = arith.mulf %163, %162 : vector<8x128xf32>
    %168 = arith.addf %166, %167 : vector<8x128xf32>
    %169 = math.tanh %168 : vector<8x128xf32>
    %170 = arith.mulf %165, %169 : vector<8x128xf32>
    %171 = arith.truncf %170 : vector<8x128xf32> to vector<8x128xbf16>
    %172 = arith.index_cast %148 : i32 to index
    %c0_53 = arith.constant 0 : index
    %173 = vector.load %arg13[%172, %c0_53] : memref<64x128xbf16, #tpu.memory_space<vmem>>, vector<8x128xbf16>
    tpu.vector_store %arg13[%172, %c0_53], %171 {strides = array<i32>} : memref<64x128xbf16, #tpu.memory_space<vmem>>, vector<8x128xbf16>,
    %c6_i32 = arith.constant 6 : i32
    %c8_i32_54 = arith.constant 8 : i32
    %174 = arith.muli %c6_i32, %c8_i32_54 : i32
    %175 = tpu.assume_multiple %174, 8 : i32
    %176 = arith.index_cast %175 : i32 to index
    %c0_55 = arith.constant 0 : index
    %177 = vector.load %arg12[%176, %c0_55] : memref<64x512xf32, #tpu.memory_space<vmem>>, vector<8x512xf32>
    %178 = arith.truncf %170 : vector<8x128xf32> to vector<8x128xbf16>
    %c0_56 = arith.constant 0 : index
    %c0_57 = arith.constant 0 : index
    %179 = vector.load %arg3[%c0_56, %c0_57] : memref<128x512xbf16, #tpu.memory_space<vmem>>, vector<128x512xbf16>
    %cst_58 = arith.constant dense<0.000000e+00> : vector<8x512xf32>
    %180 = tpu.matmul %178, %179, %cst_58 {dimension_numbers = #tpu.dot_dimension_numbers<[1], [0], [0], [1], [0, 0, 1, 1], [], []>} : vector<8x128xbf16>, vector<128x512xbf16>, vector<8x512xf32> -> vector<8x512xf32>
    %181 = arith.addf %177, %180 : vector<8x512xf32>
    %182 = vector.extract_strided_slice %181 {offsets = [0, 0], sizes = [8, 384], strides = [1, 1]} : vector<8x512xf32> to vector<8x384xf32>
    %183 = arith.negf %182 : vector<8x384xf32>
    %184 = math.exp %183 : vector<8x384xf32>
    %cst_59 = arith.constant 1.000000e+00 : f32
    %185 = vector.broadcast %cst_59 : f32 to vector<8x384xf32>
    %186 = arith.addf %185, %184 : vector<8x384xf32>
    %187 = arith.divf %185, %186 : vector<8x384xf32>
    %188 = vector.extract_strided_slice %181 {offsets = [0, 384], sizes = [8, 128], strides = [1, 1]} : vector<8x512xf32> to vector<8x128xf32>
    %189 = math.tanh %188 : vector<8x128xf32>
    %190 = vector.extract_strided_slice %187 {offsets = [0, 0], sizes = [8, 128], strides = [1, 1]} : vector<8x384xf32> to vector<8x128xf32>
    %191 = vector.extract_strided_slice %187 {offsets = [0, 128], sizes = [8, 128], strides = [1, 1]} : vector<8x384xf32> to vector<8x128xf32>
    %192 = vector.extract_strided_slice %187 {offsets = [0, 256], sizes = [8, 128], strides = [1, 1]} : vector<8x384xf32> to vector<8x128xf32>
    %193 = arith.mulf %191, %168 : vector<8x128xf32>
    %194 = arith.mulf %190, %189 : vector<8x128xf32>
    %195 = arith.addf %193, %194 : vector<8x128xf32>
    %196 = math.tanh %195 : vector<8x128xf32>
    %197 = arith.mulf %192, %196 : vector<8x128xf32>
    %198 = arith.truncf %197 : vector<8x128xf32> to vector<8x128xbf16>
    %199 = arith.index_cast %175 : i32 to index
    %c0_60 = arith.constant 0 : index
    %200 = vector.load %arg13[%199, %c0_60] : memref<64x128xbf16, #tpu.memory_space<vmem>>, vector<8x128xbf16>
    tpu.vector_store %arg13[%199, %c0_60], %198 {strides = array<i32>} : memref<64x128xbf16, #tpu.memory_space<vmem>>, vector<8x128xbf16>,
    %c7_i32 = arith.constant 7 : i32
    %c8_i32_61 = arith.constant 8 : i32
    %201 = arith.muli %c7_i32, %c8_i32_61 : i32
    %202 = tpu.assume_multiple %201, 8 : i32
    %203 = arith.index_cast %202 : i32 to index
    %c0_62 = arith.constant 0 : index
    %204 = vector.load %arg12[%203, %c0_62] : memref<64x512xf32, #tpu.memory_space<vmem>>, vector<8x512xf32>
    %205 = arith.truncf %197 : vector<8x128xf32> to vector<8x128xbf16>
    %c0_63 = arith.constant 0 : index
    %c0_64 = arith.constant 0 : index
    %206 = vector.load %arg3[%c0_63, %c0_64] : memref<128x512xbf16, #tpu.memory_space<vmem>>, vector<128x512xbf16>
    %cst_65 = arith.constant dense<0.000000e+00> : vector<8x512xf32>
    %207 = tpu.matmul %205, %206, %cst_65 {dimension_numbers = #tpu.dot_dimension_numbers<[1], [0], [0], [1], [0, 0, 1, 1], [], []>} : vector<8x128xbf16>, vector<128x512xbf16>, vector<8x512xf32> -> vector<8x512xf32>
    %208 = arith.addf %204, %207 : vector<8x512xf32>
    %209 = vector.extract_strided_slice %208 {offsets = [0, 0], sizes = [8, 384], strides = [1, 1]} : vector<8x512xf32> to vector<8x384xf32>
    %210 = arith.negf %209 : vector<8x384xf32>
    %211 = math.exp %210 : vector<8x384xf32>
    %cst_66 = arith.constant 1.000000e+00 : f32
    %212 = vector.broadcast %cst_66 : f32 to vector<8x384xf32>
    %213 = arith.addf %212, %211 : vector<8x384xf32>
    %214 = arith.divf %212, %213 : vector<8x384xf32>
    %215 = vector.extract_strided_slice %208 {offsets = [0, 384], sizes = [8, 128], strides = [1, 1]} : vector<8x512xf32> to vector<8x128xf32>
    %216 = math.tanh %215 : vector<8x128xf32>
    %217 = vector.extract_strided_slice %214 {offsets = [0, 0], sizes = [8, 128], strides = [1, 1]} : vector<8x384xf32> to vector<8x128xf32>
    %218 = vector.extract_strided_slice %214 {offsets = [0, 128], sizes = [8, 128], strides = [1, 1]} : vector<8x384xf32> to vector<8x128xf32>
    %219 = vector.extract_strided_slice %214 {offsets = [0, 256], sizes = [8, 128], strides = [1, 1]} : vector<8x384xf32> to vector<8x128xf32>
    %220 = arith.mulf %218, %195 : vector<8x128xf32>
    %221 = arith.mulf %217, %216 : vector<8x128xf32>
    %222 = arith.addf %220, %221 : vector<8x128xf32>
    %223 = math.tanh %222 : vector<8x128xf32>
    %224 = arith.mulf %219, %223 : vector<8x128xf32>
    %225 = arith.truncf %224 : vector<8x128xf32> to vector<8x128xbf16>
    %226 = arith.index_cast %202 : i32 to index
    %c0_67 = arith.constant 0 : index
    %227 = vector.load %arg13[%226, %c0_67] : memref<64x128xbf16, #tpu.memory_space<vmem>>, vector<8x128xbf16>
    tpu.vector_store %arg13[%226, %c0_67], %225 {strides = array<i32>} : memref<64x128xbf16, #tpu.memory_space<vmem>>, vector<8x128xbf16>,
    %c8_i32_68 = arith.constant 8 : i32
    %c0_69 = arith.constant 0 : index
    %c0_70 = arith.constant 0 : index
    %228 = vector.load %arg10[%c0_69, %c0_70] : memref<8x128xf32, #tpu.memory_space<vmem>>, vector<8x128xf32>
    tpu.vector_store %arg10[%c0_69, %c0_70], %224 {strides = array<i32>} : memref<8x128xf32, #tpu.memory_space<vmem>>, vector<8x128xf32>,
    %c0_71 = arith.constant 0 : index
    %c0_72 = arith.constant 0 : index
    %229 = vector.load %arg11[%c0_71, %c0_72] : memref<8x128xf32, #tpu.memory_space<vmem>>, vector<8x128xf32>
    tpu.vector_store %arg11[%c0_71, %c0_72], %222 {strides = array<i32>} : memref<8x128xf32, #tpu.memory_space<vmem>>, vector<8x128xf32>,
    %c0_73 = arith.constant 0 : index
    %c0_74 = arith.constant 0 : index
    %230 = vector.load %arg13[%c0_73, %c0_74] : memref<64x128xbf16, #tpu.memory_space<vmem>>, vector<64x128xbf16>
    %c0_75 = arith.constant 0 : index
    %c0_76 = arith.constant 0 : index
    %231 = vector.load %arg5[%c0_75, %c0_76] : memref<128x128xbf16, #tpu.memory_space<vmem>>, vector<128x128xbf16>
    %cst_77 = arith.constant dense<0.000000e+00> : vector<64x128xf32>
    %232 = tpu.matmul %230, %231, %cst_77 {dimension_numbers = #tpu.dot_dimension_numbers<[1], [0], [0], [1], [0, 0, 1, 1], [], []>} : vector<64x128xbf16>, vector<128x128xbf16>, vector<64x128xf32> -> vector<64x128xf32>
    %c0_78 = arith.constant 0 : index
    %c0_79 = arith.constant 0 : index
    %233 = vector.load %arg6[%c0_78, %c0_79] : memref<1x128xf32, #tpu.memory_space<vmem>>, vector<1x128xf32>
    %234 = vector.broadcast %233 : vector<1x128xf32> to vector<64x128xf32>
    %235 = arith.addf %232, %234 : vector<64x128xf32>
    %c0_80 = arith.constant 0 : index
    %c0_81 = arith.constant 0 : index
    %236 = vector.load %arg9[%c0_80, %c0_81] : memref<64x128xf32, #tpu.memory_space<vmem>>, vector<64x128xf32>
    tpu.vector_store %arg9[%c0_80, %c0_81], %235 {strides = array<i32>} : memref<64x128xf32, #tpu.memory_space<vmem>>, vector<64x128xf32>,
    return
  }
  func.func @transform_0(%arg0: i32) -> (i32, i32) {
    %c0_i32 = arith.constant 0 : i32
    %c0_i32_0 = arith.constant 0 : i32
    return %arg0, %c0_i32 : i32, i32
  }
  func.func @transform_1(%arg0: i32) -> (i32, i32) {
    %c0_i32 = arith.constant 0 : i32
    %c0_i32_0 = arith.constant 0 : i32
    %c0_i32_1 = arith.constant 0 : i32
    return %c0_i32, %c0_i32_0 : i32, i32
  }
  func.func @transform_2(%arg0: i32) -> (i32, i32) {
    %c0_i32 = arith.constant 0 : i32
    %c0_i32_0 = arith.constant 0 : i32
    %c0_i32_1 = arith.constant 0 : i32
    return %c0_i32, %c0_i32_0 : i32, i32
  }
  func.func @transform_3(%arg0: i32) -> (i32, i32) {
    %c0_i32 = arith.constant 0 : i32
    %c0_i32_0 = arith.constant 0 : i32
    %c0_i32_1 = arith.constant 0 : i32
    return %c0_i32, %c0_i32_0 : i32, i32
  }
  func.func @transform_4(%arg0: i32) -> (i32, i32) {
    %c0_i32 = arith.constant 0 : i32
    %c0_i32_0 = arith.constant 0 : i32
    %c0_i32_1 = arith.constant 0 : i32
    return %c0_i32, %c0_i32_0 : i32, i32
  }
  func.func @transform_5(%arg0: i32) -> (i32, i32) {
    %c0_i32 = arith.constant 0 : i32
    %c0_i32_0 = arith.constant 0 : i32
    %c0_i32_1 = arith.constant 0 : i32
    return %c0_i32, %c0_i32_0 : i32, i32
  }
  func.func @transform_6(%arg0: i32) -> (i32, i32) {
    %c0_i32 = arith.constant 0 : i32
    %c0_i32_0 = arith.constant 0 : i32
    %c0_i32_1 = arith.constant 0 : i32
    return %c0_i32, %c0_i32_0 : i32, i32
  }
  func.func @transform_7(%arg0: i32) -> (i32, i32) {
    %c0_i32 = arith.constant 0 : i32
    %c0_i32_0 = arith.constant 0 : i32
    %c0_i32_1 = arith.constant 0 : i32
    return %c0_i32, %c0_i32_0 : i32, i32
  }
  func.func @transform_8(%arg0: i32) -> (i32, i32) {
    %c0_i32 = arith.constant 0 : i32
    %c0_i32_0 = arith.constant 0 : i32
    return %arg0, %c0_i32 : i32, i32
  }
  func.func @transform_9(%arg0: i32) -> (i32, i32) {
    %c0_i32 = arith.constant 0 : i32
    %c0_i32_0 = arith.constant 0 : i32
    %c0_i32_1 = arith.constant 0 : i32
    return %c0_i32, %c0_i32_0 : i32, i32
  }
  func.func @transform_10(%arg0: i32) -> (i32, i32) {
    %c0_i32 = arith.constant 0 : i32
    %c0_i32_0 = arith.constant 0 : i32
    %c0_i32_1 = arith.constant 0 : i32
    return %c0_i32, %c0_i32_0 : i32, i32
  }
}

</mosaic_0001>

<bundles_post_ra>
// kernel: tpu_custom_call.1
= control target key start
LH: loop header
LB: loop body
LE: loop exit
PB: predicated region body
PF: predicated region fallthrough
CT: control target
= control target key end

     0   :  { %16 = vsyncpa [#allocation5], 0  ;;  %s5184_s0 = inlined_call_operand.vmem [shape: bf16[64,16], index: 0, kind: input, shape index: {}]   ;;  %s5185_s1 = inlined_call_operand.vmem [shape: bf16[16,512], index: 1, kind: input, shape index: {}]   ;;  %s5186_s2 = inlined_call_operand.hbm [shape: bf16[128,512], index: 2, kind: input, shape index: {}]   ;;  %s5187_s3 = inlined_call_operand.hbm [shape: f32[1,512], index: 3, kind: input, shape index: {}]   ;;  %s5188_s4 = inlined_call_operand.hbm [shape: bf16[128,128], index: 4, kind: input, shape index: {}]   ;;  %s5189_s5 = inlined_call_operand.vmem [shape: f32[1,128], index: 5, kind: input, shape index: {}]   ;;  %s5190_s6 = inlined_call_operand.vmem [shape: f32[8,128], index: 6, kind: input, shape index: {}]   ;;  %s5191_s7 = inlined_call_operand.hbm [shape: f32[8,128], index: 7, kind: input, shape index: {}]   ;;  %s5192_s8 = inlined_call_operand.hbm [shape: f32[64,128], index: 8, kind: output, shape index: {0}]   ;;  %s5193_s9 = inlined_call_operand.hbm [shape: f32[8,128], index: 9, kind: output, shape index: {1}]   ;;  %s5194_s10 = inlined_call_operand.hbm [shape: f32[8,128], index: 10, kind: output, shape index: {2}]  }
   0x1   :  { %17 = vsyncpa [#allocation8], 0 }
   0x2   :  { %18 = vsyncpa [#allocation11], 0 }
   0x3   :  { %19 = vsyncpa [#allocation6], 0  ;;  %s43_s15 = sshll.u32 %s5187_s3, 4  ;;  %s44_s15 = int_to_ptr.hbm [resolvable:$true] %s43_s15 }
   0x4   :  { %20 = vsyncpa [#allocation14], 0  ;;  %s4835_s16 = smov [#allocation7]   ;;  %s29_s20 = sshll.u32 %s5186_s2, 4  ;;  %s30_s20 = int_to_ptr.hbm [resolvable:$true] %s29_s20 }
   0x5   :  { %s45_s17 = sshll.u32 %s4835_s16, 4  ;;  %s4836_s21 = smov [#allocation4]   ;;  %s46_s17 = int_to_ptr.vmem [resolvable:$true] %s45_s17 }
   0x6   :  { %48 = dma.hbm_to_vmem [thread:$0]  %s44_s15, 64, %s46_s17, [#allocation8]  }
   0x7   :  { %s31_s22 = sshll.u32 %s4836_s21, 4  ;;  %s4837_s23 = smov 256   ;;  %s32_s22 = int_to_ptr.vmem [resolvable:$true] %s31_s22 }
   0x8   :  { %s4838_s24 = smov 16   ;;  %s53_s3 = sshll.u32 %s5188_s4, 4  ;;  %s54_s3 = int_to_ptr.hbm [resolvable:$true] %s53_s3 }
   0x9   :  { %37 = dma.hbm_to_vmem [thread:$0]  %s30_s20, 4096, %s32_s22, [#allocation5], %s4837_s23, %s4837_s23, %s4838_s24  }
   0xa   :  { %s4839_s27 = smov [#allocation9]   ;;  %s71_s2 = sshll.u32 %s5191_s7, 4  ;;  %s72_s2 = int_to_ptr.hbm [resolvable:$true] %s71_s2 }
   0xb   :  { %s55_s28 = sshll.u32 %s4839_s27, 4  ;;  %s4840_s11 = smov 64   ;;  %s56_s28 = int_to_ptr.vmem [resolvable:$true] %s55_s28 }
   0xc   :  { %s4841_s12 = smov 4   ;;  %s4842_s13 = smov [#allocation10]  }
   0xd   :  { %61 = dma.hbm_to_vmem [thread:$0]  %s54_s3, 1024, %s56_s28, [#allocation8], %s4840_s11, %s4840_s11, %s4841_s12  }
   0xe   :  { %s73_s14 = sshll.u32 %s4842_s13, 4  ;;  %s74_s14 = int_to_ptr.vmem [resolvable:$true] %s73_s14 }
   0xf   :  { %76 = dma.hbm_to_vmem [thread:$0]  %s72_s2, 128, %s74_s14, [#allocation11]  }
  0x10   :  { %4825 = dma.done.wait [#allocation5], 4096  }
  0x11   :  { %4826 = vsyncadd [#allocation5], 4294963200 }
  0x12   :  { %4827 = dma.done.wait [#allocation8], 1088  }
  0x13   :  { %4828 = vsyncadd [#allocation8], 4294966208 }
  0x14   :  { %4829 = dma.done.wait [#allocation11], 128  }
  0x15   :  { %4830 = vsyncadd [#allocation11], 4294967168  ;;  %v3111_v0 = vld [vmem:[%s5185_s1] sm:$0xf]  ;;  %v4243_v1 = vld [vmem:[%s5185_s1 + $0xc] sm:$0xf0] }
  0x16   :  { %v3119_v2 = vld [vmem:[%s5185_s1 + $0x8] sm:$0xf]  ;;  %v3112_v3 = vor.u32 %v4243_v1, %v3111_v0  ;;  %v4244_v4 = vld [vmem:[%s5185_s1 + $0x14] sm:$0xf0]  ;;  %v4930_v5 = vld [vmem:[%s5184_s0 + $0x10] sm:$0xff]  ;;  %vm164_vm0 = vcmask 130048  }
  0x17   :  { %v4935_v6 = vld [vmem:[%s5184_s0 + $0x18] sm:$0xff]  ;;  %v3120_v7 = vor.u32 %v4244_v4, %v3119_v2  ;;  %v4241_v8 = vld [vmem:[%s5185_s1 + $0x4] sm:$0xf]  ;;  %v3113_v9 = vld [vmem:[%s5185_s1 + $0x10] sm:$0xf0]  ;;  %s3054_s17 = sshll.u32 %s5193_s9, 4  ;;  %s3055_s17 = int_to_ptr.hbm [resolvable:$true] %s3054_s17 }
  0x18   :  { %v4946_v10 = vld [vmem:[%s5184_s0] sm:$0xff]  ;;  %4513 = vmatpush.bf16.msra.mxu1 %v3112_v3  ;;  %4514 = vmatpush.bf16.msra.mxu3 %v3112_v3  ;;  %v3116_v11 = vor.u32 %v4241_v8, %v3113_v9  ;;  %v4275_v13 = vld [vmem:[#allocation4 + $0xec] sm:$0xf0]  ;;  %v4242_v14 = vld [vmem:[%s5185_s1 + $0xc] sm:$0xf]  ;;  %s4844_s18 = smov [#allocation15]  }
  0x19   :  { %v3255_v12 = vld [vmem:[#allocation4 + $0xe0] sm:$0xf]  ;;  %242 = vmatpush.bf16.msra.mxu2 %v3120_v7  ;;  %v3121_v16 = vld [vmem:[%s5185_s1 + $0x18] sm:$0xf0]  ;;  %184 = vmatpush.bf16.msra.mxu0 %v3112_v3  ;;  %v4271_v19 = vld [vmem:[#allocation4 + $0xcc] sm:$0xf0] }
  0x1a   :  { %v3256_v15 = vor.u32 %v4275_v13, %v3255_v12  ;;  %v3239_v17 = vld [vmem:[#allocation4 + $0xc0] sm:$0xf]  ;;  %v3124_v18 = vor.u32 %v4242_v14, %v3121_v16  ;;  %v4273_v20 = vld [vmem:[#allocation4 + $0xe4] sm:$0xf]  ;;  %v3257_v21 = vld [vmem:[#allocation4 + $0xf0] sm:$0xf0] }
  0x1b   :  { %3127 = vmatmul.msk.bf16.vlgmr.msra.gmra.mxu1 %vm164_vm0, %v4930_v5  ;;  %3128 = vmatmul.msk.bf16.vlgmr.msra.gmra.mxu3 %vm164_vm0, %v4935_v6  ;;  %v3260_v22 = vor.u32 %v4273_v20, %v3257_v21  ;;  %v4269_v23 = vld [vmem:[#allocation4 + $0xc4] sm:$0xf]  ;;  %v3241_v24 = vld [vmem:[#allocation4 + $0xd0] sm:$0xf0]  ;;  %v3240_v25 = vor.u32 %v4271_v19, %v3239_v17  ;;  %v3223_v26 = vld [vmem:[#allocation4 + $0xa0] sm:$0xf] }
  0x1c   :  { %213 = vmatpush.bf16.msrb.mxu1 %v3116_v11  ;;  %3133 = vmatmul.msk.bf16.vlgmr.msra.gmra.mxu2 %vm164_vm0, %v4946_v10  ;;  %v3244_v27 = vor.u32 %v4269_v23, %v3241_v24  ;;  %v4274_v28 = vld [vmem:[#allocation4 + $0xec] sm:$0xf]  ;;  %v3265_v29 = vld [vmem:[#allocation4 + $0xf8] sm:$0xf0]  ;;  %v4267_v30 = vld [vmem:[#allocation4 + $0xac] sm:$0xf0] }
  0x1d   :  { %271 = vmatpush.bf16.msrb.mxu3 %v3124_v18  ;;  %527 = vmatpush.bf16.msrb.mxu2 %v3256_v15  ;;  %v3268_v31 = vor.u32 %v4274_v28, %v3265_v29  ;;  %v4265_v32 = vld [vmem:[#allocation4 + $0xa4] sm:$0xf]  ;;  %v3225_v33 = vld [vmem:[#allocation4 + $0xb0] sm:$0xf0]  ;;  %v4270_v34 = vld [vmem:[#allocation4 + $0xcc] sm:$0xf]  ;;  %v3224_v38 = vor.u32 %v4267_v30, %v3223_v26 }
  0x1e   :  { %3125 = vmatmul.msk.bf16.vlgmr.msra.gmra.mxu0 %vm164_vm0, %v4946_v10  ;;  %v3249_v35 = vld [vmem:[#allocation4 + $0xd8] sm:$0xf0]  ;;  %v3207_v36 = vld [vmem:[#allocation4 + $0x80] sm:$0xf]  ;;  %v4263_v39 = vld [vmem:[#allocation4 + $0x8c] sm:$0xf0]  ;;  %v3228_v40 = vor.u32 %v4265_v32, %v3225_v33 }
  0x1f   :  { %v3252_v37 = vor.u32 %v4270_v34, %v3249_v35  ;;  %v4261_v41 = vld [vmem:[#allocation4 + $0x84] sm:$0xf]  ;;  %v4266_v42 = vld [vmem:[#allocation4 + $0xac] sm:$0xf]  ;;  %v3209_v43 = vld [vmem:[#allocation4 + $0x90] sm:$0xf0]  ;;  %v3208_v46 = vor.u32 %v4263_v39, %v3207_v36 }
  0x20   :  { %540 = vmatpush.bf16.msra.mxu1 %v3260_v22  ;;  %v3233_v44 = vld [vmem:[#allocation4 + $0xb8] sm:$0xf0]  ;;  %v3212_v47 = vor.u32 %v4261_v41, %v3209_v43  ;;  %v3191_v48 = vld [vmem:[#allocation4 + $0x60] sm:$0xf]  ;;  %v4259_v49 = vld [vmem:[#allocation4 + $0x6c] sm:$0xf0] }
  0x21   :  { %566 = vmatpush.bf16.msra.mxu3 %v3268_v31  ;;  %528 = vmatpush.bf16.msrb.mxu2 %v3240_v25  ;;  %v3236_v45 = vor.u32 %v4266_v42, %v3233_v44  ;;  %v4238_v50 = vld [vmem:[%s5184_s0 + $0x8] sm:$0xff]  ;;  %v3192_v51 = vor.u32 %v4259_v49, %v3191_v48  ;;  %v3175_v52 = vld [vmem:[#allocation4 + $0x40] sm:$0xf]  ;;  %v4255_v53 = vld [vmem:[#allocation4 + $0x4c] sm:$0xf0]  ;;  %s3063_s19 = sshll.u32 %s4844_s18, 4  ;;  %s3064_s19 = int_to_ptr.vmem [resolvable:$true] %s3063_s19 }
  0x22   :  { %v4257_v54 = vld [vmem:[#allocation4 + $0x64] sm:$0xf]  ;;  %v3193_v55 = vld [vmem:[#allocation4 + $0x70] sm:$0xf0]  ;;  %v3176_v56 = vor.u32 %v4255_v53, %v3175_v52  ;;  %v3159_v57 = vld [vmem:[#allocation4 + $0x20] sm:$0xf] }
  0x23   :  { %v3196_v58 = vor.u32 %v4257_v54, %v3193_v55  ;;  %v4262_v59 = vld [vmem:[#allocation4 + $0x8c] sm:$0xf]  ;;  %v3217_v60 = vld [vmem:[#allocation4 + $0x98] sm:$0xf0]  ;;  %v4251_v61 = vld [vmem:[#allocation4 + $0x2c] sm:$0xf0] }
  0x24   :  { %541 = vmatpush.bf16.msra.mxu1 %v3244_v27  ;;  %v3220_v62 = vor.u32 %v4262_v59, %v3217_v60  ;;  %v4253_v63 = vld [vmem:[#allocation4 + $0x44] sm:$0xf]  ;;  %v3177_v0 = vld [vmem:[#allocation4 + $0x50] sm:$0xf0]  ;;  %v4258_v2 = vld [vmem:[#allocation4 + $0x6c] sm:$0xf]  ;;  %v3160_v4 = vor.u32 %v4251_v61, %v3159_v57 }
  0x25   :  { %567 = vmatpush.bf16.msra.mxu3 %v3252_v37  ;;  %529 = vmatpush.bf16.msrb.mxu2 %v3224_v38  ;;  %v3180_v1 = vor.u32 %v4253_v63, %v3177_v0  ;;  %v3201_v3 = vld [vmem:[#allocation4 + $0x78] sm:$0xf0]  ;;  %v3143_v8 = vld [vmem:[#allocation4] sm:$0xf]  ;;  %v4247_v9 = vld [vmem:[#allocation4 + $0xc] sm:$0xf0] }
  0x26   :  { %v3204_v7 = vor.u32 %v4258_v2, %v3201_v3  ;;  %v4276_v11 = vld [vmem:[#allocation4 + $0xf4] sm:$0xf0]  ;;  %v3144_v12 = vor.u32 %v4247_v9, %v3143_v8  ;;  %v3247_v14 = vld [vmem:[#allocation4 + $0xc8] sm:$0xf]  ;;  %v4249_v19 = vld [vmem:[#allocation4 + $0x24] sm:$0xf] }
  0x27   :  { %v4272_v15 = vld [vmem:[#allocation4 + $0xd4] sm:$0xf0]  ;;  %v3231_v17 = vld [vmem:[#allocation4 + $0xa8] sm:$0xf]  ;;  %v3161_v20 = vld [vmem:[#allocation4 + $0x30] sm:$0xf0] }
  0x28   :  { %542 = vmatpush.bf16.msra.mxu1 %v3228_v40  ;;  %v3248_v16 = vor.u32 %v4272_v15, %v3247_v14  ;;  %v4268_v18 = vld [vmem:[#allocation4 + $0xb4] sm:$0xf0]  ;;  %v3164_v21 = vor.u32 %v4249_v19, %v3161_v20  ;;  %v4254_v22 = vld [vmem:[#allocation4 + $0x4c] sm:$0xf]  ;;  %v3185_v23 = vld [vmem:[#allocation4 + $0x58] sm:$0xf0] }
  0x29   :  { %568 = vmatpush.bf16.msra.mxu3 %v3236_v45  ;;  %530 = vmatpush.bf16.msrb.mxu2 %v3208_v46  ;;  %v3232_v24 = vor.u32 %v4268_v18, %v3231_v17  ;;  %v3215_v25 = vld [vmem:[#allocation4 + $0x88] sm:$0xf]  ;;  %v3188_v26 = vor.u32 %v4254_v22, %v3185_v23  ;;  %v4245_v27 = vld [vmem:[#allocation4 + $0x4] sm:$0xf]  ;;  %v3145_v28 = vld [vmem:[#allocation4 + $0x10] sm:$0xf0] }
  0x2a   :  { %v4264_v29 = vld [vmem:[#allocation4 + $0x94] sm:$0xf0]  ;;  %v3148_v30 = vor.u32 %v4245_v27, %v3145_v28  ;;  %v4250_v31 = vld [vmem:[#allocation4 + $0x2c] sm:$0xf]  ;;  %v3169_v32 = vld [vmem:[#allocation4 + $0x38] sm:$0xf0] }
  0x2b   :  { %3129 = vmatmul.msk.bf16.vlgmr.msrb.gmra.mxu1 %vm164_vm0, %v4946_v10  ;;  %3137 = vmatmul.msk.bf16.vlgmr.msrb.gmra.mxu3 %vm164_vm0, %v4946_v10  ;;  %v3263_v10 = vld [vmem:[#allocation4 + $0xe8] sm:$0xf]  ;;  %v3172_v33 = vor.u32 %v4250_v31, %v3169_v32  ;;  %v4246_v34 = vld [vmem:[#allocation4 + $0xc] sm:$0xf]  ;;  %v3153_v35 = vld [vmem:[#allocation4 + $0x18] sm:$0xf0]  ;;  %v3216_v36 = vor.u32 %v4264_v29, %v3215_v25 }
  0x2c   :  { %543 = vmatpush.bf16.msra.mxu1 %v3212_v47  ;;  %3134 = vmatmul.msk.bf16.gmra.mxu2 %vm164_vm0, %v4238_v50  ;;  %v3264_v13 = vor.u32 %v4276_v11, %v3263_v10  ;;  %v3199_v37 = vld [vmem:[#allocation4 + $0x68] sm:$0xf]  ;;  %v4260_v38 = vld [vmem:[#allocation4 + $0x74] sm:$0xf0]  ;;  %v3156_v39 = vor.u32 %v4246_v34, %v3153_v35  ;;  %v3386_v29 = vld [vmem:[#allocation4 + $0xe0] sm:$0xf] }
  0x2d   :  { %531 = vmatpush.bf16.msrb.mxu2 %v3192_v51  ;;  %569 = vmatpush.bf16.msra.mxu3 %v3220_v62  ;;  %v3200_v40 = vor.u32 %v4260_v38, %v3199_v37  ;;  %v3183_v41 = vld [vmem:[#allocation4 + $0x48] sm:$0xf]  ;;  %v4256_v42 = vld [vmem:[#allocation4 + $0x54] sm:$0xf0]  ;;  %v4305_v31 = vld [vmem:[#allocation4 + $0xe4] sm:$0xf] }
  0x2e   :  { %3126 = vmatmul.msk.bf16.gmra.mxu0 %vm164_vm0, %v4238_v50  ;;  %v3184_v43 = vor.u32 %v4256_v42, %v3183_v41  ;;  %v3167_v44 = vld [vmem:[#allocation4 + $0x28] sm:$0xf]  ;;  %v4252_v45 = vld [vmem:[#allocation4 + $0x34] sm:$0xf0]  ;;  %v3388_v35 = vld [vmem:[#allocation4 + $0xf0] sm:$0xf0] }
  0x2f   :  { %v3168_v46 = vor.u32 %v4252_v45, %v3167_v44  ;;  %v3151_v47 = vld [vmem:[#allocation4 + $0x8] sm:$0xf]  ;;  %v4248_v48 = vld [vmem:[#allocation4 + $0x14] sm:$0xf0]  ;;  %v4306_v42 = vld [vmem:[#allocation4 + $0xec] sm:$0xf] }
  0x30   :  { %544 = vmatpush.bf16.msra.mxu1 %v3196_v58  ;;  %v3152_v49 = vor.u32 %v4248_v48, %v3151_v47  ;;  %v114_v58 = vld [vmem:[#allocation7] sm:$0xf]  ;;  %v4308_v37 = vld [vmem:[#allocation4 + $0xf4] sm:$0xf0]  ;;  %s3065_s22 = sshll.u32 %s5194_s10, 4  ;;  %s4845_s23 = smov [#allocation12]   ;;  %s3066_s22 = int_to_ptr.hbm [resolvable:$true] %s3065_s22 }
  0x31   :  { %532 = vmatpush.bf16.msrb.mxu2 %v3176_v56  ;;  %570 = vmatpush.bf16.msra.mxu3 %v3204_v7  ;;  %v5006_v60 = vperm.slane %v114_v58, 1  ;;  %v5058_v44 = vperm.slane %v114_v58, 0  ;;  %v3370_v48 = vld [vmem:[#allocation4 + $0xc0] sm:$0xf]  ;;  %s3038_s24 = sshll.u32 %s4845_s23, 4  ;;  %s3040_s26 = sshll.u32 %s5192_s8, 4  ;;  %s3039_s24 = int_to_ptr.vmem [resolvable:$true] %s3038_s24  ;;  %s3041_s26 = int_to_ptr.hbm [resolvable:$true] %s3040_s26 }
  0x32   :  { %s4846_s10 = smov 128   ;;  %s4847_s3 = smov 8  }
  0x34   :  { %545 = vmatpush.bf16.msra.mxu1 %v3180_v1  ;;  %v5014_v1 = vperm.slane %v114_v58, 3 }
  0x35   :  { %533 = vmatpush.bf16.msrb.mxu2 %v3160_v4  ;;  %571 = vmatpush.bf16.msra.mxu3 %v3188_v26 }
  0x38   :  { %546 = vmatpush.bf16.msra.mxu1 %v3164_v21 }
  0x39   :  { %534 = vmatpush.bf16.msrb.mxu2 %v3144_v12  ;;  %572 = vmatpush.bf16.msra.mxu3 %v3172_v33 }
  0x3b   :  { %3130 = vmatmul.msk.bf16.gmra.mxu1 %vm164_vm0, %v4238_v50  ;;  %3138 = vmatmul.msk.bf16.gmra.mxu3 %vm164_vm0, %v4238_v50  ;;  %v98_v50 = vld [vmem:[%s5190_s6] sm:$0xff] }
  0x3c   :  { %3135 = vmatmul.msk.bf16.gmra.mxu2 %vm164_vm0, %v4930_v5  ;;  %547 = vmatpush.bf16.msra.mxu1 %v3148_v30  ;;  %v334_v51 = vpack.c.bf16 %v98_v50, %v98_v50  ;;  %v4307_v30 = vld [vmem:[#allocation4 + $0xec] sm:$0xf0]  ;;  %v4301_v50 = vld [vmem:[#allocation4 + $0xc4] sm:$0xf] }
  0x3d   :  { %553 = vmatpush.bf16.msra.mxu2 %v3264_v13  ;;  %573 = vmatpush.bf16.msra.mxu3 %v3156_v39  ;;  %v3387_v34 = vor.u32 %v4307_v30, %v3386_v29  ;;  %v3356_v29 = vld [vmem:[#allocation4 + $0xb0] sm:$0xf0]  ;;  %v3362_v30 = vld [vmem:[#allocation4 + $0xa8] sm:$0xf] }
  0x3f   :  { %847 = vmatpush.bf16.msrb.mxu0 %v3387_v34 }
  0x41   :  { %554 = vmatpush.bf16.msra.mxu2 %v3248_v16 }
  0x45   :  { %555 = vmatpush.bf16.msra.mxu2 %v3232_v24 }
  0x49   :  { %556 = vmatpush.bf16.msra.mxu2 %v3216_v36  ;;  %v3394_v36 = vld [vmem:[#allocation4 + $0xe8] sm:$0xf] }
  0x4a   :  { %v3395_v41 = vor.u32 %v4308_v37, %v3394_v36  ;;  %v4298_v37 = vld [vmem:[#allocation4 + $0xac] sm:$0xf] }
  0x4b   :  { %3131 = vmatmul.msk.bf16.gmra.mxu1 %vm164_vm0, %v4930_v5  ;;  %3139 = vmatmul.msk.bf16.gmra.mxu3 %vm164_vm0, %v4930_v5 }
  0x4c   :  { %3136 = vmatmul.msk.bf16.gmra.mxu2 %vm164_vm0, %v4935_v6 }
  0x4d   :  { %557 = vmatpush.bf16.msra.mxu2 %v3200_v40  ;;  %v3391_v40 = vor.u32 %v4305_v31, %v3388_v35  ;;  %v4300_v31 = vld [vmem:[#allocation4 + $0xb4] sm:$0xf0] }
  0x4e   :  { %v3363_v36 = vor.u32 %v4300_v31, %v3362_v30  ;;  %v4292_v31 = vld [vmem:[#allocation4 + $0x74] sm:$0xf0] }
  0x4f   :  { %860 = vmatpush.bf16.msrb.mxu1 %v3391_v40 }
  0x51   :  { %558 = vmatpush.bf16.msra.mxu2 %v3184_v43  ;;  %v3396_v43 = vld [vmem:[#allocation4 + $0xf8] sm:$0xf0] }
  0x52   :  { %v3399_v47 = vor.u32 %v4306_v42, %v3396_v43  ;;  %v3338_v43 = vld [vmem:[#allocation4 + $0x80] sm:$0xf] }
  0x54   :  { %886 = vmatpush.bf16.msrb.mxu3 %v3399_v47 }
  0x55   :  { %559 = vmatpush.bf16.msra.mxu2 %v3168_v46 }
  0x59   :  { %560 = vmatpush.bf16.msra.mxu2 %v3152_v49  ;;  %v4303_v49 = vld [vmem:[#allocation4 + $0xcc] sm:$0xf0] }
  0x5b   :  { %3132 = vmatmul.msk.bf16.gmra.mxu1 %vm164_vm0, %v4935_v6  ;;  %3140 = vmatmul.msk.bf16.gmra.mxu3 %vm164_vm0, %v4935_v6  ;;  %v5002_v6 = vperm.slane %v114_v58, 2 }
  0x5c   :  { %535 = vmatmul.bf16.vlgmr.msrb.gmra.mxu2 %v334_v51 }
  0x5d   :  { %873 = vmatpush.bf16.msrb.mxu2 %v3395_v41 }
  0x6b   :  { %548 = vmatmul.bf16.vlgmr.msra.gmra.mxu1 %v334_v51  ;;  %574 = vmatmul.bf16.vlgmr.msra.gmra.mxu3 %v334_v51 }
  0x6c   :  { %561 = vmatmul.bf16.vlgmr.msra.gmra.mxu2 %v334_v51  ;;  %v3371_v51 = vor.u32 %v4303_v49, %v3370_v48  ;;  %v4293_v48 = vld [vmem:[#allocation4 + $0x84] sm:$0xf]  ;;  %v3340_v49 = vld [vmem:[#allocation4 + $0x90] sm:$0xf0] }
  0x6e   :  { %848 = vmatpush.bf16.msrb.mxu0 %v3371_v51  ;;  %v3343_v51 = vor.u32 %v4293_v48, %v3340_v49  ;;  %v3314_v49 = vld [vmem:[#allocation4 + $0x48] sm:$0xf] }
  0x98   :  { %v4988_v5 = vpop.f32.mrf.mxu1 }
  0x9b   :  { %v186_v46 = vpop.f32.mrf.mxu0 }
  0x9e   :  { %v4990_v52 = vpop.f32.mrf.mxu3 }
  0x9f   :  { %v4992_v53 = vpop.f32.mrf.mxu2 }
  0xa0   :  { %v4994_v54 = vpop.f32.mrf.mxu1 }
  0xa6   :  { %v4996_v55 = vpop.f32.mrf.mxu3 }
  0xa7   :  { %v4998_v56 = vpop.f32.mrf.mxu2 }
  0xa8   :  { %v5000_v57 = vpop.f32.mrf.mxu1 }
  0xae   :  { %v5004_v59 = vpop.f32.mrf.mxu3 }
  0xaf   :  { %v249_v61 = vpop.f32.mrf.mxu2 }
  0xb0   :  { %v5009_v62 = vadd.f32 %v249_v61, %v5002_v6  ;;  %v217_v63 = vpop.f32.mrf.mxu1  ;;  %v3372_v61 = vld [vmem:[#allocation4 + $0xd0] sm:$0xf0] }
  0xb1   :  { %v5012_v0 = vadd.f32 %v217_v63, %v5006_v60  ;;  %v3378_v63 = vld [vmem:[#allocation4 + $0xc8] sm:$0xf]  ;;  %v3375_v58 = vor.u32 %v4301_v50, %v3372_v61  ;;  %v4296_v61 = vld [vmem:[#allocation4 + $0x94] sm:$0xf0] }
  0xb2   :  { %v3346_v50 = vld [vmem:[#allocation4 + $0x88] sm:$0xf] }
  0xb3   :  { %861 = vmatpush.bf16.msrb.mxu1 %v3375_v58 }
  0xb6   :  { %v275_v2 = vpop.f32.mrf.mxu3 }
  0xb7   :  { %v251_v3 = vpop.f32.mrf.mxu2  ;;  %v5017_v4 = vadd.f32 %v275_v2, %v5014_v1  ;;  %v4304_v2 = vld [vmem:[#allocation4 + $0xd4] sm:$0xf0] }
  0xb8   :  { %v5020_v7 = vadd.f32 %v251_v3, %v5002_v6  ;;  %v220_v8 = vpop.f32.mrf.mxu1  ;;  %v187_v3 = vadd.f32 %v186_v46, %v5058_v44  ;;  %v4295_v46 = vld [vmem:[#allocation4 + $0x8c] sm:$0xf0] }
  0xb9   :  { %v5023_v9 = vadd.f32 %v220_v8, %v5006_v60  ;;  %v3379_v8 = vor.u32 %v4304_v2, %v3378_v63  ;;  %v3339_v47 = vor.u32 %v4295_v46, %v3338_v43  ;;  %v4294_v63 = vld [vmem:[#allocation4 + $0x8c] sm:$0xf]  ;;  %v3348_v2 = vld [vmem:[#allocation4 + $0x98] sm:$0xf0] }
  0xba   :  { %v3351_v58 = vor.u32 %v4294_v63, %v3348_v2  ;;  %v245_v63 = vadd.f32 %v4992_v53, %v5002_v6  ;;  %v3300_v53 = vld [vmem:[#allocation4 + $0x38] sm:$0xf0] }
  0xbb   :  { %874 = vmatpush.bf16.msrb.mxu2 %v3379_v8 }
  0xbe   :  { %v278_v10 = vpop.f32.mrf.mxu3 }
  0xbf   :  { %v254_v11 = vpop.f32.mrf.mxu2  ;;  %v5026_v12 = vadd.f32 %v278_v10, %v5014_v1  ;;  %v4302_v10 = vld [vmem:[#allocation4 + $0xcc] sm:$0xf]  ;;  %875 = vmatpush.bf16.msrb.mxu2 %v3363_v36 }
  0xc0   :  { %v5029_v13 = vadd.f32 %v254_v11, %v5002_v6  ;;  %v222_v14 = vpop.f32.mrf.mxu1  ;;  %v3380_v11 = vld [vmem:[#allocation4 + $0xd8] sm:$0xf0] }
  0xc1   :  { %v5032_v15 = vadd.f32 %v222_v14, %v5006_v60  ;;  %v3383_v14 = vor.u32 %v4302_v10, %v3380_v11  ;;  %v3322_v10 = vld [vmem:[#allocation4 + $0x60] sm:$0xf]  ;;  %v4291_v11 = vld [vmem:[#allocation4 + $0x6c] sm:$0xf0] }
  0xc3   :  { %887 = vmatpush.bf16.msrb.mxu3 %v3383_v14  ;;  %v4289_v14 = vld [vmem:[#allocation4 + $0x64] sm:$0xf] }
  0xc6   :  { %v280_v16 = vpop.f32.mrf.mxu3 }
  0xc7   :  { %v256_v17 = vpop.f32.mrf.mxu2  ;;  %v5035_v18 = vadd.f32 %v280_v16, %v5014_v1 }
  0xc8   :  { %v5038_v19 = vadd.f32 %v256_v17, %v5002_v6  ;;  %v225_v20 = vpop.f32.mrf.mxu1  ;;  %v3354_v17 = vld [vmem:[#allocation4 + $0xa0] sm:$0xf] }
  0xc9   :  { %v5041_v21 = vadd.f32 %v225_v20, %v5006_v60  ;;  %v4299_v20 = vld [vmem:[#allocation4 + $0xac] sm:$0xf0] }
  0xce   :  { %v283_v22 = vpop.f32.mrf.mxu3 }
  0xcf   :  { %v259_v23 = vpop.f32.mrf.mxu2  ;;  %v5044_v24 = vadd.f32 %v283_v22, %v5014_v1  ;;  %v4297_v22 = vld [vmem:[#allocation4 + $0xa4] sm:$0xf] }
  0xd0   :  { %v5047_v25 = vadd.f32 %v259_v23, %v5002_v6  ;;  %v227_v26 = vpop.f32.mrf.mxu1  ;;  %v3359_v35 = vor.u32 %v4297_v22, %v3356_v29  ;;  %v3323_v22 = vor.u32 %v4291_v11, %v3322_v10  ;;  %v4283_v10 = vld [vmem:[#allocation4 + $0x2c] sm:$0xf0]  ;;  %v4281_v11 = vld [vmem:[#allocation4 + $0x24] sm:$0xf] }
  0xd1   :  { %v5050_v27 = vadd.f32 %v227_v26, %v5006_v60 }
  0xd2   :  { %862 = vmatpush.bf16.msrb.mxu1 %v3359_v35 }
  0xd6   :  { %v285_v28 = vpop.f32.mrf.mxu3  ;;  %863 = vmatpush.bf16.msrb.mxu1 %v3343_v51  ;;  %v4286_v51 = vld [vmem:[#allocation4 + $0x4c] sm:$0xf] }
  0xd7   :  { %v261_v32 = vpop.f32.mrf.mxu2  ;;  %v5053_v33 = vadd.f32 %v285_v28, %v5014_v1  ;;  %v3355_v28 = vor.u32 %v4299_v20, %v3354_v17 }
  0xd8   :  { %v5056_v38 = vadd.f32 %v261_v32, %v5002_v6  ;;  %v230_v39 = vpop.f32.mrf.mxu1 }
  0xd9   :  { %v5061_v45 = vadd.f32 %v230_v39, %v5006_v60  ;;  %v3364_v39 = vld [vmem:[#allocation4 + $0xb8] sm:$0xf0]  ;;  %849 = vmatpush.bf16.msrb.mxu0 %v3355_v28  ;;  %v3330_v28 = vld [vmem:[#allocation4 + $0x68] sm:$0xf] }
  0xda   :  { %v3367_v41 = vor.u32 %v4298_v37, %v3364_v39  ;;  %v3331_v36 = vor.u32 %v4292_v31, %v3330_v28  ;;  %v4282_v31 = vld [vmem:[#allocation4 + $0x2c] sm:$0xf] }
  0xdc   :  { %888 = vmatpush.bf16.msrb.mxu3 %v3367_v41  ;;  %v4285_v41 = vld [vmem:[#allocation4 + $0x44] sm:$0xf] }
  0xdd   :  { %850 = vmatpush.bf16.msrb.mxu0 %v3339_v47  ;;  %v3308_v47 = vld [vmem:[#allocation4 + $0x50] sm:$0xf0] }
  0xde   :  { %v288_v16 = vpop.f32.mrf.mxu3  ;;  %v3311_v48 = vor.u32 %v4285_v41, %v3308_v47  ;;  %v3282_v41 = vld [vmem:[#allocation4 + $0x8] sm:$0xf]  ;;  %v4280_v47 = vld [vmem:[#allocation4 + $0x14] sm:$0xf0] }
  0xdf   :  { %v5065_v23 = vadd.f32 %v288_v16, %v5014_v1  ;;  %v536_v26 = vpop.f32.mrf.mxu2  ;;  %v216_v16 = vadd.f32 %v5000_v57, %v5006_v60  ;;  %v3306_v57 = vld [vmem:[#allocation4 + $0x40] sm:$0xf] }
  0xe0   :  { %v579_v32 = vadd.f32 %v536_v26, %v187_v3  ;;  %v232_v34 = vpop.f32.mrf.mxu1  ;;  %v3347_v3 = vor.u32 %v4296_v61, %v3346_v50  ;;  %889 = vmatpush.bf16.msrb.mxu3 %v3351_v58  ;;  %v3324_v26 = vld [vmem:[#allocation4 + $0x70] sm:$0xf0]  ;;  %v4288_v50 = vld [vmem:[#allocation4 + $0x54] sm:$0xf0]  ;;  %v3316_v61 = vld [vmem:[#allocation4 + $0x58] sm:$0xf0] }
  0xe1   :  { %v5068_v40 = vadd.f32 %v232_v34, %v5006_v60  ;;  %v3327_v30 = vor.u32 %v4289_v14, %v3324_v26  ;;  %v3332_v34 = vld [vmem:[#allocation4 + $0x78] sm:$0xf0]  ;;  %851 = vmatpush.bf16.msrb.mxu0 %v3323_v22  ;;  %v4287_v60 = vld [vmem:[#allocation4 + $0x4c] sm:$0xf0]  ;;  %v3319_v58 = vor.u32 %v4286_v51, %v3316_v61  ;;  %v3298_v22 = vld [vmem:[#allocation4 + $0x28] sm:$0xf]  ;;  %v3283_v61 = vor.u32 %v4280_v47, %v3282_v41 }
  0xe2   :  { %v3269_v42 = vmul.f32 -1.442695, %v579_v32  ;;  %876 = vmatpush.bf16.msrb.mxu2 %v3347_v3  ;;  %v4290_v32 = vld [vmem:[#allocation4 + $0x6c] sm:$0xf]  ;;  %v3307_v46 = vor.u32 %v4287_v60, %v3306_v57  ;;  %v3315_v3 = vor.u32 %v4288_v50, %v3314_v49  ;;  %v3276_v60 = vld [vmem:[#allocation4 + $0x10] sm:$0xf0] }
  0xe3   :  { %v3335_v37 = vor.u32 %v4290_v32, %v3332_v34  ;;  %864 = vmatpush.bf16.msrb.mxu1 %v3327_v30  ;;  %v4284_v30 = vld [vmem:[#allocation4 + $0x34] sm:$0xf0]  ;;  %v3303_v34 = vor.u32 %v4282_v31, %v3300_v53  ;;  %v3284_v49 = vld [vmem:[#allocation4 + $0x18] sm:$0xf0] }
  0xe4   :  { %4529 = vpow2.f32 %v3269_v42  ;;  %v3299_v32 = vor.u32 %v4284_v30, %v3298_v22 }
  0xe5   :  { %890 = vmatpush.bf16.msrb.mxu3 %v3335_v37  ;;  %852 = vmatpush.bf16.msrb.mxu0 %v3307_v46  ;;  %v4277_v37 = vld [vmem:[#allocation4 + $0x4] sm:$0xf] }
  0xe6   :  { %v290_v8 = vpop.f32.mrf.mxu3  ;;  %877 = vmatpush.bf16.msrb.mxu2 %v3331_v36  ;;  %v4279_v36 = vld [vmem:[#allocation4 + $0xc] sm:$0xf0]  ;;  %v3279_v46 = vor.u32 %v4277_v37, %v3276_v60 }
  0xe7   :  { %v5073_v17 = vadd.f32 %v290_v8, %v5014_v1  ;;  %v538_v20 = vpop.f32.mrf.mxu2  ;;  %865 = vmatpush.bf16.msrb.mxu1 %v3311_v48  ;;  %v3290_v8 = vld [vmem:[#allocation4 + $0x20] sm:$0xf]  ;;  %v4278_v48 = vld [vmem:[#allocation4 + $0xc] sm:$0xf] }
  0xe8   :  { %v549_v29 = vpop.f32.mrf.mxu1  ;;  %v3292_v20 = vld [vmem:[#allocation4 + $0x30] sm:$0xf0] }
  0xe9   :  { %v580_v35 = vadd.f32 %v549_v29, %v216_v16  ;;  %v3291_v16 = vor.u32 %v4283_v10, %v3290_v8  ;;  %891 = vmatpush.bf16.msrb.mxu3 %v3319_v58  ;;  %v3295_v29 = vor.u32 %v4281_v11, %v3292_v20 }
  0xea   :  { %v4530_v39 = vpop.eup %4529  ;;  %878 = vmatpush.bf16.msrb.mxu2 %v3315_v3  ;;  %v3287_v3 = vor.u32 %v4278_v48, %v3284_v49 }
  0xeb   :  { %v5075_v42 = vadd.f32 1.0, %v4530_v39  ;;  %v3270_v43 = vmul.f32 -1.442695, %v580_v35  ;;  %853 = vmatpush.bf16.msrb.mxu0 %v3291_v16  ;;  %v3274_v35 = vld [vmem:[#allocation4] sm:$0xf]  ;;  %866 = vmatpush.bf16.msrb.mxu1 %v3295_v29  ;;  %v274_v16 = vadd.f32 %v5004_v59, %v5014_v1 }
  0xec   :  { %v3275_v57 = vor.u32 %v4279_v36, %v3274_v35 }
  0xed   :  { %4531 = vrcp.f32 %v5075_v42  ;;  %892 = vmatpush.bf16.msrb.mxu3 %v3303_v34  ;;  %v606_v30 = vand.u32 2147483648, %v5075_v42  ;;  %vm600_vm2 = vweird.f32 %v5075_v42  ;;  %v604_v53 = vand.u32 2147483647, %v5075_v42 }
  0xee   :  { %4533 = vpow2.f32 %v3270_v43  ;;  %v575_v2 = vpop.f32.mrf.mxu3  ;;  %879 = vmatpush.bf16.msrb.mxu2 %v3299_v32 }
  0xef   :  { %v562_v14 = vpop.f32.mrf.mxu2  ;;  %854 = vmatpush.bf16.msrb.mxu0 %v3275_v57  ;;  %867 = vmatpush.bf16.msrb.mxu1 %v3279_v46  ;;  %v607_v36 = vor.u32 1.1754944e-38, %v606_v30  ;;  %vm605_vm6 = vcmp.eq.f32.partialorder %v604_v53, 8.507059e+37  ;;  %v100_v57 = vld [vmem:[#allocation10] sm:$0xff] }
  0xf0   :  { %v581_v26 = vadd.f32 %v562_v14, %v245_v63  ;;  %v551_v28 = vpop.f32.mrf.mxu1  ;;  %v3525_v53 = vld [vmem:[#allocation4 + $0xe8] sm:$0xf] }
  0xf1   :  { %893 = vmatpush.bf16.msrb.mxu3 %v3287_v3 }
  0xf2   :  { %v3271_v39 = vmul.f32 -1.442695, %v581_v26  ;;  %880 = vmatpush.bf16.msrb.mxu2 %v3283_v61  ;;  %v582_v26 = vadd.f32 %v575_v2, %v274_v16 }
  0xf3   :  { %v4532_v43 = vpop.eup %4531 }
  0xf4   :  { %v4534_v50 = vpop.eup %4533  ;;  %v596_v51 = vmul.f32 %v4532_v43, %v5075_v42  ;;  %4535 = vpow2.f32 %v3271_v39  ;;  %vm601_vm1 = vweird.f32 %v4532_v43 }
  0xf5   :  { %v593_v63 = vadd.f32 1.0, %v4534_v50  ;;  %vm5086_vm3 = vmor %vm600_vm2, %vm601_vm1 }
  0xf6   :  { %v597_v58 = vsub.f32 1.0, %v596_v51  ;;  %v577_v8 = vpop.f32.mrf.mxu3 }
  0xf7   :  { %4537 = vrcp.f32 %v593_v63  ;;  %v564_v10 = vpop.f32.mrf.mxu2  ;;  %v621_v32 = vand.u32 2147483648, %v593_v63  ;;  %v619_v2 = vand.u32 2147483647, %v593_v63  ;;  %vm615_vm5 = vweird.f32 %v593_v63 }
  0xf8   :  { %v598_v14 = vmul.f32 %v4532_v43, %v597_v58 }
  0xf9   :  { %v622_v42 = vor.u32 1.1754944e-38, %v621_v32  ;;  %vm620_vm8 = vcmp.eq.f32.partialorder %v619_v2, 8.507059e+37  ;;  %v4340_v32 = vld [vmem:[#allocation4 + $0xf4] sm:$0xf0]  ;;  %v3527_v2 = vld [vmem:[#allocation4 + $0xf8] sm:$0xf0] }
  0xfa   :  { %v4536_v11 = vpop.eup %4535  ;;  %v599_v29 = vadd.f32 %v4532_v43, %v598_v14 }
  0xfb   :  { %v594_v20 = vadd.f32 1.0, %v4536_v11 }
  0xfc   :  { %v603_v1 = vsel %vm5086_vm3, %v4532_v43, %v599_v29  ;;  %v4339_v29 = vld [vmem:[#allocation4 + $0xec] sm:$0xf0] }
  0xfd   :  { %v4538_v22 = vpop.eup %4537  ;;  %4539 = vrcp.f32 %v594_v20  ;;  %v608_v60 = vsel %vm605_vm6, %v607_v36, %v603_v1  ;;  %vm630_vm10 = vweird.f32 %v594_v20  ;;  %v634_v3 = vand.u32 2147483647, %v594_v20  ;;  %v4338_v1 = vld [vmem:[#allocation4 + $0xec] sm:$0xf]  ;;  %v3501_v36 = vld [vmem:[#allocation4 + $0xc0] sm:$0xf] }
  0xfe   :  { %v611_v28 = vmul.f32 %v4538_v22, %v593_v63  ;;  %4541 = vtanh.f32 %v582_v26  ;;  %vm616_vm4 = vweird.f32 %v4538_v22  ;;  %v636_v63 = vand.u32 2147483648, %v594_v20 }
  0xff   :  { %vm617_vm7 = vmor %vm615_vm5, %vm616_vm4  ;;  %vm635_vm12 = vcmp.eq.f32.partialorder %v634_v3, 8.507059e+37 }
 0x100   :  { %v612_v31 = vsub.f32 1.0, %v611_v28  ;;  %v637_v8 = vor.u32 1.1754944e-38, %v636_v63  ;;  %v3517_v28 = vld [vmem:[#allocation4 + $0xe0] sm:$0xf]  ;;  %v4329_v63 = vld [vmem:[#allocation4 + $0xa4] sm:$0xf] }
 0x101   :  { %v3518_v30 = vor.u32 %v4339_v29, %v3517_v28  ;;  %v4330_v28 = vld [vmem:[#allocation4 + $0xac] sm:$0xf]  ;;  %v3495_v29 = vld [vmem:[#allocation4 + $0xb8] sm:$0xf0] }
 0x102   :  { %v613_v59 = vmul.f32 %v4538_v22, %v612_v31  ;;  %v3519_v31 = vld [vmem:[#allocation4 + $0xf0] sm:$0xf0] }
 0x103   :  { %v4540_v35 = vpop.eup %4539  ;;  %1168 = vmatpush.bf16.msra.mxu0 %v3518_v30  ;;  %v3469_v30 = vld [vmem:[#allocation4 + $0x80] sm:$0xf] }
 0x104   :  { %v626_v37 = vmul.f32 %v4540_v35, %v594_v20  ;;  %v614_v39 = vadd.f32 %v4538_v22, %v613_v59  ;;  %v4542_v47 = vpop.eup %4541  ;;  %vm631_vm9 = vweird.f32 %v4540_v35  ;;  %v4337_v20 = vld [vmem:[#allocation4 + $0xe4] sm:$0xf]  ;;  %v3526_v59 = vor.u32 %v4340_v32, %v3525_v53 }
 0x105   :  { %v642_v51 = vmul.f32 %v4542_v47, %v608_v60  ;;  %vm632_vm11 = vmor %vm630_vm10, %vm631_vm9  ;;  %v3522_v34 = vor.u32 %v4337_v20, %v3519_v31  ;;  %v3509_v60 = vld [vmem:[#allocation4 + $0xc8] sm:$0xf]  ;;  %v3498_v20 = vor.u32 %v4330_v28, %v3495_v29  ;;  %v4327_v31 = vld [vmem:[#allocation4 + $0x8c] sm:$0xf0] }
 0x106   :  { %v627_v41 = vsub.f32 1.0, %v626_v37  ;;  %v618_v46 = vsel %vm617_vm7, %v4538_v22, %v614_v39  ;;  %v5095_v22 = vpop.f32.mrf.mxu0  ;;  %1194 = vmatpush.bf16.msra.mxu2 %v3526_v59  ;;  %v4335_v37 = vld [vmem:[#allocation4 + $0xcc] sm:$0xf0]  ;;  %v4333_v39 = vld [vmem:[#allocation4 + $0xc4] sm:$0xf]  ;;  %v3470_v32 = vor.u32 %v4327_v31, %v3469_v30 }
 0x107   :  { %v623_v48 = vsel %vm620_vm8, %v622_v42, %v618_v46  ;;  %1181 = vmatpush.bf16.msra.mxu1 %v3522_v34  ;;  %v3502_v42 = vor.u32 %v4335_v37, %v3501_v36  ;;  %v4325_v53 = vld [vmem:[#allocation4 + $0x84] sm:$0xf]  ;;  %v3471_v34 = vld [vmem:[#allocation4 + $0x90] sm:$0xf0]  ;;  %v3477_v59 = vld [vmem:[#allocation4 + $0x88] sm:$0xf] }
 0x108   :  { %v628_v49 = vmul.f32 %v4540_v35, %v627_v41  ;;  %v641_v50 = vmul.f32 %v623_v48, %v100_v57  ;;  %v3503_v57 = vld [vmem:[#allocation4 + $0xd0] sm:$0xf0]  ;;  %v4336_v41 = vld [vmem:[#allocation4 + $0xd4] sm:$0xf0]  ;;  %v4334_v48 = vld [vmem:[#allocation4 + $0xcc] sm:$0xf] }
 0x109   :  { %v3506_v46 = vor.u32 %v4333_v39, %v3503_v57  ;;  %v3510_v47 = vor.u32 %v4336_v41, %v3509_v60  ;;  %1169 = vmatpush.bf16.msra.mxu0 %v3502_v42  ;;  %v4326_v36 = vld [vmem:[#allocation4 + $0x8c] sm:$0xf]  ;;  %v3479_v37 = vld [vmem:[#allocation4 + $0x98] sm:$0xf0]  ;;  %v3453_v42 = vld [vmem:[#allocation4 + $0x60] sm:$0xf]  ;;  %v189_v41 = vadd.f32 %v5095_v22, %v5058_v44 }
 0x10a   :  { %v5092_v43 = vadd.f32 %v642_v51, %v641_v50  ;;  %v629_v61 = vadd.f32 %v4540_v35, %v628_v49  ;;  %v3511_v49 = vld [vmem:[#allocation4 + $0xd8] sm:$0xf0]  ;;  %v3485_v51 = vld [vmem:[#allocation4 + $0xa0] sm:$0xf]  ;;  %v3482_v39 = vor.u32 %v4326_v36, %v3479_v37  ;;  %v4323_v57 = vld [vmem:[#allocation4 + $0x6c] sm:$0xf0]  ;;  %v247_v36 = vadd.f32 %v4998_v56, %v5002_v6 }
 0x10b   :  { %v3514_v50 = vor.u32 %v4334_v48, %v3511_v49  ;;  %1182 = vmatpush.bf16.msra.mxu1 %v3506_v46  ;;  %1195 = vmatpush.bf16.msra.mxu2 %v3510_v47  ;;  %v4321_v60 = vld [vmem:[#allocation4 + $0x64] sm:$0xf]  ;;  %v3454_v46 = vor.u32 %v4323_v57, %v3453_v42  ;;  %v3455_v47 = vld [vmem:[#allocation4 + $0x70] sm:$0xf0]  ;;  %v3461_v48 = vld [vmem:[#allocation4 + $0x68] sm:$0xf] }
 0x10c   :  { %4543 = vtanh.f32 %v5092_v43  ;;  %v633_v58 = vsel %vm632_vm11, %v4540_v35, %v629_v61  ;;  %v3530_v35 = vor.u32 %v4338_v1, %v3527_v2  ;;  %v4331_v61 = vld [vmem:[#allocation4 + $0xac] sm:$0xf0]  ;;  %v4328_v1 = vld [vmem:[#allocation4 + $0x94] sm:$0xf0]  ;;  %v3474_v2 = vor.u32 %v4325_v53, %v3471_v34  ;;  %v4317_v28 = vld [vmem:[#allocation4 + $0x44] sm:$0xf] }
 0x10d   :  { %v638_v11 = vsel %vm635_vm12, %v637_v8, %v633_v58  ;;  %v3486_v3 = vor.u32 %v4331_v61, %v3485_v51  ;;  %v3487_v58 = vld [vmem:[#allocation4 + $0xb0] sm:$0xf0]  ;;  %v3493_v8 = vld [vmem:[#allocation4 + $0xa8] sm:$0xf]  ;;  %v4324_v49 = vld [vmem:[#allocation4 + $0x74] sm:$0xf0]  ;;  %v3458_v61 = vor.u32 %v4321_v60, %v3455_v47 }
 0x10e   :  { %v5097_v26 = vpop.f32.mrf.mxu0  ;;  %1207 = vmatpush.bf16.msra.mxu3 %v3530_v35  ;;  %v3478_v35 = vor.u32 %v4328_v1, %v3477_v59  ;;  %v4319_v22 = vld [vmem:[#allocation4 + $0x4c] sm:$0xf0]  ;;  %v3439_v31 = vld [vmem:[#allocation4 + $0x50] sm:$0xf0]  ;;  %v4320_v34 = vld [vmem:[#allocation4 + $0x54] sm:$0xf0] }
 0x10f   :  { %1170 = vmatpush.bf16.msra.mxu0 %v3486_v3  ;;  %v4322_v3 = vld [vmem:[#allocation4 + $0x6c] sm:$0xf]  ;;  %v3442_v53 = vor.u32 %v4317_v28, %v3439_v31  ;;  %v4313_v42 = vld [vmem:[#allocation4 + $0x24] sm:$0xf]  ;;  %v3423_v57 = vld [vmem:[#allocation4 + $0x30] sm:$0xf0] }
 0x110   :  { %v4318_v59 = vld [vmem:[#allocation4 + $0x4c] sm:$0xf]  ;;  %v3429_v60 = vld [vmem:[#allocation4 + $0x28] sm:$0xf]  ;;  %v3426_v47 = vor.u32 %v4313_v42, %v3423_v57  ;;  %v3405_v6 = vld [vmem:[#allocation4] sm:$0xf] }
 0x112   :  { %v4544_v10 = vpop.eup %4543  ;;  %1208 = vmatpush.bf16.msra.mxu3 %v3514_v50 }
 0x113   :  { %v645_v14 = vmul.f32 %v4544_v10, %v638_v11  ;;  %v4332_v10 = vld [vmem:[#allocation4 + $0xb4] sm:$0xf0]  ;;  %1171 = vmatpush.bf16.msra.mxu0 %v3470_v32  ;;  %v3445_v32 = vld [vmem:[#allocation4 + $0x48] sm:$0xf] }
 0x114   :  { %v3446_v1 = vor.u32 %v4320_v34, %v3445_v32 }
 0x115   :  { %v646_v16 = vpack.c.bf16 %v645_v14, %v645_v14  ;;  %v3490_v14 = vor.u32 %v4329_v63, %v3487_v58  ;;  %v3462_v63 = vor.u32 %v4324_v49, %v3461_v48  ;;  %v3463_v58 = vld [vmem:[#allocation4 + $0x78] sm:$0xf0]  ;;  %v4316_v48 = vld [vmem:[#allocation4 + $0x34] sm:$0xf0]  ;;  %v4314_v49 = vld [vmem:[#allocation4 + $0x2c] sm:$0xf] }
 0x116   :  { %v5099_v11 = vpop.f32.mrf.mxu0  ;;  %1209 = vmatpush.bf16.msra.mxu3 %v3498_v20 }
 0x117   :  { %647 = vst [vmem:[#allocation3] sm:$0xf] %v646_v16  ;;  %855 = vmatmul.bf16.vlgmr.msrb.gmra.mxu0 %v646_v16  ;;  %868 = vmatmul.bf16.vlgmr.msrb.gmra.mxu1 %v646_v16 }
 0x118   :  { %881 = vmatmul.bf16.vlgmr.msrb.gmra.mxu2 %v646_v16  ;;  %894 = vmatmul.bf16.vlgmr.msrb.gmra.mxu3 %v646_v16  ;;  %v3494_v16 = vor.u32 %v4332_v10, %v3493_v8 }
 0x119   :  { %1183 = vmatpush.bf16.msra.mxu1 %v3490_v14  ;;  %1172 = vmatpush.bf16.msra.mxu0 %v3454_v46  ;;  %v3466_v14 = vor.u32 %v4322_v3, %v3463_v58  ;;  %v3430_v3 = vor.u32 %v4316_v48, %v3429_v60  ;;  %v4311_v58 = vld [vmem:[#allocation4 + $0xc] sm:$0xf0] }
 0x11a   :  { %1196 = vmatpush.bf16.msra.mxu2 %v3494_v16  ;;  %1210 = vmatpush.bf16.msra.mxu3 %v3482_v39  ;;  %v3437_v16 = vld [vmem:[#allocation4 + $0x40] sm:$0xf] }
 0x11b   :  { %v3438_v30 = vor.u32 %v4319_v22, %v3437_v16  ;;  %v3413_v16 = vld [vmem:[#allocation4 + $0x8] sm:$0xf]  ;;  %v4312_v22 = vld [vmem:[#allocation4 + $0x14] sm:$0xf0] }
 0x11d   :  { %1184 = vmatpush.bf16.msra.mxu1 %v3474_v2  ;;  %1173 = vmatpush.bf16.msra.mxu0 %v3438_v30  ;;  %v3421_v2 = vld [vmem:[#allocation4 + $0x20] sm:$0xf]  ;;  %v3415_v30 = vld [vmem:[#allocation4 + $0x18] sm:$0xf0] }
 0x11e   :  { %1197 = vmatpush.bf16.msra.mxu2 %v3478_v35  ;;  %1211 = vmatpush.bf16.msra.mxu3 %v3466_v14  ;;  %v4315_v35 = vld [vmem:[#allocation4 + $0x2c] sm:$0xf0]  ;;  %v3407_v14 = vld [vmem:[#allocation4 + $0x10] sm:$0xf0] }
 0x11f   :  { %v3422_v39 = vor.u32 %v4315_v35, %v3421_v2 }
 0x121   :  { %1185 = vmatpush.bf16.msra.mxu1 %v3458_v61  ;;  %1174 = vmatpush.bf16.msra.mxu0 %v3422_v39 }
 0x122   :  { %1198 = vmatpush.bf16.msra.mxu2 %v3462_v63 }
 0x125   :  { %1186 = vmatpush.bf16.msra.mxu1 %v3442_v53  ;;  %v3414_v53 = vor.u32 %v4312_v22, %v3413_v16 }
 0x126   :  { %1199 = vmatpush.bf16.msra.mxu2 %v3446_v1 }
 0x129   :  { %1187 = vmatpush.bf16.msra.mxu1 %v3426_v47 }
 0x12a   :  { %1200 = vmatpush.bf16.msra.mxu2 %v3430_v3 }
 0x12e   :  { %1201 = vmatpush.bf16.msra.mxu2 %v3414_v53 }
 0x194   :  { %v856_v50 = vpop.f32.mrf.mxu0  ;;  %v869_v51 = vpop.f32.mrf.mxu1 }
 0x195   :  { %v899_v8 = vadd.f32 %v856_v50, %v189_v41  ;;  %v900_v10 = vadd.f32 %v869_v51, %v5012_v0  ;;  %v3447_v0 = vld [vmem:[#allocation4 + $0x58] sm:$0xf0] }
 0x196   :  { %v3450_v37 = vor.u32 %v4318_v59, %v3447_v0  ;;  %v3431_v50 = vld [vmem:[#allocation4 + $0x38] sm:$0xf0] }
 0x197   :  { %v3400_v29 = vmul.f32 -1.442695, %v899_v8  ;;  %v3401_v20 = vmul.f32 -1.442695, %v900_v10  ;;  %v3434_v56 = vor.u32 %v4314_v49, %v3431_v50  ;;  %v4309_v8 = vld [vmem:[#allocation4 + $0x4] sm:$0xf]  ;;  %v3406_v10 = vor.u32 %v4311_v58, %v3405_v6 }
 0x198   :  { %1212 = vmatpush.bf16.msra.mxu3 %v3450_v37 }
 0x199   :  { %4545 = vpow2.f32 %v3400_v29  ;;  %v3410_v29 = vor.u32 %v4309_v8, %v3407_v14  ;;  %1175 = vmatpush.bf16.msra.mxu0 %v3406_v10 }
 0x19a   :  { %4547 = vpow2.f32 %v3401_v20  ;;  %v4310_v20 = vld [vmem:[#allocation4 + $0xc] sm:$0xf] }
 0x19b   :  { %v882_v41 = vpop.f32.mrf.mxu2  ;;  %v895_v46 = vpop.f32.mrf.mxu3  ;;  %v3418_v59 = vor.u32 %v4310_v20, %v3415_v30  ;;  %1188 = vmatpush.bf16.msra.mxu1 %v3410_v29 }
 0x19c   :  { %v901_v51 = vadd.f32 %v882_v41, %v247_v36  ;;  %v858_v61 = vpop.f32.mrf.mxu0  ;;  %v871_v63 = vpop.f32.mrf.mxu1  ;;  %1213 = vmatpush.bf16.msra.mxu3 %v3434_v56  ;;  %v902_v39 = vadd.f32 %v895_v46, %v5017_v4 }
 0x19e   :  { %v3402_v28 = vmul.f32 -1.442695, %v901_v51 }
 0x19f   :  { %v4546_v31 = vpop.eup %4545 }
 0x1a0   :  { %v4548_v32 = vpop.eup %4547  ;;  %v912_v34 = vadd.f32 1.0, %v4546_v31  ;;  %4549 = vpow2.f32 %v3402_v28  ;;  %1214 = vmatpush.bf16.msra.mxu3 %v3418_v59 }
 0x1a1   :  { %v913_v1 = vadd.f32 1.0, %v4548_v32 }
 0x1a2   :  { %4551 = vrcp.f32 %v912_v34  ;;  %v926_v48 = vand.u32 2147483648, %v912_v34  ;;  %v924_v51 = vand.u32 2147483647, %v912_v34  ;;  %vm920_vm15 = vweird.f32 %v912_v34 }
 0x1a3   :  { %4553 = vrcp.f32 %v913_v1  ;;  %v884_v0 = vpop.f32.mrf.mxu2  ;;  %v897_v2 = vpop.f32.mrf.mxu3  ;;  %v941_v49 = vand.u32 2147483648, %v913_v1  ;;  %v939_v63 = vand.u32 2147483647, %v913_v1  ;;  %vm935_vm0 = vweird.f32 %v913_v1 }
 0x1a4   :  { %v927_v46 = vor.u32 1.1754944e-38, %v926_v48  ;;  %vm925_vm3 = vcmp.eq.f32.partialorder %v924_v51, 8.507059e+37 }
 0x1a5   :  { %v942_v58 = vor.u32 1.1754944e-38, %v941_v49  ;;  %vm940_vm4 = vcmp.eq.f32.partialorder %v939_v63, 8.507059e+37  ;;  %v4370_v49 = vld [vmem:[#allocation4 + $0xec] sm:$0xf]  ;;  %v4367_v63 = vld [vmem:[#allocation4 + $0xcc] sm:$0xf0] }
 0x1a6   :  { %v4550_v35 = vpop.eup %4549 }
 0x1a7   :  { %v914_v36 = vadd.f32 1.0, %v4550_v35 }
 0x1a8   :  { %v4552_v37 = vpop.eup %4551 }
 0x1a9   :  { %v4554_v42 = vpop.eup %4553  ;;  %v916_v57 = vmul.f32 %v4552_v37, %v912_v34  ;;  %4555 = vrcp.f32 %v914_v36  ;;  %vm921_vm13 = vweird.f32 %v4552_v37  ;;  %v956_v32 = vand.u32 2147483648, %v914_v36 }
 0x1aa   :  { %v931_v60 = vmul.f32 %v4554_v42, %v913_v1  ;;  %4557 = vtanh.f32 %v902_v39  ;;  %vm936_vm14 = vweird.f32 %v4554_v42  ;;  %vm922_vm1 = vmor %vm920_vm15, %vm921_vm13  ;;  %vm950_vm6 = vweird.f32 %v914_v36  ;;  %v4371_v39 = vld [vmem:[#allocation4 + $0xec] sm:$0xf0] }
 0x1ab   :  { %v917_v41 = vsub.f32 1.0, %v916_v57  ;;  %vm937_vm2 = vmor %vm935_vm0, %vm936_vm14  ;;  %v954_v34 = vand.u32 2147483647, %v914_v36  ;;  %v957_v1 = vor.u32 1.1754944e-38, %v956_v32  ;;  %v4364_v32 = vld [vmem:[#allocation4 + $0xb4] sm:$0xf0] }
 0x1ac   :  { %v932_v47 = vsub.f32 1.0, %v931_v60  ;;  %v3650_v60 = vld [vmem:[#allocation4 + $0xf0] sm:$0xf0] }
 0x1ad   :  { %v918_v50 = vmul.f32 %v4552_v37, %v917_v41  ;;  %vm955_vm8 = vcmp.eq.f32.partialorder %v954_v34, 8.507059e+37  ;;  %v3656_v41 = vld [vmem:[#allocation4 + $0xe8] sm:$0xf] }
 0x1ae   :  { %v933_v61 = vmul.f32 %v4554_v42, %v932_v47 }
 0x1af   :  { %v4556_v3 = vpop.eup %4555  ;;  %v919_v56 = vadd.f32 %v4552_v37, %v918_v50  ;;  %v3658_v50 = vld [vmem:[#allocation4 + $0xf8] sm:$0xf0] }
 0x1b0   :  { %v946_v4 = vmul.f32 %v4556_v3, %v914_v36  ;;  %v934_v6 = vadd.f32 %v4554_v42, %v933_v61  ;;  %v4558_v10 = vpop.eup %4557  ;;  %vm951_vm5 = vweird.f32 %v4556_v3  ;;  %v4372_v36 = vld [vmem:[#allocation4 + $0xf4] sm:$0xf0]  ;;  %v3661_v51 = vor.u32 %v4370_v49, %v3658_v50  ;;  %v3632_v61 = vld [vmem:[#allocation4 + $0xc0] sm:$0xf] }
 0x1b1   :  { %v923_v8 = vsel %vm922_vm1, %v4552_v37, %v919_v56  ;;  %vm952_vm7 = vmor %vm950_vm6, %vm951_vm5  ;;  %v3657_v48 = vor.u32 %v4372_v36, %v3656_v41  ;;  %v3633_v56 = vor.u32 %v4367_v63, %v3632_v61  ;;  %v3584_v50 = vld [vmem:[#allocation4 + $0x60] sm:$0xf]  ;;  %v4353_v61 = vld [vmem:[#allocation4 + $0x64] sm:$0xf]  ;;  %v192_v63 = vadd.f32 %v5097_v26, %v5058_v44 }
 0x1b2   :  { %v947_v14 = vsub.f32 1.0, %v946_v4  ;;  %v928_v16 = vsel %vm925_vm3, %v927_v46, %v923_v8  ;;  %v938_v22 = vsel %vm937_vm2, %v4554_v42, %v934_v6  ;;  %v4369_v42 = vld [vmem:[#allocation4 + $0xe4] sm:$0xf]  ;;  %1528 = vmatpush.bf16.msrb.mxu3 %v3661_v51  ;;  %v3634_v4 = vld [vmem:[#allocation4 + $0xd0] sm:$0xf0] }
 0x1b3   :  { %v943_v28 = vsel %vm940_vm4, %v942_v58, %v938_v22  ;;  %v962_v29 = vmul.f32 %v4558_v10, %v928_v16  ;;  %v3653_v47 = vor.u32 %v4369_v42, %v3650_v60  ;;  %1515 = vmatpush.bf16.msrb.mxu2 %v3657_v48  ;;  %v3640_v46 = vld [vmem:[#allocation4 + $0xc8] sm:$0xf]  ;;  %v4368_v6 = vld [vmem:[#allocation4 + $0xd4] sm:$0xf0]  ;;  %v4366_v10 = vld [vmem:[#allocation4 + $0xcc] sm:$0xf] }
 0x1b4   :  { %v948_v20 = vmul.f32 %v4556_v3, %v947_v14  ;;  %v961_v30 = vmul.f32 %v943_v28, %v5092_v43  ;;  %v3648_v43 = vld [vmem:[#allocation4 + $0xe0] sm:$0xf]  ;;  %v3641_v8 = vor.u32 %v4368_v6, %v3640_v46  ;;  %v3642_v14 = vld [vmem:[#allocation4 + $0xd8] sm:$0xf0]  ;;  %v4363_v28 = vld [vmem:[#allocation4 + $0xac] sm:$0xf0] }
 0x1b5   :  { %v3649_v57 = vor.u32 %v4371_v39, %v3648_v43  ;;  %1502 = vmatpush.bf16.msrb.mxu1 %v3653_v47  ;;  %v3645_v16 = vor.u32 %v4366_v10, %v3642_v14  ;;  %v3616_v22 = vld [vmem:[#allocation4 + $0xa0] sm:$0xf]  ;;  %v4357_v43 = vld [vmem:[#allocation4 + $0x84] sm:$0xf]  ;;  %v3602_v42 = vld [vmem:[#allocation4 + $0x90] sm:$0xf0] }
 0x1b6   :  { %v5108_v31 = vadd.f32 %v962_v29, %v961_v30  ;;  %v949_v53 = vadd.f32 %v4556_v3, %v948_v20  ;;  %v4361_v29 = vld [vmem:[#allocation4 + $0xa4] sm:$0xf]  ;;  %v3617_v20 = vor.u32 %v4363_v28, %v3616_v22  ;;  %v3618_v30 = vld [vmem:[#allocation4 + $0xb0] sm:$0xf0]  ;;  %v4360_v60 = vld [vmem:[#allocation4 + $0x94] sm:$0xf0]  ;;  %v3605_v41 = vor.u32 %v4357_v43, %v3602_v42 }
 0x1b7   :  { %1489 = vmatpush.bf16.msrb.mxu0 %v3649_v57  ;;  %1516 = vmatpush.bf16.msrb.mxu2 %v3641_v8  ;;  %v3621_v34 = vor.u32 %v4361_v29, %v3618_v30  ;;  %v3608_v57 = vld [vmem:[#allocation4 + $0x88] sm:$0xf]  ;;  %v4358_v47 = vld [vmem:[#allocation4 + $0x8c] sm:$0xf]  ;;  %v3610_v48 = vld [vmem:[#allocation4 + $0x98] sm:$0xf0] }
 0x1b8   :  { %4559 = vtanh.f32 %v5108_v31  ;;  %v953_v59 = vsel %vm952_vm7, %v4556_v3, %v949_v53  ;;  %v4365_v3 = vld [vmem:[#allocation4 + $0xc4] sm:$0xf]  ;;  %1529 = vmatpush.bf16.msrb.mxu3 %v3645_v16  ;;  %v3624_v53 = vld [vmem:[#allocation4 + $0xa8] sm:$0xf]  ;;  %v3609_v36 = vor.u32 %v4360_v60, %v3608_v57  ;;  %v3613_v49 = vor.u32 %v4358_v47, %v3610_v48  ;;  %v4355_v51 = vld [vmem:[#allocation4 + $0x6c] sm:$0xf0] }
 0x1b9   :  { %v958_v2 = vsel %vm955_vm8, %v957_v1, %v953_v59  ;;  %v3637_v58 = vor.u32 %v4365_v3, %v3634_v4  ;;  %v3625_v59 = vor.u32 %v4364_v32, %v3624_v53  ;;  %v4362_v1 = vld [vmem:[#allocation4 + $0xac] sm:$0xf]  ;;  %v3585_v3 = vor.u32 %v4355_v51, %v3584_v50  ;;  %v3592_v4 = vld [vmem:[#allocation4 + $0x68] sm:$0xf]  ;;  %v4356_v46 = vld [vmem:[#allocation4 + $0x74] sm:$0xf0] }
 0x1ba   :  { %v3593_v10 = vor.u32 %v4356_v46, %v3592_v4  ;;  %v4354_v14 = vld [vmem:[#allocation4 + $0x6c] sm:$0xf]  ;;  %v3594_v16 = vld [vmem:[#allocation4 + $0x78] sm:$0xf0]  ;;  %v4351_v26 = vld [vmem:[#allocation4 + $0x4c] sm:$0xf0] }
 0x1bb   :  { %1490 = vmatpush.bf16.msrb.mxu0 %v3633_v56  ;;  %1503 = vmatpush.bf16.msrb.mxu1 %v3637_v58  ;;  %v3586_v56 = vld [vmem:[#allocation4 + $0x70] sm:$0xf0]  ;;  %v3597_v29 = vor.u32 %v4354_v14, %v3594_v16  ;;  %v4349_v30 = vld [vmem:[#allocation4 + $0x44] sm:$0xf]  ;;  %v3552_v43 = vld [vmem:[#allocation4 + $0x20] sm:$0xf] }
 0x1bc   :  { %1517 = vmatpush.bf16.msrb.mxu2 %v3625_v59  ;;  %v3589_v8 = vor.u32 %v4353_v61, %v3586_v56  ;;  %v3570_v59 = vld [vmem:[#allocation4 + $0x50] sm:$0xf0]  ;;  %v4345_v60 = vld [vmem:[#allocation4 + $0x24] sm:$0xf]  ;;  %v4348_v50 = vld [vmem:[#allocation4 + $0x34] sm:$0xf0] }
 0x1bd   :  { %v4346_v51 = vld [vmem:[#allocation4 + $0x2c] sm:$0xf]  ;;  %v3562_v61 = vld [vmem:[#allocation4 + $0x38] sm:$0xf0]  ;;  %v3538_v14 = vld [vmem:[#allocation4 + $0x10] sm:$0xf0] }
 0x1be   :  { %v4560_v0 = vpop.eup %4559  ;;  %v3565_v46 = vor.u32 %v4346_v51, %v3562_v61  ;;  %v3544_v16 = vld [vmem:[#allocation4 + $0x8] sm:$0xf] }
 0x1bf   :  { %v965_v35 = vmul.f32 %v4560_v0, %v958_v2  ;;  %v3626_v0 = vld [vmem:[#allocation4 + $0xb8] sm:$0xf0]  ;;  %1491 = vmatpush.bf16.msrb.mxu0 %v3617_v20  ;;  %1504 = vmatpush.bf16.msrb.mxu1 %v3621_v34  ;;  %v3568_v20 = vld [vmem:[#allocation4 + $0x40] sm:$0xf] }
 0x1c0   :  { %v3629_v2 = vor.u32 %v4362_v1, %v3626_v0  ;;  %1518 = vmatpush.bf16.msrb.mxu2 %v3609_v36  ;;  %v3569_v34 = vor.u32 %v4351_v26, %v3568_v20  ;;  %v3573_v1 = vor.u32 %v4349_v30, %v3570_v59  ;;  %v3576_v0 = vld [vmem:[#allocation4 + $0x48] sm:$0xf]  ;;  %v4342_v20 = vld [vmem:[#allocation4 + $0xc] sm:$0xf]  ;;  %v3546_v26 = vld [vmem:[#allocation4 + $0x18] sm:$0xf0] }
 0x1c1   :  { %v966_v37 = vpack.c.bf16 %v965_v35, %v965_v35  ;;  %v3600_v35 = vld [vmem:[#allocation4 + $0x80] sm:$0xf]  ;;  %v3560_v36 = vld [vmem:[#allocation4 + $0x28] sm:$0xf] }
 0x1c2   :  { %1530 = vmatpush.bf16.msrb.mxu3 %v3629_v2  ;;  %v4352_v2 = vld [vmem:[#allocation4 + $0x54] sm:$0xf0]  ;;  %v3561_v4 = vor.u32 %v4348_v50, %v3560_v36 }
 0x1c3   :  { %968 = vst [vmem:[#allocation3 + $0x4] sm:$0xf] %v966_v37  ;;  %1176 = vmatmul.bf16.vlgmr.msra.gmra.mxu0 %v966_v37  ;;  %1189 = vmatmul.bf16.vlgmr.msra.gmra.mxu1 %v966_v37 }
 0x1c4   :  { %1202 = vmatmul.bf16.vlgmr.msra.gmra.mxu2 %v966_v37  ;;  %1215 = vmatmul.bf16.vlgmr.msra.gmra.mxu3 %v966_v37  ;;  %v4359_v37 = vld [vmem:[#allocation4 + $0x8c] sm:$0xf0] }
 0x1c5   :  { %v3601_v39 = vor.u32 %v4359_v37, %v3600_v35  ;;  %1505 = vmatpush.bf16.msrb.mxu1 %v3605_v41  ;;  %1519 = vmatpush.bf16.msrb.mxu2 %v3593_v10  ;;  %v4350_v35 = vld [vmem:[#allocation4 + $0x4c] sm:$0xf]  ;;  %v3577_v37 = vor.u32 %v4352_v2, %v3576_v0  ;;  %v3554_v41 = vld [vmem:[#allocation4 + $0x30] sm:$0xf0] }
 0x1c6   :  { %1531 = vmatpush.bf16.msrb.mxu3 %v3613_v49  ;;  %v3557_v49 = vor.u32 %v4345_v60, %v3554_v41 }
 0x1c7   :  { %1492 = vmatpush.bf16.msrb.mxu0 %v3601_v39  ;;  %v4347_v39 = vld [vmem:[#allocation4 + $0x2c] sm:$0xf0] }
 0x1c8   :  { %v3553_v57 = vor.u32 %v4347_v39, %v3552_v43 }
 0x1c9   :  { %1506 = vmatpush.bf16.msrb.mxu1 %v3589_v8  ;;  %1520 = vmatpush.bf16.msrb.mxu2 %v3577_v37  ;;  %v4341_v8 = vld [vmem:[#allocation4 + $0x4] sm:$0xf] }
 0x1ca   :  { %1532 = vmatpush.bf16.msrb.mxu3 %v3597_v29  ;;  %v3541_v29 = vor.u32 %v4341_v8, %v3538_v14 }
 0x1cb   :  { %1493 = vmatpush.bf16.msrb.mxu0 %v3585_v3 }
 0x1cd   :  { %1507 = vmatpush.bf16.msrb.mxu1 %v3573_v1  ;;  %1521 = vmatpush.bf16.msrb.mxu2 %v3561_v4 }
 0x1cf   :  { %1494 = vmatpush.bf16.msrb.mxu0 %v3569_v34  ;;  %v3549_v34 = vor.u32 %v4342_v20, %v3546_v26 }
 0x1d1   :  { %1508 = vmatpush.bf16.msrb.mxu1 %v3557_v49 }
 0x1d3   :  { %1495 = vmatpush.bf16.msrb.mxu0 %v3553_v57 }
 0x1d5   :  { %1509 = vmatpush.bf16.msrb.mxu1 %v3541_v29 }
 0x240   :  { %v1177_v6 = vpop.f32.mrf.mxu0  ;;  %v1190_v58 = vpop.f32.mrf.mxu1 }
 0x241   :  { %v1220_v22 = vadd.f32 %v1177_v6, %v192_v63  ;;  %v1221_v28 = vadd.f32 %v1190_v58, %v5023_v9  ;;  %v3578_v9 = vld [vmem:[#allocation4 + $0x58] sm:$0xf0]  ;;  %v3536_v6 = vld [vmem:[#allocation4] sm:$0xf]  ;;  %v4343_v58 = vld [vmem:[#allocation4 + $0xc] sm:$0xf0] }
 0x242   :  { %v3581_v42 = vor.u32 %v4350_v35, %v3578_v9  ;;  %v3537_v10 = vor.u32 %v4343_v58, %v3536_v6 }
 0x243   :  { %v3531_v53 = vmul.f32 -1.442695, %v1220_v22  ;;  %v3532_v32 = vmul.f32 -1.442695, %v1221_v28  ;;  %v4344_v22 = vld [vmem:[#allocation4 + $0x14] sm:$0xf0] }
 0x244   :  { %1533 = vmatpush.bf16.msrb.mxu3 %v3581_v42  ;;  %1496 = vmatpush.bf16.msrb.mxu0 %v3537_v10 }
 0x245   :  { %4561 = vpow2.f32 %v3531_v53 }
 0x246   :  { %4563 = vpow2.f32 %v3532_v32 }
 0x247   :  { %v1203_v47 = vpop.f32.mrf.mxu2  ;;  %v1216_v48 = vpop.f32.mrf.mxu3 }
 0x248   :  { %v1222_v63 = vadd.f32 %v1203_v47, %v5009_v62  ;;  %v1179_v3 = vpop.f32.mrf.mxu0  ;;  %v1192_v56 = vpop.f32.mrf.mxu1  ;;  %v3545_v62 = vor.u32 %v4344_v22, %v3544_v16  ;;  %1534 = vmatpush.bf16.msrb.mxu3 %v3565_v46  ;;  %v1223_v9 = vadd.f32 %v1216_v48, %v5026_v12 }
 0x24a   :  { %v3533_v28 = vmul.f32 -1.442695, %v1222_v63  ;;  %1522 = vmatpush.bf16.msrb.mxu2 %v3545_v62 }
 0x24b   :  { %v4562_v30 = vpop.eup %4561 }
 0x24c   :  { %v4564_v53 = vpop.eup %4563  ;;  %v1233_v32 = vadd.f32 1.0, %v4562_v30  ;;  %4565 = vpow2.f32 %v3533_v28  ;;  %1535 = vmatpush.bf16.msrb.mxu3 %v3549_v34 }
 0x24d   :  { %v1234_v59 = vadd.f32 1.0, %v4564_v53 }
 0x24e   :  { %4567 = vrcp.f32 %v1233_v32  ;;  %v1247_v41 = vand.u32 2147483648, %v1233_v32  ;;  %v1245_v49 = vand.u32 2147483647, %v1233_v32  ;;  %vm1241_vm11 = vweird.f32 %v1233_v32 }
 0x24f   :  { %4569 = vrcp.f32 %v1234_v59  ;;  %v1205_v1 = vpop.f32.mrf.mxu2  ;;  %v1218_v0 = vpop.f32.mrf.mxu3  ;;  %v1262_v36 = vand.u32 2147483648, %v1234_v59  ;;  %v1260_v51 = vand.u32 2147483647, %v1234_v59  ;;  %vm1256_vm12 = vweird.f32 %v1234_v59 }
 0x250   :  { %v1248_v48 = vor.u32 1.1754944e-38, %v1247_v41  ;;  %vm1246_vm15 = vcmp.eq.f32.partialorder %v1245_v49, 8.507059e+37  ;;  %v4403_v1 = vld [vmem:[#allocation4 + $0xec] sm:$0xf0]  ;;  %v4401_v0 = vld [vmem:[#allocation4 + $0xe4] sm:$0xf] }
 0x251   :  { %v1263_v56 = vor.u32 1.1754944e-38, %v1262_v36  ;;  %vm1261_vm0 = vcmp.eq.f32.partialorder %v1260_v51, 8.507059e+37  ;;  %v3763_v41 = vld [vmem:[#allocation4 + $0xc0] sm:$0xf]  ;;  %v4399_v36 = vld [vmem:[#allocation4 + $0xcc] sm:$0xf0] }
 0x252   :  { %v4566_v2 = vpop.eup %4565  ;;  %v3764_v49 = vor.u32 %v4399_v36, %v3763_v41  ;;  %v3771_v51 = vld [vmem:[#allocation4 + $0xc8] sm:$0xf]  ;;  %v4388_v36 = vld [vmem:[#allocation4 + $0x74] sm:$0xf0] }
 0x253   :  { %v1235_v35 = vadd.f32 1.0, %v4566_v2  ;;  %v3723_v41 = vld [vmem:[#allocation4 + $0x68] sm:$0xf] }
 0x254   :  { %v4568_v37 = vpop.eup %4567 }
 0x255   :  { %v4570_v43 = vpop.eup %4569  ;;  %v1237_v39 = vmul.f32 %v4568_v37, %v1233_v32  ;;  %4571 = vrcp.f32 %v1235_v35  ;;  %vm1242_vm9 = vweird.f32 %v4568_v37  ;;  %v1277_v20 = vand.u32 2147483648, %v1235_v35 }
 0x256   :  { %v1252_v42 = vmul.f32 %v4570_v43, %v1234_v59  ;;  %4573 = vtanh.f32 %v1223_v9  ;;  %vm1257_vm10 = vweird.f32 %v4570_v43  ;;  %vm1243_vm13 = vmor %vm1241_vm11, %vm1242_vm9  ;;  %vm1271_vm2 = vweird.f32 %v1235_v35  ;;  %v3787_v9 = vld [vmem:[#allocation4 + $0xe8] sm:$0xf] }
 0x257   :  { %v1238_v57 = vsub.f32 1.0, %v1237_v39  ;;  %vm1258_vm14 = vmor %vm1256_vm12, %vm1257_vm10  ;;  %v1275_v26 = vand.u32 2147483647, %v1235_v35  ;;  %v1278_v62 = vor.u32 1.1754944e-38, %v1277_v20  ;;  %v3757_v20 = vld [vmem:[#allocation4 + $0xb8] sm:$0xf0] }
 0x258   :  { %v1253_v60 = vsub.f32 1.0, %v1252_v42  ;;  %v4402_v42 = vld [vmem:[#allocation4 + $0xec] sm:$0xf] }
 0x259   :  { %v1239_v47 = vmul.f32 %v4568_v37, %v1238_v57  ;;  %vm1276_vm4 = vcmp.eq.f32.partialorder %v1275_v26, 8.507059e+37  ;;  %v3789_v57 = vld [vmem:[#allocation4 + $0xf8] sm:$0xf0] }
 0x25a   :  { %v1254_v50 = vmul.f32 %v4570_v43, %v1253_v60  ;;  %v3792_v60 = vor.u32 %v4402_v42, %v3789_v57  ;;  %v194_v42 = vadd.f32 %v5099_v11, %v5058_v44  ;;  %v4383_v11 = vld [vmem:[#allocation4 + $0x4c] sm:$0xf0] }
 0x25b   :  { %v4572_v61 = vpop.eup %4571  ;;  %v1240_v63 = vadd.f32 %v4568_v37, %v1239_v47  ;;  %v4397_v47 = vld [vmem:[#allocation4 + $0xc4] sm:$0xf] }
 0x25c   :  { %v1267_v12 = vmul.f32 %v4572_v61, %v1235_v35  ;;  %v1255_v3 = vadd.f32 %v4570_v43, %v1254_v50  ;;  %v4574_v46 = vpop.eup %4573  ;;  %vm1272_vm1 = vweird.f32 %v4572_v61  ;;  %v4404_v35 = vld [vmem:[#allocation4 + $0xf4] sm:$0xf0]  ;;  %1849 = vmatpush.bf16.msra.mxu3 %v3792_v60  ;;  %v3765_v50 = vld [vmem:[#allocation4 + $0xd0] sm:$0xf0] }
 0x25d   :  { %v1244_v4 = vsel %vm1243_vm13, %v4568_v37, %v1240_v63  ;;  %vm1273_vm3 = vmor %vm1271_vm2, %vm1272_vm1  ;;  %v3781_v37 = vld [vmem:[#allocation4 + $0xf0] sm:$0xf0]  ;;  %v3788_v39 = vor.u32 %v4404_v35, %v3787_v9  ;;  %v3768_v63 = vor.u32 %v4397_v47, %v3765_v50  ;;  %v3715_v35 = vld [vmem:[#allocation4 + $0x60] sm:$0xf] }
 0x25e   :  { %v1268_v6 = vsub.f32 1.0, %v1267_v12  ;;  %v1249_v58 = vsel %vm1246_vm15, %v1248_v48, %v1244_v4  ;;  %v1259_v8 = vsel %vm1258_vm14, %v4570_v43, %v1255_v3  ;;  %v3784_v43 = vor.u32 %v4401_v0, %v3781_v37  ;;  %v4398_v48 = vld [vmem:[#allocation4 + $0xcc] sm:$0xf]  ;;  %v3773_v3 = vld [vmem:[#allocation4 + $0xd8] sm:$0xf0] }
 0x25f   :  { %v1264_v10 = vsel %vm1261_vm0, %v1263_v56, %v1259_v8  ;;  %v1283_v14 = vmul.f32 %v4574_v46, %v1249_v58  ;;  %1836 = vmatpush.bf16.msra.mxu2 %v3788_v39  ;;  %v3776_v56 = vor.u32 %v4398_v48, %v3773_v3  ;;  %v3747_v4 = vld [vmem:[#allocation4 + $0xa0] sm:$0xf]  ;;  %v4395_v46 = vld [vmem:[#allocation4 + $0xac] sm:$0xf0]  ;;  %v3749_v8 = vld [vmem:[#allocation4 + $0xb0] sm:$0xf0] }
 0x260   :  { %v1269_v16 = vmul.f32 %v4572_v61, %v1268_v6  ;;  %v1282_v22 = vmul.f32 %v1264_v10, %v5108_v31  ;;  %v3779_v31 = vld [vmem:[#allocation4 + $0xe0] sm:$0xf]  ;;  %1823 = vmatpush.bf16.msra.mxu1 %v3784_v43  ;;  %v4393_v6 = vld [vmem:[#allocation4 + $0xa4] sm:$0xf]  ;;  %v3748_v58 = vor.u32 %v4395_v46, %v3747_v4  ;;  %v3755_v10 = vld [vmem:[#allocation4 + $0xa8] sm:$0xf] }
 0x261   :  { %v3780_v2 = vor.u32 %v4403_v1, %v3779_v31  ;;  %1850 = vmatpush.bf16.msra.mxu3 %v3776_v56  ;;  %v4392_v31 = vld [vmem:[#allocation4 + $0x94] sm:$0xf0]  ;;  %v3741_v37 = vld [vmem:[#allocation4 + $0x98] sm:$0xf0]  ;;  %v4387_v43 = vld [vmem:[#allocation4 + $0x6c] sm:$0xf0] }
 0x262   :  { %v5117_v28 = vadd.f32 %v1283_v14, %v1282_v22  ;;  %v1270_v29 = vadd.f32 %v4572_v61, %v1269_v16  ;;  %v4396_v14 = vld [vmem:[#allocation4 + $0xb4] sm:$0xf0]  ;;  %v3752_v16 = vor.u32 %v4393_v6, %v3749_v8  ;;  %v4385_v39 = vld [vmem:[#allocation4 + $0x64] sm:$0xf]  ;;  %v3716_v57 = vor.u32 %v4387_v43, %v3715_v35  ;;  %v3717_v60 = vld [vmem:[#allocation4 + $0x70] sm:$0xf0] }
 0x263   :  { %1810 = vmatpush.bf16.msra.mxu0 %v3780_v2  ;;  %v3756_v22 = vor.u32 %v4396_v14, %v3755_v10  ;;  %v4390_v2 = vld [vmem:[#allocation4 + $0x8c] sm:$0xf]  ;;  %v3720_v50 = vor.u32 %v4385_v39, %v3717_v60  ;;  %v3699_v56 = vld [vmem:[#allocation4 + $0x40] sm:$0xf]  ;;  %v4381_v4 = vld [vmem:[#allocation4 + $0x44] sm:$0xf] }
 0x264   :  { %4575 = vtanh.f32 %v5117_v28  ;;  %v1274_v30 = vsel %vm1273_vm3, %v4572_v61, %v1270_v29  ;;  %v4400_v61 = vld [vmem:[#allocation4 + $0xd4] sm:$0xf0]  ;;  %1824 = vmatpush.bf16.msra.mxu1 %v3768_v63  ;;  %v4394_v29 = vld [vmem:[#allocation4 + $0xac] sm:$0xf]  ;;  %v3744_v9 = vor.u32 %v4390_v2, %v3741_v37  ;;  %v3725_v63 = vld [vmem:[#allocation4 + $0x78] sm:$0xf0] }
 0x265   :  { %v1279_v32 = vsel %vm1276_vm4, %v1278_v62, %v1274_v30  ;;  %v3772_v12 = vor.u32 %v4400_v61, %v3771_v51  ;;  %v3760_v26 = vor.u32 %v4394_v29, %v3757_v20  ;;  %v3731_v30 = vld [vmem:[#allocation4 + $0x80] sm:$0xf]  ;;  %v4391_v62 = vld [vmem:[#allocation4 + $0x8c] sm:$0xf0]  ;;  %v3724_v51 = vor.u32 %v4388_v36, %v3723_v41  ;;  %v4386_v61 = vld [vmem:[#allocation4 + $0x6c] sm:$0xf] }
 0x266   :  { %v3728_v3 = vor.u32 %v4386_v61, %v3725_v63  ;;  %v3701_v8 = vld [vmem:[#allocation4 + $0x50] sm:$0xf0]  ;;  %v3707_v14 = vld [vmem:[#allocation4 + $0x48] sm:$0xf]  ;;  %v3683_v20 = vld [vmem:[#allocation4 + $0x20] sm:$0xf] }
 0x267   :  { %1811 = vmatpush.bf16.msra.mxu0 %v3764_v49  ;;  %1837 = vmatpush.bf16.msra.mxu2 %v3772_v12  ;;  %v3704_v10 = vor.u32 %v4381_v4, %v3701_v8  ;;  %v4378_v2 = vld [vmem:[#allocation4 + $0x2c] sm:$0xf]  ;;  %v3693_v37 = vld [vmem:[#allocation4 + $0x38] sm:$0xf0]  ;;  %v4375_v60 = vld [vmem:[#allocation4 + $0xc] sm:$0xf0] }
 0x268   :  { %1825 = vmatpush.bf16.msra.mxu1 %v3752_v16  ;;  %1851 = vmatpush.bf16.msra.mxu3 %v3760_v26  ;;  %v4384_v16 = vld [vmem:[#allocation4 + $0x54] sm:$0xf0]  ;;  %v4379_v26 = vld [vmem:[#allocation4 + $0x2c] sm:$0xf0]  ;;  %v4373_v41 = vld [vmem:[#allocation4 + $0x4] sm:$0xf] }
 0x269   :  { %v3708_v29 = vor.u32 %v4384_v16, %v3707_v14  ;;  %v4374_v63 = vld [vmem:[#allocation4 + $0xc] sm:$0xf] }
 0x26a   :  { %v4576_v53 = vpop.eup %4575 }
 0x26b   :  { %v1286_v34 = vmul.f32 %v4576_v53, %v1279_v32  ;;  %1812 = vmatpush.bf16.msra.mxu0 %v3748_v58  ;;  %1838 = vmatpush.bf16.msra.mxu2 %v3756_v22  ;;  %v4389_v53 = vld [vmem:[#allocation4 + $0x84] sm:$0xf]  ;;  %v3732_v32 = vor.u32 %v4391_v62, %v3731_v30  ;;  %v3700_v58 = vor.u32 %v4383_v11, %v3699_v56  ;;  %v4382_v22 = vld [vmem:[#allocation4 + $0x4c] sm:$0xf] }
 0x26c   :  { %1852 = vmatpush.bf16.msra.mxu3 %v3744_v9  ;;  %v3684_v62 = vor.u32 %v4379_v26, %v3683_v20 }
 0x26d   :  { %v1287_v59 = vpack.c.bf16 %v1286_v34, %v1286_v34  ;;  %v3733_v34 = vld [vmem:[#allocation4 + $0x90] sm:$0xf0] }
 0x26e   :  { %v3736_v1 = vor.u32 %v4389_v53, %v3733_v34  ;;  %v4377_v53 = vld [vmem:[#allocation4 + $0x24] sm:$0xf]  ;;  %v3691_v34 = vld [vmem:[#allocation4 + $0x28] sm:$0xf] }
 0x26f   :  { %1289 = vst [vmem:[#allocation3 + $0x8] sm:$0xf] %v1287_v59  ;;  %1497 = vmatmul.bf16.vlgmr.msrb.gmra.mxu0 %v1287_v59  ;;  %1510 = vmatmul.bf16.vlgmr.msrb.gmra.mxu1 %v1287_v59 }
 0x270   :  { %1523 = vmatmul.bf16.vlgmr.msrb.gmra.mxu2 %v1287_v59  ;;  %1536 = vmatmul.bf16.vlgmr.msrb.gmra.mxu3 %v1287_v59  ;;  %v3739_v59 = vld [vmem:[#allocation4 + $0x88] sm:$0xf] }
 0x271   :  { %v3740_v0 = vor.u32 %v4392_v31, %v3739_v59  ;;  %1813 = vmatpush.bf16.msra.mxu0 %v3732_v32  ;;  %1826 = vmatpush.bf16.msra.mxu1 %v3736_v1  ;;  %v3685_v32 = vld [vmem:[#allocation4 + $0x30] sm:$0xf0] }
 0x272   :  { %1853 = vmatpush.bf16.msra.mxu3 %v3728_v3  ;;  %v3688_v1 = vor.u32 %v4377_v53, %v3685_v32 }
 0x273   :  { %1839 = vmatpush.bf16.msra.mxu2 %v3740_v0  ;;  %v4380_v0 = vld [vmem:[#allocation4 + $0x34] sm:$0xf0] }
 0x274   :  { %v3692_v39 = vor.u32 %v4380_v0, %v3691_v34 }
 0x275   :  { %1814 = vmatpush.bf16.msra.mxu0 %v3716_v57  ;;  %1827 = vmatpush.bf16.msra.mxu1 %v3720_v50  ;;  %v3667_v57 = vld [vmem:[#allocation4] sm:$0xf]  ;;  %v4376_v50 = vld [vmem:[#allocation4 + $0x14] sm:$0xf0] }
 0x276   :  { %v3668_v36 = vor.u32 %v4375_v60, %v3667_v57 }
 0x277   :  { %1840 = vmatpush.bf16.msra.mxu2 %v3724_v51 }
 0x279   :  { %1815 = vmatpush.bf16.msra.mxu0 %v3700_v58  ;;  %1828 = vmatpush.bf16.msra.mxu1 %v3704_v10 }
 0x27b   :  { %1841 = vmatpush.bf16.msra.mxu2 %v3708_v29 }
 0x27d   :  { %1816 = vmatpush.bf16.msra.mxu0 %v3684_v62  ;;  %1829 = vmatpush.bf16.msra.mxu1 %v3688_v1 }
 0x27f   :  { %1842 = vmatpush.bf16.msra.mxu2 %v3692_v39 }
 0x281   :  { %1817 = vmatpush.bf16.msra.mxu0 %v3668_v36 }
 0x2ec   :  { %v1498_v47 = vpop.f32.mrf.mxu0  ;;  %v1511_v49 = vpop.f32.mrf.mxu1 }
 0x2ed   :  { %v1541_v12 = vadd.f32 %v1498_v47, %v194_v42  ;;  %v1542_v48 = vadd.f32 %v1511_v49, %v5032_v15  ;;  %v3709_v15 = vld [vmem:[#allocation4 + $0x58] sm:$0xf0]  ;;  %v3696_v42 = vor.u32 %v4378_v2, %v3693_v37  ;;  %v3669_v47 = vld [vmem:[#allocation4 + $0x10] sm:$0xf0]  ;;  %v3675_v49 = vld [vmem:[#allocation4 + $0x8] sm:$0xf] }
 0x2ee   :  { %v3712_v30 = vor.u32 %v4382_v22, %v3709_v15  ;;  %v3672_v61 = vor.u32 %v4373_v41, %v3669_v47 }
 0x2ef   :  { %v3662_v46 = vmul.f32 -1.442695, %v1541_v12  ;;  %v3663_v6 = vmul.f32 -1.442695, %v1542_v48  ;;  %v3677_v12 = vld [vmem:[#allocation4 + $0x18] sm:$0xf0] }
 0x2f0   :  { %1854 = vmatpush.bf16.msra.mxu3 %v3712_v30  ;;  %v3680_v11 = vor.u32 %v4374_v63, %v3677_v12  ;;  %1830 = vmatpush.bf16.msra.mxu1 %v3672_v61 }
 0x2f1   :  { %4577 = vpow2.f32 %v3662_v46 }
 0x2f2   :  { %4579 = vpow2.f32 %v3663_v6 }
 0x2f3   :  { %v1524_v59 = vpop.f32.mrf.mxu2  ;;  %v1537_v31 = vpop.f32.mrf.mxu3 }
 0x2f4   :  { %v1543_v9 = vadd.f32 %v1524_v59, %v5020_v7  ;;  %v1500_v35 = vpop.f32.mrf.mxu0  ;;  %v1513_v43 = vpop.f32.mrf.mxu1  ;;  %v3676_v7 = vor.u32 %v4376_v50, %v3675_v49  ;;  %1855 = vmatpush.bf16.msra.mxu3 %v3696_v42  ;;  %v1544_v14 = vadd.f32 %v1537_v31, %v5035_v18 }
 0x2f6   :  { %v3664_v51 = vmul.f32 -1.442695, %v1543_v9  ;;  %1843 = vmatpush.bf16.msra.mxu2 %v3676_v7 }
 0x2f7   :  { %v4578_v48 = vpop.eup %4577 }
 0x2f8   :  { %v4580_v3 = vpop.eup %4579  ;;  %v1554_v56 = vadd.f32 1.0, %v4578_v48  ;;  %4581 = vpow2.f32 %v3664_v51  ;;  %1856 = vmatpush.bf16.msra.mxu3 %v3680_v11 }
 0x2f9   :  { %v1555_v4 = vadd.f32 1.0, %v4580_v3  ;;  %v4435_v3 = vld [vmem:[#allocation4 + $0xec] sm:$0xf0] }
 0x2fa   :  { %4583 = vrcp.f32 %v1554_v56  ;;  %v1568_v26 = vand.u32 2147483648, %v1554_v56  ;;  %v1566_v53 = vand.u32 2147483647, %v1554_v56  ;;  %vm1562_vm7 = vweird.f32 %v1554_v56 }
 0x2fb   :  { %4585 = vrcp.f32 %v1555_v4  ;;  %v1526_v46 = vpop.f32.mrf.mxu2  ;;  %v1539_v6 = vpop.f32.mrf.mxu3  ;;  %v1583_v30 = vand.u32 2147483648, %v1555_v4  ;;  %v1581_v34 = vand.u32 2147483647, %v1555_v4  ;;  %vm1577_vm8 = vweird.f32 %v1555_v4 }
 0x2fc   :  { %v1569_v31 = vor.u32 1.1754944e-38, %v1568_v26  ;;  %vm1567_vm11 = vcmp.eq.f32.partialorder %v1566_v53, 8.507059e+37  ;;  %v3918_v46 = vld [vmem:[#allocation4 + $0xe8] sm:$0xf]  ;;  %v4436_v6 = vld [vmem:[#allocation4 + $0xf4] sm:$0xf0] }
 0x2fd   :  { %v1584_v2 = vor.u32 1.1754944e-38, %v1583_v30  ;;  %vm1582_vm12 = vcmp.eq.f32.partialorder %v1581_v34, 8.507059e+37  ;;  %v3896_v26 = vld [vmem:[#allocation4 + $0xd0] sm:$0xf0]  ;;  %v3902_v30 = vld [vmem:[#allocation4 + $0xc8] sm:$0xf] }
 0x2fe   :  { %v4582_v58 = vpop.eup %4581  ;;  %v4430_v34 = vld [vmem:[#allocation4 + $0xcc] sm:$0xf] }
 0x2ff   :  { %v1556_v8 = vadd.f32 1.0, %v4582_v58 }
 0x300   :  { %v4584_v10 = vpop.eup %4583 }
 0x301   :  { %v4586_v16 = vpop.eup %4585  ;;  %v1558_v22 = vmul.f32 %v4584_v10, %v1554_v56  ;;  %4587 = vrcp.f32 %v1556_v8  ;;  %vm1563_vm5 = vweird.f32 %v4584_v10  ;;  %v1598_v49 = vand.u32 2147483648, %v1556_v8  ;;  %v4433_v56 = vld [vmem:[#allocation4 + $0xe4] sm:$0xf] }
 0x302   :  { %v1573_v29 = vmul.f32 %v4586_v16, %v1555_v4  ;;  %4589 = vtanh.f32 %v1544_v14  ;;  %vm1578_vm6 = vweird.f32 %v4586_v16  ;;  %vm1564_vm9 = vmor %vm1562_vm7, %vm1563_vm5  ;;  %vm1592_vm14 = vweird.f32 %v1556_v8  ;;  %v3912_v4 = vld [vmem:[#allocation4 + $0xf0] sm:$0xf0]  ;;  %v3920_v14 = vld [vmem:[#allocation4 + $0xf8] sm:$0xf0] }
 0x303   :  { %v1559_v15 = vsub.f32 1.0, %v1558_v22  ;;  %vm1579_vm10 = vmor %vm1577_vm8, %vm1578_vm6  ;;  %v1596_v50 = vand.u32 2147483647, %v1556_v8  ;;  %v1599_v61 = vor.u32 1.1754944e-38, %v1598_v49  ;;  %v3915_v58 = vor.u32 %v4433_v56, %v3912_v4  ;;  %v3894_v22 = vld [vmem:[#allocation4 + $0xc0] sm:$0xf] }
 0x304   :  { %v1574_v20 = vsub.f32 1.0, %v1573_v29  ;;  %v4431_v29 = vld [vmem:[#allocation4 + $0xcc] sm:$0xf0]  ;;  %v4421_v49 = vld [vmem:[#allocation4 + $0x84] sm:$0xf] }
 0x305   :  { %v1560_v62 = vmul.f32 %v4584_v10, %v1559_v15  ;;  %vm1597_vm0 = vcmp.eq.f32.partialorder %v1596_v50, 8.507059e+37  ;;  %2144 = vmatpush.bf16.msrb.mxu1 %v3915_v58  ;;  %v4429_v15 = vld [vmem:[#allocation4 + $0xc4] sm:$0xf]  ;;  %v3846_v56 = vld [vmem:[#allocation4 + $0x60] sm:$0xf] }
 0x306   :  { %v1575_v32 = vmul.f32 %v4586_v16, %v1574_v20  ;;  %v3895_v20 = vor.u32 %v4431_v29, %v3894_v22  ;;  %v3899_v53 = vor.u32 %v4429_v15, %v3896_v26  ;;  %v4417_v4 = vld [vmem:[#allocation4 + $0x64] sm:$0xf]  ;;  %v3848_v58 = vld [vmem:[#allocation4 + $0x70] sm:$0xf0]  ;;  %v4418_v15 = vld [vmem:[#allocation4 + $0x6c] sm:$0xf] }
 0x307   :  { %v4588_v59 = vpop.eup %4587  ;;  %v1561_v1 = vadd.f32 %v4584_v10, %v1560_v62  ;;  %v4432_v62 = vld [vmem:[#allocation4 + $0xd4] sm:$0xf0]  ;;  %v3851_v22 = vor.u32 %v4417_v4, %v3848_v58  ;;  %v4405_v4 = vld [vmem:[#allocation4 + $0x4] sm:$0xf]  ;;  %v3806_v58 = vld [vmem:[#allocation4 + $0x8] sm:$0xf] }
 0x308   :  { %v1588_v18 = vmul.f32 %v4588_v59, %v1556_v8  ;;  %v1576_v0 = vadd.f32 %v4586_v16, %v1575_v32  ;;  %v4590_v9 = vpop.eup %4589  ;;  %vm1593_vm13 = vweird.f32 %v4588_v59  ;;  %v3919_v8 = vor.u32 %v4436_v6, %v3918_v46 }
 0x309   :  { %v1565_v37 = vsel %vm1564_vm9, %v4584_v10, %v1561_v1  ;;  %vm1594_vm15 = vmor %vm1592_vm14, %vm1593_vm13  ;;  %v4434_v10 = vld [vmem:[#allocation4 + $0xec] sm:$0xf]  ;;  %v3903_v32 = vor.u32 %v4432_v62, %v3902_v30  ;;  %2145 = vmatpush.bf16.msrb.mxu1 %v3899_v53  ;;  %v197_v46 = vadd.f32 %v4988_v5, %v5058_v44  ;;  %v3830_v53 = vld [vmem:[#allocation4 + $0x40] sm:$0xf] }
 0x30a   :  { %v1589_v35 = vsub.f32 1.0, %v1588_v18  ;;  %v1570_v43 = vsel %vm1567_vm11, %v1569_v31, %v1565_v37  ;;  %v1580_v39 = vsel %vm1579_vm10, %v4586_v16, %v1576_v0  ;;  %v3923_v16 = vor.u32 %v4434_v10, %v3920_v14  ;;  %2157 = vmatpush.bf16.msrb.mxu2 %v3919_v8  ;;  %v3878_v18 = vld [vmem:[#allocation4 + $0xa0] sm:$0xf]  ;;  %v4427_v31 = vld [vmem:[#allocation4 + $0xac] sm:$0xf0] }
 0x30b   :  { %v1585_v42 = vsel %vm1582_vm12, %v1584_v2, %v1580_v39  ;;  %v1604_v57 = vmul.f32 %v4590_v9, %v1570_v43  ;;  %v4425_v0 = vld [vmem:[#allocation4 + $0xa4] sm:$0xf]  ;;  %v3879_v2 = vor.u32 %v4427_v31, %v3878_v18  ;;  %v3880_v37 = vld [vmem:[#allocation4 + $0xb0] sm:$0xf0]  ;;  %v3886_v9 = vld [vmem:[#allocation4 + $0xa8] sm:$0xf] }
 0x30c   :  { %v1590_v60 = vmul.f32 %v4588_v59, %v1589_v35  ;;  %v1603_v41 = vmul.f32 %v1585_v42, %v5117_v28  ;;  %v3910_v28 = vld [vmem:[#allocation4 + $0xe0] sm:$0xf]  ;;  %2170 = vmatpush.bf16.msrb.mxu3 %v3923_v16  ;;  %v4428_v35 = vld [vmem:[#allocation4 + $0xb4] sm:$0xf0]  ;;  %v3883_v43 = vor.u32 %v4425_v0, %v3880_v37  ;;  %v4426_v42 = vld [vmem:[#allocation4 + $0xac] sm:$0xf] }
 0x30d   :  { %v3911_v11 = vor.u32 %v4435_v3, %v3910_v28  ;;  %v3887_v39 = vor.u32 %v4428_v35, %v3886_v9  ;;  %v3872_v28 = vld [vmem:[#allocation4 + $0x98] sm:$0xf0]  ;;  %v3854_v8 = vld [vmem:[#allocation4 + $0x68] sm:$0xf]  ;;  %v4420_v10 = vld [vmem:[#allocation4 + $0x74] sm:$0xf0] }
 0x30e   :  { %v5126_v36 = vadd.f32 %v1604_v57, %v1603_v41  ;;  %v1591_v47 = vadd.f32 %v4588_v59, %v1590_v60  ;;  %2158 = vmatpush.bf16.msrb.mxu2 %v3903_v32  ;;  %v3888_v57 = vld [vmem:[#allocation4 + $0xb8] sm:$0xf0]  ;;  %2146 = vmatpush.bf16.msrb.mxu1 %v3883_v43  ;;  %v3862_v41 = vld [vmem:[#allocation4 + $0x80] sm:$0xf]  ;;  %v3855_v29 = vor.u32 %v4420_v10, %v3854_v8  ;;  %v4415_v5 = vld [vmem:[#allocation4 + $0x4c] sm:$0xf0] }
 0x30f   :  { %2131 = vmatpush.bf16.msrb.mxu0 %v3911_v11  ;;  %v3891_v60 = vor.u32 %v4426_v42, %v3888_v57  ;;  %v4419_v11 = vld [vmem:[#allocation4 + $0x6c] sm:$0xf0]  ;;  %v4413_v32 = vld [vmem:[#allocation4 + $0x44] sm:$0xf]  ;;  %v3832_v18 = vld [vmem:[#allocation4 + $0x50] sm:$0xf0] }
 0x310   :  { %4591 = vtanh.f32 %v5126_v36  ;;  %v1595_v51 = vsel %vm1594_vm15, %v4588_v59, %v1591_v47  ;;  %v3904_v59 = vld [vmem:[#allocation4 + $0xd8] sm:$0xf0]  ;;  %v4423_v47 = vld [vmem:[#allocation4 + $0x8c] sm:$0xf0]  ;;  %v3847_v6 = vor.u32 %v4419_v11, %v3846_v56  ;;  %v3835_v31 = vor.u32 %v4413_v32, %v3832_v18  ;;  %v3838_v0 = vld [vmem:[#allocation4 + $0x48] sm:$0xf] }
 0x311   :  { %v1600_v12 = vsel %vm1597_vm0, %v1599_v61, %v1595_v51  ;;  %v3907_v1 = vor.u32 %v4430_v34, %v3904_v59  ;;  %v3863_v50 = vor.u32 %v4423_v47, %v3862_v41  ;;  %v3864_v51 = vld [vmem:[#allocation4 + $0x90] sm:$0xf0]  ;;  %v3870_v61 = vld [vmem:[#allocation4 + $0x88] sm:$0xf]  ;;  %v4414_v37 = vld [vmem:[#allocation4 + $0x4c] sm:$0xf] }
 0x312   :  { %2159 = vmatpush.bf16.msrb.mxu2 %v3887_v39  ;;  %v3814_v35 = vld [vmem:[#allocation4 + $0x20] sm:$0xf]  ;;  %v4411_v43 = vld [vmem:[#allocation4 + $0x2c] sm:$0xf0]  ;;  %v4409_v57 = vld [vmem:[#allocation4 + $0x24] sm:$0xf] }
 0x313   :  { %2132 = vmatpush.bf16.msrb.mxu0 %v3895_v20  ;;  %2171 = vmatpush.bf16.msrb.mxu3 %v3907_v1  ;;  %v3856_v20 = vld [vmem:[#allocation4 + $0x78] sm:$0xf0]  ;;  %v3831_v1 = vor.u32 %v4415_v5, %v3830_v53  ;;  %v3815_v42 = vor.u32 %v4411_v43, %v3814_v35  ;;  %v3822_v41 = vld [vmem:[#allocation4 + $0x28] sm:$0xf]  ;;  %v3798_v56 = vld [vmem:[#allocation4] sm:$0xf] }
 0x314   :  { %v3859_v62 = vor.u32 %v4418_v15, %v3856_v20  ;;  %v4407_v11 = vld [vmem:[#allocation4 + $0xc] sm:$0xf0]  ;;  %v4408_v8 = vld [vmem:[#allocation4 + $0x14] sm:$0xf0] }
 0x316   :  { %v4592_v63 = vpop.eup %4591 }
 0x317   :  { %v1607_v48 = vmul.f32 %v4592_v63, %v1600_v12  ;;  %2133 = vmatpush.bf16.msrb.mxu0 %v3879_v2  ;;  %2172 = vmatpush.bf16.msrb.mxu3 %v3891_v60  ;;  %v4424_v63 = vld [vmem:[#allocation4 + $0x94] sm:$0xf0]  ;;  %v3867_v12 = vor.u32 %v4421_v49, %v3864_v51  ;;  %v3816_v60 = vld [vmem:[#allocation4 + $0x30] sm:$0xf0] }
 0x318   :  { %v4416_v2 = vld [vmem:[#allocation4 + $0x54] sm:$0xf0] }
 0x319   :  { %v1608_v7 = vpack.c.bf16 %v1607_v48, %v1607_v48  ;;  %v3871_v48 = vor.u32 %v4424_v63, %v3870_v61  ;;  %2147 = vmatpush.bf16.msrb.mxu1 %v3867_v12  ;;  %v3839_v9 = vor.u32 %v4416_v2, %v3838_v0  ;;  %v4412_v51 = vld [vmem:[#allocation4 + $0x34] sm:$0xf0]  ;;  %v4410_v61 = vld [vmem:[#allocation4 + $0x2c] sm:$0xf]  ;;  %v3824_v63 = vld [vmem:[#allocation4 + $0x38] sm:$0xf0] }
 0x31b   :  { %1610 = vst [vmem:[#allocation3 + $0xc] sm:$0xf] %v1608_v7  ;;  %1818 = vmatmul.bf16.vlgmr.msra.gmra.mxu0 %v1608_v7  ;;  %1831 = vmatmul.bf16.vlgmr.msra.gmra.mxu1 %v1608_v7 }
 0x31c   :  { %1844 = vmatmul.bf16.vlgmr.msra.gmra.mxu2 %v1608_v7  ;;  %1857 = vmatmul.bf16.vlgmr.msra.gmra.mxu3 %v1608_v7  ;;  %v4422_v7 = vld [vmem:[#allocation4 + $0x8c] sm:$0xf] }
 0x31d   :  { %2134 = vmatpush.bf16.msrb.mxu0 %v3863_v50  ;;  %v3875_v3 = vor.u32 %v4422_v7, %v3872_v28  ;;  %2160 = vmatpush.bf16.msrb.mxu2 %v3871_v48  ;;  %v3819_v50 = vor.u32 %v4409_v57, %v3816_v60  ;;  %v3823_v28 = vor.u32 %v4412_v51, %v3822_v41 }
 0x31e   :  { %2148 = vmatpush.bf16.msrb.mxu1 %v3851_v22  ;;  %v3808_v22 = vld [vmem:[#allocation4 + $0x18] sm:$0xf0] }
 0x31f   :  { %2173 = vmatpush.bf16.msrb.mxu3 %v3875_v3  ;;  %v3827_v3 = vor.u32 %v4410_v61, %v3824_v63 }
 0x321   :  { %2135 = vmatpush.bf16.msrb.mxu0 %v3847_v6  ;;  %2161 = vmatpush.bf16.msrb.mxu2 %v3855_v29  ;;  %v3800_v6 = vld [vmem:[#allocation4 + $0x10] sm:$0xf0] }
 0x322   :  { %2149 = vmatpush.bf16.msrb.mxu1 %v3835_v31 }
 0x323   :  { %2174 = vmatpush.bf16.msrb.mxu3 %v3859_v62 }
 0x325   :  { %2136 = vmatpush.bf16.msrb.mxu0 %v3831_v1  ;;  %2162 = vmatpush.bf16.msrb.mxu2 %v3839_v9 }
 0x326   :  { %2150 = vmatpush.bf16.msrb.mxu1 %v3819_v50 }
 0x329   :  { %2137 = vmatpush.bf16.msrb.mxu0 %v3815_v42  ;;  %2163 = vmatpush.bf16.msrb.mxu2 %v3823_v28 }
 0x398   :  { %v1819_v14 = vpop.f32.mrf.mxu0  ;;  %v1832_v16 = vpop.f32.mrf.mxu1 }
 0x399   :  { %v1862_v26 = vadd.f32 %v1819_v14, %v197_v46  ;;  %v1863_v30 = vadd.f32 %v1832_v16, %v5041_v21  ;;  %v3840_v21 = vld [vmem:[#allocation4 + $0x58] sm:$0xf0]  ;;  %v3799_v46 = vor.u32 %v4407_v11, %v3798_v56  ;;  %v3803_v14 = vor.u32 %v4405_v4, %v3800_v6  ;;  %v4406_v16 = vld [vmem:[#allocation4 + $0xc] sm:$0xf] }
 0x39a   :  { %v3843_v39 = vor.u32 %v4414_v37, %v3840_v21 }
 0x39b   :  { %v3793_v34 = vmul.f32 -1.442695, %v1862_v26  ;;  %v3794_v59 = vmul.f32 -1.442695, %v1863_v30  ;;  %v3811_v26 = vor.u32 %v4406_v16, %v3808_v22  ;;  %2138 = vmatpush.bf16.msrb.mxu0 %v3799_v46  ;;  %2151 = vmatpush.bf16.msrb.mxu1 %v3803_v14  ;;  %v4467_v16 = vld [vmem:[#allocation4 + $0xec] sm:$0xf0] }
 0x39c   :  { %2175 = vmatpush.bf16.msrb.mxu3 %v3843_v39  ;;  %v4465_v22 = vld [vmem:[#allocation4 + $0xe4] sm:$0xf] }
 0x39d   :  { %4593 = vpow2.f32 %v3793_v34 }
 0x39e   :  { %4595 = vpow2.f32 %v3794_v59 }
 0x39f   :  { %v1845_v47 = vpop.f32.mrf.mxu2  ;;  %v1858_v49 = vpop.f32.mrf.mxu3 }
 0x3a0   :  { %v1864_v12 = vadd.f32 %v1845_v47, %v5029_v13  ;;  %v1821_v48 = vpop.f32.mrf.mxu0  ;;  %v1834_v7 = vpop.f32.mrf.mxu1  ;;  %v3807_v13 = vor.u32 %v4408_v8, %v3806_v58  ;;  %2176 = vmatpush.bf16.msrb.mxu3 %v3827_v3  ;;  %v1865_v59 = vadd.f32 %v1858_v49, %v5044_v24 }
 0x3a2   :  { %v3795_v10 = vmul.f32 -1.442695, %v1864_v12  ;;  %2164 = vmatpush.bf16.msrb.mxu2 %v3807_v13  ;;  %v4043_v13 = vld [vmem:[#allocation4 + $0xf0] sm:$0xf0] }
 0x3a3   :  { %v4594_v29 = vpop.eup %4593 }
 0x3a4   :  { %v4596_v15 = vpop.eup %4595  ;;  %v1875_v20 = vadd.f32 1.0, %v4594_v29  ;;  %4597 = vpow2.f32 %v3795_v10  ;;  %2177 = vmatpush.bf16.msrb.mxu3 %v3811_v26  ;;  %v4046_v26 = vor.u32 %v4465_v22, %v4043_v13  ;;  %v3985_v13 = vld [vmem:[#allocation4 + $0x68] sm:$0xf] }
 0x3a5   :  { %v1876_v30 = vadd.f32 1.0, %v4596_v15  ;;  %v4049_v15 = vld [vmem:[#allocation4 + $0xe8] sm:$0xf] }
 0x3a6   :  { %4599 = vrcp.f32 %v1875_v20  ;;  %v1889_v37 = vand.u32 2147483648, %v1875_v20  ;;  %v1887_v35 = vand.u32 2147483647, %v1875_v20  ;;  %vm1883_vm3 = vweird.f32 %v1875_v20  ;;  %2465 = vmatpush.bf16.msra.mxu1 %v4046_v26 }
 0x3a7   :  { %4601 = vrcp.f32 %v1876_v30  ;;  %v1847_v62 = vpop.f32.mrf.mxu2  ;;  %v1860_v53 = vpop.f32.mrf.mxu3  ;;  %v1904_v9 = vand.u32 2147483648, %v1876_v30  ;;  %v1902_v39 = vand.u32 2147483647, %v1876_v30  ;;  %vm1898_vm4 = vweird.f32 %v1876_v30 }
 0x3a8   :  { %v1890_v60 = vor.u32 1.1754944e-38, %v1889_v37  ;;  %vm1888_vm7 = vcmp.eq.f32.partialorder %v1887_v35, 8.507059e+37  ;;  %v4466_v62 = vld [vmem:[#allocation4 + $0xec] sm:$0xf]  ;;  %v4051_v53 = vld [vmem:[#allocation4 + $0xf8] sm:$0xf0] }
 0x3a9   :  { %v1905_v47 = vor.u32 1.1754944e-38, %v1904_v9  ;;  %vm1903_vm8 = vcmp.eq.f32.partialorder %v1902_v39, 8.507059e+37  ;;  %v4462_v9 = vld [vmem:[#allocation4 + $0xcc] sm:$0xf]  ;;  %v4459_v39 = vld [vmem:[#allocation4 + $0xac] sm:$0xf0] }
 0x3aa   :  { %v4598_v5 = vpop.eup %4597 }
 0x3ab   :  { %v1877_v32 = vadd.f32 1.0, %v4598_v5  ;;  %v4054_v5 = vor.u32 %v4466_v62, %v4051_v53  ;;  %v4450_v53 = vld [vmem:[#allocation4 + $0x6c] sm:$0xf] }
 0x3ac   :  { %v4600_v34 = vpop.eup %4599 }
 0x3ad   :  { %v4602_v1 = vpop.eup %4601  ;;  %v1879_v18 = vmul.f32 %v4600_v34, %v1875_v20  ;;  %4603 = vrcp.f32 %v1877_v32  ;;  %vm1884_vm1 = vweird.f32 %v4600_v34  ;;  %v1919_v11 = vand.u32 2147483648, %v1877_v32  ;;  %v4468_v20 = vld [vmem:[#allocation4 + $0xf4] sm:$0xf0]  ;;  %2491 = vmatpush.bf16.msra.mxu3 %v4054_v5  ;;  %v3987_v5 = vld [vmem:[#allocation4 + $0x78] sm:$0xf0] }
 0x3ae   :  { %v1894_v31 = vmul.f32 %v4602_v1, %v1876_v30  ;;  %4605 = vtanh.f32 %v1865_v59  ;;  %vm1899_vm2 = vweird.f32 %v4602_v1  ;;  %vm1885_vm5 = vmor %vm1883_vm3, %vm1884_vm1  ;;  %vm1913_vm10 = vweird.f32 %v1877_v32  ;;  %v4461_v59 = vld [vmem:[#allocation4 + $0xc4] sm:$0xf] }
 0x3af   :  { %v1880_v0 = vsub.f32 1.0, %v1879_v18  ;;  %vm1900_vm6 = vmor %vm1898_vm4, %vm1899_vm2  ;;  %v1917_v4 = vand.u32 2147483647, %v1877_v32  ;;  %v1920_v6 = vor.u32 1.1754944e-38, %v1919_v11  ;;  %v4050_v30 = vor.u32 %v4468_v20, %v4049_v15  ;;  %v4027_v18 = vld [vmem:[#allocation4 + $0xd0] sm:$0xf0] }
 0x3b0   :  { %v1895_v2 = vsub.f32 1.0, %v1894_v31  ;;  %v4033_v31 = vld [vmem:[#allocation4 + $0xc8] sm:$0xf]  ;;  %v4456_v11 = vld [vmem:[#allocation4 + $0x94] sm:$0xf0] }
 0x3b1   :  { %v1881_v21 = vmul.f32 %v4600_v34, %v1880_v0  ;;  %vm1918_vm12 = vcmp.eq.f32.partialorder %v1917_v4, 8.507059e+37  ;;  %2478 = vmatpush.bf16.msra.mxu2 %v4050_v30  ;;  %v4464_v0 = vld [vmem:[#allocation4 + $0xd4] sm:$0xf0] }
 0x3b2   :  { %v1896_v43 = vmul.f32 %v4602_v1, %v1895_v2  ;;  %v4030_v2 = vor.u32 %v4461_v59, %v4027_v18  ;;  %v4034_v37 = vor.u32 %v4464_v0, %v4033_v31  ;;  %v4452_v15 = vld [vmem:[#allocation4 + $0x74] sm:$0xf0]  ;;  %v3990_v59 = vor.u32 %v4450_v53, %v3987_v5  ;;  %v4445_v18 = vld [vmem:[#allocation4 + $0x44] sm:$0xf] }
 0x3b3   :  { %v4604_v42 = vpop.eup %4603  ;;  %v1882_v57 = vadd.f32 %v4600_v34, %v1881_v21  ;;  %v4035_v21 = vld [vmem:[#allocation4 + $0xd8] sm:$0xf0]  ;;  %v3986_v62 = vor.u32 %v4452_v15, %v3985_v13 }
 0x3b4   :  { %v1909_v24 = vmul.f32 %v4604_v42, %v1877_v32  ;;  %v1897_v41 = vadd.f32 %v4602_v1, %v1896_v43  ;;  %v4606_v50 = vpop.eup %4605  ;;  %vm1914_vm9 = vweird.f32 %v4604_v42  ;;  %v4025_v32 = vld [vmem:[#allocation4 + $0xc0] sm:$0xf]  ;;  %v4038_v35 = vor.u32 %v4462_v9, %v4035_v21  ;;  %2466 = vmatpush.bf16.msra.mxu1 %v4030_v2  ;;  %v3969_v21 = vld [vmem:[#allocation4 + $0x48] sm:$0xf]  ;;  %v3939_v13 = vld [vmem:[#allocation4 + $0x18] sm:$0xf0] }
 0x3b5   :  { %v1886_v49 = vsel %vm1885_vm5, %v4600_v34, %v1882_v57  ;;  %vm1915_vm11 = vmor %vm1913_vm10, %vm1914_vm9  ;;  %v4463_v34 = vld [vmem:[#allocation4 + $0xcc] sm:$0xf0]  ;;  %2479 = vmatpush.bf16.msra.mxu2 %v4034_v37  ;;  %v4009_v43 = vld [vmem:[#allocation4 + $0xa0] sm:$0xf] }
 0x3b6   :  { %v1910_v51 = vsub.f32 1.0, %v1909_v24  ;;  %v1891_v61 = vsel %vm1888_vm7, %v1890_v60, %v1886_v49  ;;  %v1901_v63 = vsel %vm1900_vm6, %v4602_v1, %v1897_v41  ;;  %v4026_v1 = vor.u32 %v4463_v34, %v4025_v32  ;;  %2492 = vmatpush.bf16.msra.mxu3 %v4038_v35  ;;  %v4011_v24 = vld [vmem:[#allocation4 + $0xb0] sm:$0xf0]  ;;  %v4017_v60 = vld [vmem:[#allocation4 + $0xa8] sm:$0xf] }
 0x3b7   :  { %v1906_v12 = vsel %vm1903_vm8, %v1905_v47, %v1901_v63  ;;  %v1925_v48 = vmul.f32 %v4606_v50, %v1891_v61  ;;  %v4010_v57 = vor.u32 %v4459_v39, %v4009_v43  ;;  %v4460_v41 = vld [vmem:[#allocation4 + $0xb4] sm:$0xf0]  ;;  %v4458_v50 = vld [vmem:[#allocation4 + $0xac] sm:$0xf]  ;;  %v3993_v63 = vld [vmem:[#allocation4 + $0x80] sm:$0xf] }
 0x3b8   :  { %v1911_v7 = vmul.f32 %v4604_v42, %v1910_v51  ;;  %v1924_v28 = vmul.f32 %v1906_v12, %v5126_v36  ;;  %v4041_v36 = vld [vmem:[#allocation4 + $0xe0] sm:$0xf]  ;;  %v4018_v49 = vor.u32 %v4460_v41, %v4017_v60  ;;  %v4019_v51 = vld [vmem:[#allocation4 + $0xb8] sm:$0xf0]  ;;  %v4455_v12 = vld [vmem:[#allocation4 + $0x8c] sm:$0xf0] }
 0x3b9   :  { %v4042_v29 = vor.u32 %v4467_v16, %v4041_v36  ;;  %v4022_v61 = vor.u32 %v4458_v50, %v4019_v51  ;;  %v4449_v36 = vld [vmem:[#allocation4 + $0x64] sm:$0xf]  ;;  %v199_v16 = vadd.f32 %v4994_v54, %v5058_v44  ;;  %v4447_v54 = vld [vmem:[#allocation4 + $0x4c] sm:$0xf0]  ;;  %v3963_v37 = vld [vmem:[#allocation4 + $0x50] sm:$0xf0] }
 0x3ba   :  { %v5135_v3 = vadd.f32 %v1925_v48, %v1924_v28  ;;  %v1912_v56 = vadd.f32 %v4604_v42, %v1911_v7  ;;  %2480 = vmatpush.bf16.msra.mxu2 %v4018_v49  ;;  %v4453_v48 = vld [vmem:[#allocation4 + $0x84] sm:$0xf]  ;;  %v3994_v7 = vor.u32 %v4455_v12, %v3993_v63  ;;  %v3995_v28 = vld [vmem:[#allocation4 + $0x90] sm:$0xf0]  ;;  %v3966_v9 = vor.u32 %v4445_v18, %v3963_v37  ;;  %v4448_v35 = vld [vmem:[#allocation4 + $0x54] sm:$0xf0] }
 0x3bb   :  { %2452 = vmatpush.bf16.msra.mxu0 %v4042_v29  ;;  %2493 = vmatpush.bf16.msra.mxu3 %v4022_v61  ;;  %v3998_v4 = vor.u32 %v4453_v48, %v3995_v28  ;;  %v3979_v29 = vld [vmem:[#allocation4 + $0x70] sm:$0xf0]  ;;  %v4446_v43 = vld [vmem:[#allocation4 + $0x4c] sm:$0xf]  ;;  %v3970_v39 = vor.u32 %v4448_v35, %v3969_v21  ;;  %v4441_v41 = vld [vmem:[#allocation4 + $0x24] sm:$0xf] }
 0x3bc   :  { %4607 = vtanh.f32 %v5135_v3  ;;  %v1916_v46 = vsel %vm1915_vm11, %v4604_v42, %v1912_v56  ;;  %v4457_v42 = vld [vmem:[#allocation4 + $0xa4] sm:$0xf]  ;;  %v4001_v56 = vld [vmem:[#allocation4 + $0x88] sm:$0xf]  ;;  %v3982_v30 = vor.u32 %v4449_v36, %v3979_v29  ;;  %v4444_v63 = vld [vmem:[#allocation4 + $0x34] sm:$0xf0] }
 0x3bd   :  { %v1921_v8 = vsel %vm1918_vm12, %v1920_v6, %v1916_v46  ;;  %v4014_v47 = vor.u32 %v4457_v42, %v4011_v24  ;;  %v4002_v46 = vor.u32 %v4456_v11, %v4001_v56  ;;  %v4454_v6 = vld [vmem:[#allocation4 + $0x8c] sm:$0xf]  ;;  %v3945_v42 = vld [vmem:[#allocation4 + $0x20] sm:$0xf]  ;;  %v3953_v49 = vld [vmem:[#allocation4 + $0x28] sm:$0xf] }
 0x3be   :  { %v4442_v12 = vld [vmem:[#allocation4 + $0x2c] sm:$0xf]  ;;  %v3955_v48 = vld [vmem:[#allocation4 + $0x38] sm:$0xf0]  ;;  %v3954_v11 = vor.u32 %v4444_v63, %v3953_v49  ;;  %v4440_v36 = vld [vmem:[#allocation4 + $0x14] sm:$0xf0] }
 0x3bf   :  { %2453 = vmatpush.bf16.msra.mxu0 %v4026_v1  ;;  %2467 = vmatpush.bf16.msra.mxu1 %v4014_v47  ;;  %v3961_v1 = vld [vmem:[#allocation4 + $0x40] sm:$0xf]  ;;  %v3947_v47 = vld [vmem:[#allocation4 + $0x30] sm:$0xf0]  ;;  %v4438_v29 = vld [vmem:[#allocation4 + $0xc] sm:$0xf] }
 0x3c0   :  { %2481 = vmatpush.bf16.msra.mxu2 %v4002_v46  ;;  %v3962_v2 = vor.u32 %v4447_v54, %v3961_v1  ;;  %v3950_v61 = vor.u32 %v4441_v41, %v3947_v47  ;;  %v3929_v46 = vld [vmem:[#allocation4] sm:$0xf] }
 0x3c2   :  { %v4608_v58 = vpop.eup %4607 }
 0x3c3   :  { %v1928_v10 = vmul.f32 %v4608_v58, %v1921_v8  ;;  %2454 = vmatpush.bf16.msra.mxu0 %v4010_v57  ;;  %v4003_v58 = vld [vmem:[#allocation4 + $0x98] sm:$0xf0]  ;;  %2468 = vmatpush.bf16.msra.mxu1 %v3998_v4  ;;  %v4443_v57 = vld [vmem:[#allocation4 + $0x2c] sm:$0xf0]  ;;  %v3958_v4 = vor.u32 %v4442_v12, %v3955_v48 }
 0x3c4   :  { %v4006_v8 = vor.u32 %v4454_v6, %v4003_v58  ;;  %2482 = vmatpush.bf16.msra.mxu2 %v3986_v62  ;;  %v3946_v60 = vor.u32 %v4443_v57, %v3945_v42  ;;  %v4439_v6 = vld [vmem:[#allocation4 + $0xc] sm:$0xf0]  ;;  %v4437_v58 = vld [vmem:[#allocation4 + $0x4] sm:$0xf] }
 0x3c5   :  { %v1929_v14 = vpack.c.bf16 %v1928_v10, %v1928_v10  ;;  %v3977_v10 = vld [vmem:[#allocation4 + $0x60] sm:$0xf] }
 0x3c6   :  { %2494 = vmatpush.bf16.msra.mxu3 %v4006_v8  ;;  %v3930_v8 = vor.u32 %v4439_v6, %v3929_v46 }
 0x3c7   :  { %1931 = vst [vmem:[#allocation3 + $0x10] sm:$0xf] %v1929_v14  ;;  %2139 = vmatmul.bf16.vlgmr.msrb.gmra.mxu0 %v1929_v14  ;;  %2152 = vmatmul.bf16.vlgmr.msrb.gmra.mxu1 %v1929_v14 }
 0x3c8   :  { %2165 = vmatmul.bf16.vlgmr.msrb.gmra.mxu2 %v1929_v14  ;;  %2178 = vmatmul.bf16.vlgmr.msrb.gmra.mxu3 %v1929_v14  ;;  %v4451_v14 = vld [vmem:[#allocation4 + $0x6c] sm:$0xf0] }
 0x3c9   :  { %2455 = vmatpush.bf16.msra.mxu0 %v3994_v7  ;;  %v3978_v22 = vor.u32 %v4451_v14, %v3977_v10  ;;  %2469 = vmatpush.bf16.msra.mxu1 %v3982_v30  ;;  %v3931_v10 = vld [vmem:[#allocation4 + $0x10] sm:$0xf0]  ;;  %v3937_v14 = vld [vmem:[#allocation4 + $0x8] sm:$0xf]  ;;  %v3942_v30 = vor.u32 %v4438_v29, %v3939_v13  ;;  %v4140_v13 = vld [vmem:[#allocation4 + $0xa0] sm:$0xf] }
 0x3ca   :  { %2495 = vmatpush.bf16.msra.mxu3 %v3990_v59  ;;  %2483 = vmatpush.bf16.msra.mxu2 %v3970_v39 }
 0x3cd   :  { %2456 = vmatpush.bf16.msra.mxu0 %v3978_v22  ;;  %2470 = vmatpush.bf16.msra.mxu1 %v3966_v9  ;;  %v3934_v22 = vor.u32 %v4437_v58, %v3931_v10 }
 0x3ce   :  { %2484 = vmatpush.bf16.msra.mxu2 %v3954_v11 }
 0x3d1   :  { %2457 = vmatpush.bf16.msra.mxu0 %v3962_v2  ;;  %2471 = vmatpush.bf16.msra.mxu1 %v3950_v61 }
 0x3d5   :  { %2458 = vmatpush.bf16.msra.mxu0 %v3946_v60  ;;  %2472 = vmatpush.bf16.msra.mxu1 %v3934_v22  ;;  %v4495_v22 = vld [vmem:[#allocation4 + $0xcc] sm:$0xf0] }
 0x3d9   :  { %2459 = vmatpush.bf16.msra.mxu0 %v3930_v8 }
 0x444   :  { %v2140_v20 = vpop.f32.mrf.mxu0  ;;  %v2153_v26 = vpop.f32.mrf.mxu1 }
 0x445   :  { %v2183_v32 = vadd.f32 %v2140_v20, %v199_v16  ;;  %v2184_v34 = vadd.f32 %v2153_v26, %v5050_v27  ;;  %v3971_v27 = vld [vmem:[#allocation4 + $0x58] sm:$0xf0] }
 0x446   :  { %v3974_v24 = vor.u32 %v4446_v43, %v3971_v27 }
 0x447   :  { %v3924_v31 = vmul.f32 -1.442695, %v2183_v32  ;;  %v3925_v0 = vmul.f32 -1.442695, %v2184_v34 }
 0x448   :  { %2496 = vmatpush.bf16.msra.mxu3 %v3974_v24 }
 0x449   :  { %4609 = vpow2.f32 %v3924_v31 }
 0x44a   :  { %4611 = vpow2.f32 %v3925_v0 }
 0x44b   :  { %v2166_v50 = vpop.f32.mrf.mxu2  ;;  %v2179_v51 = vpop.f32.mrf.mxu3 }
 0x44c   :  { %v2185_v7 = vadd.f32 %v2166_v50, %v5038_v19  ;;  %v2142_v28 = vpop.f32.mrf.mxu0  ;;  %v2155_v56 = vpop.f32.mrf.mxu1  ;;  %v3938_v19 = vor.u32 %v4440_v36, %v3937_v14  ;;  %2497 = vmatpush.bf16.msra.mxu3 %v3958_v4  ;;  %v2186_v1 = vadd.f32 %v2179_v51, %v5053_v33  ;;  %v4499_v14 = vld [vmem:[#allocation4 + $0xec] sm:$0xf0] }
 0x44e   :  { %v3926_v16 = vmul.f32 -1.442695, %v2185_v7  ;;  %2485 = vmatpush.bf16.msra.mxu2 %v3938_v19 }
 0x44f   :  { %v4610_v15 = vpop.eup %4609 }
 0x450   :  { %v4612_v20 = vpop.eup %4611  ;;  %v2196_v26 = vadd.f32 1.0, %v4610_v15  ;;  %4613 = vpow2.f32 %v3926_v16  ;;  %2498 = vmatpush.bf16.msra.mxu3 %v3942_v30  ;;  %v4156_v16 = vld [vmem:[#allocation4 + $0xc0] sm:$0xf]  ;;  %v4491_v15 = vld [vmem:[#allocation4 + $0xac] sm:$0xf0] }
 0x451   :  { %v2197_v62 = vadd.f32 1.0, %v4612_v20  ;;  %v4157_v29 = vor.u32 %v4495_v22, %v4156_v16  ;;  %v4141_v19 = vor.u32 %v4491_v15, %v4140_v13  ;;  %v4124_v20 = vld [vmem:[#allocation4 + $0x80] sm:$0xf]  ;;  %v4471_v22 = vld [vmem:[#allocation4 + $0xc] sm:$0xf0] }
 0x452   :  { %4615 = vrcp.f32 %v2196_v26  ;;  %v2210_v37 = vand.u32 2147483648, %v2196_v26  ;;  %v2208_v35 = vand.u32 2147483647, %v2196_v26  ;;  %vm2204_vm15 = vweird.f32 %v2196_v26  ;;  %v4060_v16 = vld [vmem:[#allocation4] sm:$0xf] }
 0x453   :  { %4617 = vrcp.f32 %v2197_v62  ;;  %v2168_v53 = vpop.f32.mrf.mxu2  ;;  %v2181_v5 = vpop.f32.mrf.mxu3  ;;  %v2225_v9 = vand.u32 2147483648, %v2197_v62  ;;  %v2223_v39 = vand.u32 2147483647, %v2197_v62  ;;  %vm2219_vm0 = vweird.f32 %v2197_v62  ;;  %v4481_v13 = vld [vmem:[#allocation4 + $0x64] sm:$0xf] }
 0x454   :  { %v2211_v57 = vor.u32 1.1754944e-38, %v2210_v37  ;;  %vm2209_vm3 = vcmp.eq.f32.partialorder %v2208_v35, 8.507059e+37  ;;  %v4174_v53 = vld [vmem:[#allocation4 + $0xf0] sm:$0xf0]  ;;  %v4180_v5 = vld [vmem:[#allocation4 + $0xe8] sm:$0xf] }
 0x455   :  { %v2226_v60 = vor.u32 1.1754944e-38, %v2225_v9  ;;  %vm2224_vm4 = vcmp.eq.f32.partialorder %v2223_v39, 8.507059e+37  ;;  %v4493_v37 = vld [vmem:[#allocation4 + $0xc4] sm:$0xf]  ;;  %v4158_v9 = vld [vmem:[#allocation4 + $0xd0] sm:$0xf0] }
 0x456   :  { %v4614_v32 = vpop.eup %4613  ;;  %v4161_v35 = vor.u32 %v4493_v37, %v4158_v9  ;;  %v4494_v39 = vld [vmem:[#allocation4 + $0xcc] sm:$0xf]  ;;  %v4110_v15 = vld [vmem:[#allocation4 + $0x70] sm:$0xf0] }
 0x457   :  { %v2198_v34 = vadd.f32 1.0, %v4614_v32 }
 0x458   :  { %v4616_v59 = vpop.eup %4615 }
 0x459   :  { %v4618_v54 = vpop.eup %4617  ;;  %v2200_v18 = vmul.f32 %v4616_v59, %v2196_v26  ;;  %4619 = vrcp.f32 %v2198_v34  ;;  %vm2205_vm13 = vweird.f32 %v4616_v59  ;;  %v2240_v56 = vand.u32 2147483648, %v2198_v34  ;;  %v4487_v26 = vld [vmem:[#allocation4 + $0x8c] sm:$0xf0] }
 0x45a   :  { %v2215_v31 = vmul.f32 %v4618_v54, %v2197_v62  ;;  %4621 = vtanh.f32 %v2186_v1  ;;  %vm2220_vm14 = vweird.f32 %v4618_v54  ;;  %vm2206_vm1 = vmor %vm2204_vm15, %vm2205_vm13  ;;  %vm2234_vm6 = vweird.f32 %v2198_v34  ;;  %v4497_v62 = vld [vmem:[#allocation4 + $0xe4] sm:$0xf]  ;;  %v4182_v1 = vld [vmem:[#allocation4 + $0xf8] sm:$0xf0] }
 0x45b   :  { %v2201_v0 = vsub.f32 1.0, %v2200_v18  ;;  %vm2221_vm2 = vmor %vm2219_vm0, %vm2220_vm14  ;;  %v2238_v11 = vand.u32 2147483647, %v2198_v34  ;;  %v2241_v46 = vor.u32 1.1754944e-38, %v2240_v56  ;;  %v4125_v30 = vor.u32 %v4487_v26, %v4124_v20  ;;  %v4475_v56 = vld [vmem:[#allocation4 + $0x2c] sm:$0xf0] }
 0x45c   :  { %v2216_v2 = vsub.f32 1.0, %v2215_v31  ;;  %v4177_v32 = vor.u32 %v4497_v62, %v4174_v53  ;;  %v4108_v31 = vld [vmem:[#allocation4 + $0x60] sm:$0xf]  ;;  %v202_v20 = vadd.f32 %v4990_v52, %v5058_v44  ;;  %v4113_v26 = vor.u32 %v4481_v13, %v4110_v15  ;;  %v4482_v62 = vld [vmem:[#allocation4 + $0x6c] sm:$0xf] }
 0x45d   :  { %v2202_v21 = vmul.f32 %v4616_v59, %v2201_v0  ;;  %vm2239_vm8 = vcmp.eq.f32.partialorder %v2238_v11, 8.507059e+37  ;;  %v4483_v0 = vld [vmem:[#allocation4 + $0x6c] sm:$0xf0]  ;;  %v4118_v53 = vld [vmem:[#allocation4 + $0x78] sm:$0xf0] }
 0x45e   :  { %v2217_v43 = vmul.f32 %v4618_v54, %v2216_v2  ;;  %2786 = vmatpush.bf16.msrb.mxu1 %v4177_v32  ;;  %v4109_v2 = vor.u32 %v4483_v0, %v4108_v31  ;;  %v4477_v31 = vld [vmem:[#allocation4 + $0x44] sm:$0xf]  ;;  %v4094_v0 = vld [vmem:[#allocation4 + $0x50] sm:$0xf0] }
 0x45f   :  { %v4620_v27 = vpop.eup %4619  ;;  %v2203_v42 = vadd.f32 %v4616_v59, %v2202_v21  ;;  %v4164_v21 = vld [vmem:[#allocation4 + $0xc8] sm:$0xf]  ;;  %v4097_v9 = vor.u32 %v4477_v31, %v4094_v0 }
 0x460   :  { %v2230_v33 = vmul.f32 %v4620_v27, %v2198_v34  ;;  %v2218_v24 = vadd.f32 %v4618_v54, %v2217_v43  ;;  %v4622_v47 = vpop.eup %4621  ;;  %vm2235_vm5 = vweird.f32 %v4620_v27  ;;  %v4500_v34 = vld [vmem:[#allocation4 + $0xf4] sm:$0xf0] }
 0x461   :  { %v2207_v41 = vsel %vm2206_vm1, %v4616_v59, %v2203_v42  ;;  %vm2236_vm7 = vmor %vm2234_vm6, %vm2235_vm5  ;;  %v4498_v59 = vld [vmem:[#allocation4 + $0xec] sm:$0xf]  ;;  %v4496_v43 = vld [vmem:[#allocation4 + $0xd4] sm:$0xf0] }
 0x462   :  { %v2231_v49 = vsub.f32 1.0, %v2230_v33  ;;  %v2212_v50 = vsel %vm2209_vm3, %v2211_v57, %v2207_v41  ;;  %v2222_v51 = vsel %vm2221_vm2, %v4618_v54, %v2218_v24  ;;  %v4181_v54 = vor.u32 %v4500_v34, %v4180_v5  ;;  %2787 = vmatpush.bf16.msrb.mxu1 %v4161_v35  ;;  %v4092_v57 = vld [vmem:[#allocation4 + $0x40] sm:$0xf]  ;;  %v4479_v24 = vld [vmem:[#allocation4 + $0x4c] sm:$0xf0] }
 0x463   :  { %v2227_v61 = vsel %vm2224_vm4, %v2226_v60, %v2222_v51  ;;  %v2246_v63 = vmul.f32 %v4622_v47, %v2212_v50  ;;  %v4185_v18 = vor.u32 %v4498_v59, %v4182_v1  ;;  %v4165_v42 = vor.u32 %v4496_v43, %v4164_v21  ;;  %v4489_v41 = vld [vmem:[#allocation4 + $0xa4] sm:$0xf]  ;;  %v4142_v47 = vld [vmem:[#allocation4 + $0xb0] sm:$0xf0]  ;;  %v4492_v51 = vld [vmem:[#allocation4 + $0xb4] sm:$0xf0] }
 0x464   :  { %v2232_v12 = vmul.f32 %v4620_v27, %v2231_v49  ;;  %v2245_v48 = vmul.f32 %v2227_v61, %v5135_v3  ;;  %v4172_v3 = vld [vmem:[#allocation4 + $0xe0] sm:$0xf]  ;;  %2799 = vmatpush.bf16.msrb.mxu2 %v4181_v54  ;;  %v4093_v60 = vor.u32 %v4479_v24, %v4092_v57  ;;  %v4148_v49 = vld [vmem:[#allocation4 + $0xa8] sm:$0xf]  ;;  %v4145_v50 = vor.u32 %v4489_v41, %v4142_v47  ;;  %v4490_v61 = vld [vmem:[#allocation4 + $0xac] sm:$0xf] }
 0x465   :  { %v4173_v36 = vor.u32 %v4499_v14, %v4172_v3  ;;  %2812 = vmatpush.bf16.msrb.mxu3 %v4185_v18  ;;  %v4134_v3 = vld [vmem:[#allocation4 + $0x98] sm:$0xf0]  ;;  %v4121_v59 = vor.u32 %v4482_v62, %v4118_v53  ;;  %v4480_v21 = vld [vmem:[#allocation4 + $0x54] sm:$0xf0]  ;;  %v4478_v43 = vld [vmem:[#allocation4 + $0x4c] sm:$0xf] }
 0x466   :  { %v5144_v7 = vadd.f32 %v2246_v63, %v2245_v48  ;;  %v2233_v28 = vadd.f32 %v4620_v27, %v2232_v12  ;;  %v4150_v63 = vld [vmem:[#allocation4 + $0xb8] sm:$0xf0]  ;;  %v4149_v12 = vor.u32 %v4492_v51, %v4148_v49  ;;  %2788 = vmatpush.bf16.msrb.mxu1 %v4145_v50  ;;  %v4084_v57 = vld [vmem:[#allocation4 + $0x28] sm:$0xf]  ;;  %v4474_v41 = vld [vmem:[#allocation4 + $0x2c] sm:$0xf] }
 0x467   :  { %2773 = vmatpush.bf16.msrb.mxu0 %v4173_v36  ;;  %v4153_v48 = vor.u32 %v4490_v61, %v4150_v63  ;;  %v4512_v1 = vld [vmem:[#allocation9 + $0x38] sm:$0xff]  ;;  %v4510_v63 = vld [vmem:[#allocation9 + $0x28] sm:$0xff] }
 0x468   :  { %4623 = vtanh.f32 %v5144_v7  ;;  %v2237_v4 = vsel %vm2236_vm7, %v4620_v27, %v2233_v28  ;;  %v4166_v27 = vld [vmem:[#allocation4 + $0xd8] sm:$0xf0]  ;;  %2800 = vmatpush.bf16.msrb.mxu2 %v4165_v42  ;;  %v4076_v28 = vld [vmem:[#allocation4 + $0x20] sm:$0xf] }
 0x469   :  { %v2242_v58 = vsel %vm2239_vm8, %v2241_v46, %v2237_v4  ;;  %v4169_v33 = vor.u32 %v4494_v39, %v4166_v27  ;;  %v4077_v11 = vor.u32 %v4475_v56, %v4076_v28  ;;  %v4485_v4 = vld [vmem:[#allocation4 + $0x84] sm:$0xf]  ;;  %v4126_v46 = vld [vmem:[#allocation4 + $0x90] sm:$0xf0]  ;;  %v4102_v39 = vld [vmem:[#allocation4 + $0x58] sm:$0xf0] }
 0x46a   :  { %v4511_v27 = vld [vmem:[#allocation9 + $0x30] sm:$0xff]  ;;  %v4105_v42 = vor.u32 %v4478_v43, %v4102_v39  ;;  %v4086_v47 = vld [vmem:[#allocation4 + $0x38] sm:$0xf0] }
 0x46b   :  { %2774 = vmatpush.bf16.msrb.mxu0 %v4157_v29  ;;  %2813 = vmatpush.bf16.msrb.mxu3 %v4169_v33  ;;  %v4061_v29 = vor.u32 %v4471_v22, %v4060_v16  ;;  %v4473_v33 = vld [vmem:[#allocation4 + $0x24] sm:$0xf]  ;;  %v4089_v61 = vor.u32 %v4474_v41, %v4086_v47 }
 0x46c   :  { %2801 = vmatpush.bf16.msrb.mxu2 %v4149_v12  ;;  %v4469_v12 = vld [vmem:[#allocation4 + $0x4] sm:$0xf] }
 0x46d   :  { %v4509_v16 = vld [vmem:[#allocation9 + $0x20] sm:$0xff] }
 0x46e   :  { %v4624_v6 = vpop.eup %4623 }
 0x46f   :  { %v2249_v8 = vmul.f32 %v4624_v6, %v2242_v58  ;;  %2775 = vmatpush.bf16.msrb.mxu0 %v4141_v19  ;;  %2814 = vmatpush.bf16.msrb.mxu3 %v4153_v48  ;;  %v4132_v6 = vld [vmem:[#allocation4 + $0x88] sm:$0xf]  ;;  %v4129_v58 = vor.u32 %v4485_v4, %v4126_v46  ;;  %v4062_v48 = vld [vmem:[#allocation4 + $0x10] sm:$0xf0]  ;;  %v4472_v46 = vld [vmem:[#allocation4 + $0x14] sm:$0xf0] }
 0x470   :  { %v4116_v19 = vld [vmem:[#allocation4 + $0x68] sm:$0xf] }
 0x471   :  { %v2250_v10 = vpack.c.bf16 %v2249_v8, %v2249_v8  ;;  %v4488_v8 = vld [vmem:[#allocation4 + $0x94] sm:$0xf0]  ;;  %2789 = vmatpush.bf16.msrb.mxu1 %v4129_v58  ;;  %v4068_v4 = vld [vmem:[#allocation4 + $0x8] sm:$0xf]  ;;  %v4065_v58 = vor.u32 %v4469_v12, %v4062_v48 }
 0x472   :  { %v4133_v14 = vor.u32 %v4488_v8, %v4132_v6  ;;  %v4470_v6 = vld [vmem:[#allocation4 + $0xc] sm:$0xf]  ;;  %v4070_v8 = vld [vmem:[#allocation4 + $0x18] sm:$0xf0] }
 0x473   :  { %2252 = vst [vmem:[#allocation3 + $0x14] sm:$0xf] %v2250_v10  ;;  %2460 = vmatmul.bf16.vlgmr.msra.gmra.mxu0 %v2250_v10  ;;  %2473 = vmatmul.bf16.vlgmr.msra.gmra.mxu1 %v2250_v10 }
 0x474   :  { %2486 = vmatmul.bf16.vlgmr.msra.gmra.mxu2 %v2250_v10  ;;  %2499 = vmatmul.bf16.vlgmr.msra.gmra.mxu3 %v2250_v10  ;;  %v4486_v10 = vld [vmem:[#allocation4 + $0x8c] sm:$0xf] }
 0x475   :  { %2776 = vmatpush.bf16.msrb.mxu0 %v4125_v30  ;;  %v4137_v36 = vor.u32 %v4486_v10, %v4134_v3  ;;  %2802 = vmatpush.bf16.msrb.mxu2 %v4133_v14  ;;  %v4484_v30 = vld [vmem:[#allocation4 + $0x74] sm:$0xf0]  ;;  %v4069_v3 = vor.u32 %v4472_v46, %v4068_v4  ;;  %v4502_v46 = vld [vmem:[#allocation3 + $0x8] sm:$0xff] }
 0x476   :  { %v4117_v34 = vor.u32 %v4484_v30, %v4116_v19  ;;  %2790 = vmatpush.bf16.msrb.mxu1 %v4113_v26  ;;  %v4508_v19 = vld [vmem:[#allocation9 + $0x18] sm:$0xff]  ;;  %v4507_v30 = vld [vmem:[#allocation9 + $0x10] sm:$0xff] }
 0x477   :  { %2815 = vmatpush.bf16.msrb.mxu3 %v4137_v36  ;;  %v4073_v36 = vor.u32 %v4470_v6, %v4070_v8 }
 0x479   :  { %2777 = vmatpush.bf16.msrb.mxu0 %v4109_v2  ;;  %2803 = vmatpush.bf16.msrb.mxu2 %v4117_v34  ;;  %v4100_v2 = vld [vmem:[#allocation4 + $0x48] sm:$0xf] }
 0x47a   :  { %v4101_v35 = vor.u32 %v4480_v21, %v4100_v2  ;;  %2791 = vmatpush.bf16.msrb.mxu1 %v4097_v9  ;;  %v4503_v6 = vld [vmem:[#allocation3 + $0x10] sm:$0xff] }
 0x47b   :  { %2816 = vmatpush.bf16.msrb.mxu3 %v4121_v59 }
 0x47d   :  { %2778 = vmatpush.bf16.msrb.mxu0 %v4093_v60  ;;  %2804 = vmatpush.bf16.msrb.mxu2 %v4101_v35  ;;  %v4476_v60 = vld [vmem:[#allocation4 + $0x34] sm:$0xf0] }
 0x47e   :  { %v4085_v51 = vor.u32 %v4476_v60, %v4084_v57 }
 0x47f   :  { %2817 = vmatpush.bf16.msrb.mxu3 %v4105_v42 }
 0x481   :  { %2779 = vmatpush.bf16.msrb.mxu0 %v4077_v11  ;;  %2805 = vmatpush.bf16.msrb.mxu2 %v4085_v51 }
 0x483   :  { %2818 = vmatpush.bf16.msrb.mxu3 %v4089_v61 }
 0x485   :  { %2780 = vmatpush.bf16.msrb.mxu0 %v4061_v29  ;;  %2806 = vmatpush.bf16.msrb.mxu2 %v4069_v3 }
 0x487   :  { %2819 = vmatpush.bf16.msrb.mxu3 %v4073_v36 }
 0x489   :  { %2997 = vmatpush.bf16.msra.mxu0 %v4512_v1  ;;  %v4506_v1 = vld [vmem:[#allocation9 + $0x8] sm:$0xff] }
 0x48d   :  { %2998 = vmatpush.bf16.msra.mxu0 %v4511_v27 }
 0x491   :  { %2999 = vmatpush.bf16.msra.mxu0 %v4510_v63 }
 0x495   :  { %3000 = vmatpush.bf16.msra.mxu0 %v4509_v16 }
 0x499   :  { %3001 = vmatpush.bf16.msra.mxu0 %v4508_v19 }
 0x49d   :  { %3002 = vmatpush.bf16.msra.mxu0 %v4507_v30 }
 0x4a1   :  { %3003 = vmatpush.bf16.msra.mxu0 %v4506_v1 }
 0x4f0   :  { %v2461_v5 = vpop.f32.mrf.mxu0  ;;  %v2474_v32 = vpop.f32.mrf.mxu1 }
 0x4f1   :  { %v2504_v54 = vadd.f32 %v2461_v5, %v202_v20  ;;  %v2505_v18 = vadd.f32 %v2474_v32, %v5061_v45  ;;  %v4078_v45 = vld [vmem:[#allocation4 + $0x30] sm:$0xf0] }
 0x4f2   :  { %v4081_v24 = vor.u32 %v4473_v33, %v4078_v45 }
 0x4f3   :  { %v4055_v52 = vmul.f32 -1.442695, %v2504_v54  ;;  %v4056_v37 = vmul.f32 -1.442695, %v2505_v18 }
 0x4f4   :  { %2792 = vmatpush.bf16.msrb.mxu1 %v4081_v24 }
 0x4f5   :  { %4625 = vpow2.f32 %v4055_v52 }
 0x4f6   :  { %4627 = vpow2.f32 %v4056_v37 }
 0x4f7   :  { %v2487_v49 = vpop.f32.mrf.mxu2  ;;  %v2500_v50 = vpop.f32.mrf.mxu3 }
 0x4f8   :  { %v2506_v28 = vadd.f32 %v2487_v49, %v5047_v25  ;;  %v2463_v56 = vpop.f32.mrf.mxu0  ;;  %v2476_v11 = vpop.f32.mrf.mxu1  ;;  %2793 = vmatpush.bf16.msrb.mxu1 %v4065_v58  ;;  %v2507_v53 = vadd.f32 %v2500_v50, %v5065_v23  ;;  %v4505_v23 = vld [vmem:[#allocation9] sm:$0xff]  ;;  %v204_v58 = vadd.f32 %v4996_v55, %v5058_v44  ;;  %v5163_v44 = vld [vmem:[%s5189_s5] ss:$0 sm:$0xff]  ;;  %s4843_s5 = smov [#allocation13]  }
 0x4f9   :  { %3004 = vmatpush.bf16.msra.mxu0 %v4505_v23  ;;  %s3052_s15 = sshll.u32 %s4843_s5, 4  ;;  %s3053_s15 = int_to_ptr.vmem [resolvable:$true] %s3052_s15 }
 0x4fa   :  { %v4057_v10 = vmul.f32 -1.442695, %v2506_v28 }
 0x4fb   :  { %v4626_v14 = vpop.eup %4625 }
 0x4fc   :  { %v4628_v22 = vpop.eup %4627  ;;  %v2517_v29 = vadd.f32 1.0, %v4626_v14  ;;  %4629 = vpow2.f32 %v4057_v10 }
 0x4fd   :  { %v2518_v25 = vadd.f32 1.0, %v4628_v22 }
 0x4fe   :  { %4631 = vrcp.f32 %v2517_v29  ;;  %v2531_v18 = vand.u32 2147483648, %v2517_v29  ;;  %v2529_v2 = vand.u32 2147483647, %v2517_v29  ;;  %vm2525_vm11 = vweird.f32 %v2517_v29 }
 0x4ff   :  { %4633 = vrcp.f32 %v2518_v25  ;;  %v2489_v13 = vpop.f32.mrf.mxu2  ;;  %v2502_v15 = vpop.f32.mrf.mxu3  ;;  %v2546_v31 = vand.u32 2147483648, %v2518_v25  ;;  %v2544_v37 = vand.u32 2147483647, %v2518_v25  ;;  %vm2540_vm12 = vweird.f32 %v2518_v25 }
 0x500   :  { %v2532_v43 = vor.u32 1.1754944e-38, %v2531_v18  ;;  %vm2530_vm15 = vcmp.eq.f32.partialorder %v2529_v2, 8.507059e+37 }
 0x501   :  { %v2547_v27 = vor.u32 1.1754944e-38, %v2546_v31  ;;  %vm2545_vm0 = vcmp.eq.f32.partialorder %v2544_v37, 8.507059e+37 }
 0x502   :  { %v4630_v20 = vpop.eup %4629 }
 0x503   :  { %v2519_v26 = vadd.f32 1.0, %v4630_v20 }
 0x504   :  { %v4632_v62 = vpop.eup %4631 }
 0x505   :  { %v4634_v5 = vpop.eup %4633  ;;  %v2521_v32 = vmul.f32 %v4632_v62, %v2517_v29  ;;  %4635 = vrcp.f32 %v2519_v26  ;;  %vm2526_vm9 = vweird.f32 %v4632_v62  ;;  %v2561_v61 = vand.u32 2147483648, %v2519_v26 }
 0x506   :  { %v2536_v34 = vmul.f32 %v4634_v5, %v2518_v25  ;;  %4637 = vtanh.f32 %v2507_v53  ;;  %vm2541_vm10 = vweird.f32 %v4634_v5  ;;  %vm2527_vm13 = vmor %vm2525_vm11, %vm2526_vm9  ;;  %vm2555_vm2 = vweird.f32 %v2519_v26 }
 0x507   :  { %v2522_v59 = vsub.f32 1.0, %v2521_v32  ;;  %vm2542_vm14 = vmor %vm2540_vm12, %vm2541_vm10  ;;  %v2559_v63 = vand.u32 2147483647, %v2519_v26  ;;  %v2562_v48 = vor.u32 1.1754944e-38, %v2561_v61 }
 0x508   :  { %v2537_v54 = vsub.f32 1.0, %v2536_v34 }
 0x509   :  { %v2523_v0 = vmul.f32 %v4632_v62, %v2522_v59  ;;  %vm2560_vm4 = vcmp.eq.f32.partialorder %v2559_v63, 8.507059e+37 }
 0x50a   :  { %v2538_v52 = vmul.f32 %v4634_v5, %v2537_v54 }
 0x50b   :  { %v4636_v9 = vpop.eup %4635  ;;  %v2524_v21 = vadd.f32 %v4632_v62, %v2523_v0 }
 0x50c   :  { %v2551_v35 = vmul.f32 %v4636_v9, %v2519_v26  ;;  %v2539_v39 = vadd.f32 %v4634_v5, %v2538_v52  ;;  %v4638_v33 = vpop.eup %4637  ;;  %vm2556_vm1 = vweird.f32 %v4636_v9 }
 0x50d   :  { %v2528_v42 = vsel %vm2527_vm13, %v4632_v62, %v2524_v21  ;;  %vm2557_vm3 = vmor %vm2555_vm2, %vm2556_vm1 }
 0x50e   :  { %v2552_v45 = vsub.f32 1.0, %v2551_v35  ;;  %v2533_v57 = vsel %vm2530_vm15, %v2532_v43, %v2528_v42  ;;  %v2543_v24 = vsel %vm2542_vm14, %v4634_v5, %v2539_v39 }
 0x50f   :  { %v2548_v60 = vsel %vm2545_vm0, %v2547_v27, %v2543_v24  ;;  %v2567_v41 = vmul.f32 %v4638_v33, %v2533_v57 }
 0x510   :  { %v2553_v47 = vmul.f32 %v4636_v9, %v2552_v45  ;;  %v2566_v49 = vmul.f32 %v2548_v60, %v5144_v7  ;;  %v4501_v7 = vld [vmem:[#allocation3] sm:$0xff] }
 0x512   :  { %v5153_v50 = vadd.f32 %v2567_v41, %v2566_v49  ;;  %v2554_v51 = vadd.f32 %v4636_v9, %v2553_v47 }
 0x514   :  { %4639 = vtanh.f32 %v5153_v50  ;;  %v2558_v12 = vsel %vm2557_vm3, %v4636_v9, %v2554_v51 }
 0x515   :  { %v2563_v56 = vsel %vm2560_vm4, %v2562_v48, %v2558_v12 }
 0x51a   :  { %v4640_v28 = vpop.eup %4639 }
 0x51b   :  { %v2570_v11 = vmul.f32 %v4640_v28, %v2563_v56 }
 0x51d   :  { %v2571_v4 = vpack.c.bf16 %v2570_v11, %v2570_v11 }
 0x51f   :  { %2573 = vst [vmem:[#allocation3 + $0x18] sm:$0xf] %v2571_v4  ;;  %2781 = vmatmul.bf16.vlgmr.msrb.gmra.mxu0 %v2571_v4  ;;  %2794 = vmatmul.bf16.vlgmr.msrb.gmra.mxu1 %v2571_v4 }
 0x520   :  { %2807 = vmatmul.bf16.vlgmr.msrb.gmra.mxu2 %v2571_v4  ;;  %2820 = vmatmul.bf16.vlgmr.msrb.gmra.mxu3 %v2571_v4 }
 0x52f   :  { %3005 = vmatmul.bf16.vlgmr.msra.gmra.mxu0 %v4501_v7 }
 0x53f   :  { %3010 = vmatmul.bf16.gmra.mxu0 %v4502_v46 }
 0x54f   :  { %3015 = vmatmul.bf16.gmra.mxu0 %v4503_v6 }
 0x59c   :  { %v2782_v8 = vpop.f32.mrf.mxu0  ;;  %v2795_v10 = vpop.f32.mrf.mxu1 }
 0x59d   :  { %v2825_v3 = vadd.f32 %v2782_v8, %v204_v58  ;;  %v2826_v14 = vadd.f32 %v2795_v10, %v5068_v40 }
 0x59f   :  { %v4186_v36 = vmul.f32 -1.442695, %v2825_v3  ;;  %v4187_v16 = vmul.f32 -1.442695, %v2826_v14 }
 0x5a1   :  { %4641 = vpow2.f32 %v4186_v36 }
 0x5a2   :  { %4643 = vpow2.f32 %v4187_v16 }
 0x5a3   :  { %v2808_v22 = vpop.f32.mrf.mxu2  ;;  %v2821_v29 = vpop.f32.mrf.mxu3 }
 0x5a4   :  { %v2827_v25 = vadd.f32 %v2808_v22, %v5056_v38  ;;  %v2784_v13 = vpop.f32.mrf.mxu0  ;;  %v2797_v15 = vpop.f32.mrf.mxu1  ;;  %v2828_v59 = vadd.f32 %v2821_v29, %v5073_v17 }
 0x5a6   :  { %v4188_v19 = vmul.f32 -1.442695, %v2827_v25 }
 0x5a7   :  { %v4642_v20 = vpop.eup %4641 }
 0x5a8   :  { %v4644_v26 = vpop.eup %4643  ;;  %v2838_v30 = vadd.f32 1.0, %v4642_v20  ;;  %4645 = vpow2.f32 %v4188_v19 }
 0x5a9   :  { %v2839_v55 = vadd.f32 1.0, %v4644_v26 }
 0x5aa   :  { %4647 = vrcp.f32 %v2838_v30  ;;  %v2850_v2 = vand.u32 2147483647, %v2838_v30  ;;  %v2852_v52 = vand.u32 2147483648, %v2838_v30  ;;  %vm2846_vm7 = vweird.f32 %v2838_v30 }
 0x5ab   :  { %4649 = vrcp.f32 %v2839_v55  ;;  %v2810_v40 = vpop.f32.mrf.mxu2  ;;  %v2823_v62 = vpop.f32.mrf.mxu3  ;;  %v2867_v9 = vand.u32 2147483648, %v2839_v55  ;;  %v2865_v43 = vand.u32 2147483647, %v2839_v55  ;;  %vm2861_vm8 = vweird.f32 %v2839_v55 }
 0x5ac   :  { %v3006_v53 = vpop.f32.mrf.mxu0  ;;  %v2853_v42 = vor.u32 1.1754944e-38, %v2852_v52  ;;  %vm2851_vm11 = vcmp.eq.f32.partialorder %v2850_v2, 8.507059e+37 }
 0x5ad   :  { %v3007_v38 = vadd.f32 %v5163_v44, %v3006_v53  ;;  %v2868_v45 = vor.u32 1.1754944e-38, %v2867_v9  ;;  %vm2866_vm12 = vcmp.eq.f32.partialorder %v2865_v43, 8.507059e+37 }
 0x5ae   :  { %v4646_v5 = vpop.eup %4645 }
 0x5af   :  { %v2840_v32 = vadd.f32 1.0, %v4646_v5  ;;  %3026 = vst [vmem:[#allocation12] sm:$0xff] %v3007_v38 }
 0x5b0   :  { %v4648_v34 = vpop.eup %4647 }
 0x5b1   :  { %v4650_v1 = vpop.eup %4649  ;;  %v2842_v54 = vmul.f32 %v4648_v34, %v2838_v30  ;;  %4651 = vrcp.f32 %v2840_v32  ;;  %vm2847_vm5 = vweird.f32 %v4648_v34  ;;  %v2882_v11 = vand.u32 2147483648, %v2840_v32 }
 0x5b2   :  { %v2857_v18 = vmul.f32 %v4650_v1, %v2839_v55  ;;  %4653 = vtanh.f32 %v2828_v59  ;;  %vm2862_vm6 = vweird.f32 %v4650_v1  ;;  %vm2848_vm9 = vmor %vm2846_vm7, %vm2847_vm5  ;;  %vm2876_vm14 = vweird.f32 %v2840_v32 }
 0x5b3   :  { %v2843_v31 = vsub.f32 1.0, %v2842_v54  ;;  %vm2863_vm10 = vmor %vm2861_vm8, %vm2862_vm6  ;;  %v2880_v4 = vand.u32 2147483647, %v2840_v32  ;;  %v2883_v46 = vor.u32 1.1754944e-38, %v2882_v11 }
 0x5b4   :  { %v2858_v0 = vsub.f32 1.0, %v2857_v18  ;;  %v3008_v37 = vpop.f32.mrf.mxu0 }
 0x5b5   :  { %v2844_v21 = vmul.f32 %v4648_v34, %v2843_v31  ;;  %v3009_v23 = vadd.f32 %v5163_v44, %v3008_v37  ;;  %vm2881_vm0 = vcmp.eq.f32.partialorder %v2880_v4, 8.507059e+37 }
 0x5b6   :  { %v2859_v35 = vmul.f32 %v4650_v1, %v2858_v0 }
 0x5b7   :  { %v4652_v39 = vpop.eup %4651  ;;  %v2845_v17 = vadd.f32 %v4648_v34, %v2844_v21  ;;  %3027 = vst [vmem:[#allocation12 + $0x8] sm:$0xff] %v3009_v23 }
 0x5b8   :  { %v2872_v27 = vmul.f32 %v4652_v39, %v2840_v32  ;;  %v2860_v33 = vadd.f32 %v4650_v1, %v2859_v35  ;;  %v4654_v24 = vpop.eup %4653  ;;  %vm2877_vm13 = vweird.f32 %v4652_v39 }
 0x5b9   :  { %v2849_v57 = vsel %vm2848_vm9, %v4648_v34, %v2845_v17  ;;  %vm2878_vm15 = vmor %vm2876_vm14, %vm2877_vm13 }
 0x5ba   :  { %v2873_v60 = vsub.f32 1.0, %v2872_v27  ;;  %v2854_v41 = vsel %vm2851_vm11, %v2853_v42, %v2849_v57  ;;  %v2864_v47 = vsel %vm2863_vm10, %v4650_v1, %v2860_v33 }
 0x5bb   :  { %v2869_v49 = vsel %vm2866_vm12, %v2868_v45, %v2864_v47  ;;  %v2888_v51 = vmul.f32 %v4654_v24, %v2854_v41 }
 0x5bc   :  { %v2874_v61 = vmul.f32 %v4652_v39, %v2873_v60  ;;  %v2887_v63 = vmul.f32 %v2869_v49, %v5153_v50  ;;  %v3011_v12 = vpop.f32.mrf.mxu0 }
 0x5bd   :  { %v3012_v48 = vadd.f32 %v5163_v44, %v3011_v12 }
 0x5be   :  { %v2889_v28 = vadd.f32 %v2888_v51, %v2887_v63  ;;  %v2875_v56 = vadd.f32 %v4652_v39, %v2874_v61 }
 0x5bf   :  { %3028 = vst [vmem:[#allocation12 + $0x10] sm:$0xff] %v3012_v48 }
 0x5c0   :  { %4655 = vtanh.f32 %v2889_v28  ;;  %2896 = vst [vmem:[#allocation15] sm:$0xff] %v2889_v28  ;;  %v2879_v7 = vsel %vm2878_vm15, %v4652_v39, %v2875_v56 }
 0x5c1   :  { %v2884_v8 = vsel %vm2881_vm0, %v2883_v46, %v2879_v7 }
 0x5c4   :  { %v3013_v6 = vpop.f32.mrf.mxu0 }
 0x5c5   :  { %v3014_v58 = vadd.f32 %v5163_v44, %v3013_v6 }
 0x5c6   :  { %v4656_v50 = vpop.eup %4655 }
 0x5c7   :  { %v2891_v10 = vmul.f32 %v4656_v50, %v2884_v8  ;;  %3029 = vst [vmem:[#allocation12 + $0x18] sm:$0xff] %v3014_v58 }
 0x5c9   :  { %v2892_v3 = vpack.c.bf16 %v2891_v10, %v2891_v10  ;;  %2895 = vst [vmem:[#allocation13] sm:$0xff] %v2891_v10 }
 0x5ca   :  { %3057 = dma.vmem_to_hbm [thread:$0]  %s3053_s15, 128, %s3055_s17, [#allocation14]  }
 0x5cb   :  { %2894 = vst [vmem:[#allocation3 + $0x1c] sm:$0xf] %v2892_v3  ;;  %3068 = dma.vmem_to_hbm [thread:$0]  %s3064_s19, 128, %s3066_s22, [#allocation14]  }
 0x5cc   :  { %v3016_v14 = vpop.f32.mrf.mxu0 }
 0x5cd   :  { %v3017_v36 = vadd.f32 %v5163_v44, %v3016_v14 }
 0x5cf   :  { %3030 = vst [vmem:[#allocation12 + $0x20] sm:$0xff] %v3017_v36 }
 0x5d2   :  { %v4504_v16 = vld [vmem:[#allocation3 + $0x18] sm:$0xff] }
 0x5d3   :  { %3020 = vmatmul.bf16.gmra.mxu0 %v4504_v16 }
 0x5d4   :  { %v3018_v22 = vpop.f32.mrf.mxu0 }
 0x5d5   :  { %v3019_v29 = vadd.f32 %v5163_v44, %v3018_v22 }
 0x5d7   :  { %3031 = vst [vmem:[#allocation12 + $0x28] sm:$0xff] %v3019_v29 }
 0x650   :  { %v3021_v25 = vpop.f32.mrf.mxu0 }
 0x651   :  { %v3022_v13 = vadd.f32 %v5163_v44, %v3021_v25 }
 0x653   :  { %3032 = vst [vmem:[#allocation12 + $0x30] sm:$0xff] %v3022_v13 }
 0x658   :  { %v3023_v15 = vpop.f32.mrf.mxu0 }
 0x659   :  { %v3024_v19 = vadd.f32 %v5163_v44, %v3023_v15 }
 0x65b   :  { %3033 = vst [vmem:[#allocation12 + $0x38] sm:$0xff] %v3024_v19 }
 0x65c   :  { %3046 = dma.vmem_to_hbm [thread:$0]  %s3039_s24, 1024, %s3041_s26, [#allocation6], %s4846_s10, %s4846_s10, %s4847_s3  }
 0x65d   :  { %4831 = dma.done.wait [#allocation6], 1024  }
 0x65e   :  { %4832 = vsyncadd [#allocation6], 4294966272 }
 0x65f   :  { %4833 = dma.done.wait [#allocation14], 256  }
 0x660   :  { %4834 = vsyncadd [#allocation14], 4294967040 }
 0x661   :  { %3081 = vsyncpa [#allocation5], 1 }
 0x662   :  { %3082 = vsyncpa [#allocation8], 1 }
 0x663   :  { %3083 = vsyncpa [#allocation11], 1 }
 0x664   :  { %3084 = vsyncpa [#allocation6], 1 }
 0x665   :  { %3085 = vsyncpa [#allocation14], 1 }

</bundles_post_ra>
